<compile_context>
chip_gen: v7x
topology: tpu7x:2x2x1
jax: 0.10.0
libtpu: 0.0.40
codegen_flags: <defaults>
</compile_context>

<pallas_src>
import jax
import jax.numpy as jnp
from jax.experimental import pallas as pl
from jax.experimental.pallas import tpu as pltpu


# ---------------------------------------------------------------------------
# Pallas kernel: in-kernel im2col + (patches @ weight) on MXU + fused leaky_relu
# ---------------------------------------------------------------------------
def _make_conv_kernel(kh, kw, row_tile, ow, c, o_tile, stride):
    """Kernel computing `row_tile` output rows x full OW x `o_tile` channels."""

    def kernel(x_ref, w_ref, o_ref, acc_ref):
        # x_ref:   (HP, WP, C)            bf16  -- whole padded image (this batch)
        # w_ref:   (KH, KW, C, O_TILE)    bf16
        # o_ref:   (ROW_TILE, OW, O_TILE) f32   -- lane-dense (O_TILE % 128 == 0)
        # acc_ref: (ROW_TILE*OW, O_TILE)  f32 scratch accumulator
        t = pl.program_id(1)
        row0 = pl.multiple_of(t * (row_tile * stride), row_tile * stride)

        acc_ref[...] = jnp.zeros_like(acc_ref)
        for i in range(kh):
            if stride == 1:
                rows = x_ref[pl.ds(row0 + i, row_tile), :, :]
            else:
                rows = x_ref[pl.ds(row0 + i, row_tile, stride=stride), :, :]
            for j in range(kw):
                if stride == 1:
                    slab = rows[:, j:j + ow, :]
                else:
                    slab = rows[:, j:j + (ow - 1) * stride + 1:stride, :]
                patch = slab.reshape(row_tile * ow, c)                 # (M_tile, C)
                acc_ref[...] += jnp.dot(patch, w_ref[i, j],
                                        preferred_element_type=jnp.float32)

        acc = acc_ref[...]
        # F.leaky_relu default negative_slope = 0.01, on the f32 accumulator.
        acc = jnp.where(acc >= 0, acc, jnp.float32(0.01) * acc)
        o_ref[...] = acc.reshape(row_tile, ow, o_tile).astype(o_ref.dtype)

    return kernel


# ---------------------------------------------------------------------------
# Wrapper: layout plumbing (NCHW <-> NHWC), padding, tiling, pallas_call
# ---------------------------------------------------------------------------
def basic_conv2d(x, weight, *, stride=1, padding=0, target_m=512):
    """BasicConv2d forward: conv2d(bias=False) + leaky_relu(0.01).

    x:      (N, C, H, W)   float32 (NCHW, as PyTorch)
    weight: (O, C, KH, KW) float32 (OIHW, as PyTorch nn.Conv2d.weight)
    returns (N, O, OH, OW) float32
    """
    n, c, h, w = x.shape
    o, c2, kh, kw = weight.shape
    assert c == c2
    s = stride

    oh = (h + 2 * padding - kh) // s + 1
    ow = (w + 2 * padding - kw) // s + 1

    # Output-row tile sized so the matmul M dim (row_tile * OW) is ~target_m.
    row_tile = max(1, min(oh, target_m // max(ow, 1)))
    nt = pl.cdiv(oh, row_tile)
    oh_t = nt * row_tile

    # Output channels padded to a lane-dense multiple of 128; tile O for big O.
    o_pad = ((o + 127) // 128) * 128
    o_tile = 256 if o_pad % 256 == 0 else 128
    n_oc = o_pad // o_tile

    # NCHW -> NHWC, spatial zero padding (+ extra bottom rows so padded row
    # tiles stay in bounds), bf16 operands for the MXU.
    hp_needed = (oh_t - 1) * s + kh
    extra_h = max(0, hp_needed - (h + 2 * padding))
    x_nhwc = jnp.transpose(x, (0, 2, 3, 1))
    xp = jnp.pad(x_nhwc, ((0, 0),
                          (padding, padding + extra_h),
                          (padding, padding),
                          (0, 0))).astype(jnp.bfloat16)
    _, hp, wp, _ = xp.shape

    # Weight OIHW -> (KH, KW, C, O_pad), zero-padded channels, bf16.
    w_hwio = jnp.transpose(weight, (2, 3, 1, 0))
    w_hwio = jnp.pad(w_hwio, ((0, 0), (0, 0), (0, 0), (0, o_pad - o)))
    w_hwio = w_hwio.astype(jnp.bfloat16)

    kernel = _make_conv_kernel(kh, kw, row_tile, ow, c, o_tile, s)

    # Explicit scoped-VMEM budget: double-buffered blocks + accumulator,
    # capped at 48 MiB so it also fits under v7x's 64 MiB physical VMEM.
    vmem_need = (2 * hp * wp * c * 2
                 + 2 * kh * kw * c * o_tile * 2
                 + 2 * row_tile * ow * o_tile * 4
                 + row_tile * ow * o_tile * 4)
    vmem_limit = int(min(max(2 * vmem_need, 32 * 1024 * 1024),
                         48 * 1024 * 1024))

    out = pl.pallas_call(
        kernel,
        out_shape=jax.ShapeDtypeStruct((n, oh_t, ow, o_pad), jnp.float32),
        grid_spec=pltpu.PrefetchScalarGridSpec(
            num_scalar_prefetch=0,
            grid=(n, nt, n_oc),
            in_specs=[
                # Whole padded image of batch b: block index depends only on b,
                # so Pallas reuses the VMEM copy across the t / oc grid axes.
                pl.BlockSpec((None, hp, wp, c), lambda b, t, oc: (b, 0, 0, 0)),
                pl.BlockSpec((kh, kw, c, o_tile), lambda b, t, oc: (0, 0, 0, oc)),
            ],
            # Lane-dense NHWC output block (minor dim O_TILE, multiple of 128).
            out_specs=pl.BlockSpec((None, row_tile, ow, o_tile),
                                   lambda b, t, oc: (b, t, 0, oc)),
            scratch_shapes=[pltpu.VMEM((row_tile * ow, o_tile), jnp.float32)],
        ),
        compiler_params=pltpu.CompilerParams(
            dimension_semantics=("parallel", "parallel", "parallel"),
            vmem_limit_bytes=vmem_limit),
    )(xp, w_hwio)

    # Drop row / channel padding; single pass back to NCHW on the small output.
    out = out[:, :oh, :, :o]
    return jnp.transpose(out, (0, 3, 1, 2))


if __name__ == "__main__":
    # BasicConv2d(in_channels=4, out_channels=8, kernel_size=3, padding=1)
    N, C, H, W = 2, 4, 16, 16
    O, KH, KW = 8, 3, 3
    PAD = 1

    key = jax.random.PRNGKey(0)
    kx, kw_ = jax.random.split(key)
    x = jax.random.normal(kx, (N, C, H, W), dtype=jnp.float32)
    # Deterministic weight init (stand-in for nn.Conv2d's kaiming-uniform).
    weight = 0.1 * jax.random.normal(kw_, (O, C, KH, KW), dtype=jnp.float32)

    y = basic_conv2d(x, weight, stride=1, padding=PAD)
    y = jax.block_until_ready(y)

    # Reference: same bf16 operand rounding as the kernel, f32 accumulation.
    xr = x.astype(jnp.bfloat16).astype(jnp.float32)
    wr = weight.astype(jnp.bfloat16).astype(jnp.float32)
    ref = jax.lax.conv_general_dilated(
        xr, wr, window_strides=(1, 1), padding=((PAD, PAD), (PAD, PAD)),
        dimension_numbers=("NCHW", "OIHW", "NCHW"),
        precision=jax.lax.Precision.HIGHEST)
    ref = jnp.where(ref >= 0, ref, 0.01 * ref)

    assert y.shape == (N, O, H, W)
    assert jnp.allclose(y, ref, atol=2e-3, rtol=2e-3), \
        float(jnp.max(jnp.abs(y - ref)))

    print("KERNEL_OK")
</pallas_src>

<mosaic_0001>
module attributes {stable_mosaic.version = 11 : i64} {
  func.func @kernel(%arg0: i32, %arg1: i32, %arg2: i32, %arg3: memref<1x18x18x4xbf16, #tpu.memory_space<vmem>>, %arg4: memref<3x3x4x128xbf16, #tpu.memory_space<vmem>>, %arg5: memref<1x16x16x128xf32, #tpu.memory_space<vmem>>, %arg6: memref<256x128xf32, #tpu.memory_space<vmem>>) attributes {dimension_semantics = [#tpu.dimension_semantics<parallel>, #tpu.dimension_semantics<parallel>, #tpu.dimension_semantics<parallel>], iteration_bounds = array<i64: 2, 1, 1>, scalar_prefetch = 0 : i64, scratch_operands = 1 : i64, tpu.core_type = #tpu.core_type<tc>, window_params = [{transform_indices = @transform_0, window_bounds = array<i64: 1, 18, 18, 4>}, {transform_indices = @transform_1, window_bounds = array<i64: 3, 3, 4, 128>}, {transform_indices = @transform_2, window_bounds = array<i64: 1, 16, 16, 128>}]} {
    %c16_i32 = arith.constant 16 : i32
    %0 = arith.muli %arg1, %c16_i32 : i32
    %1 = tpu.assume_multiple %0, 16 : i32
    %cst = arith.constant 0.000000e+00 : f32
    %2 = vector.broadcast %cst : f32 to vector<256x128xf32>
    %c0 = arith.constant 0 : index
    %c0_0 = arith.constant 0 : index
    %3 = vector.load %arg6[%c0, %c0_0] : memref<256x128xf32, #tpu.memory_space<vmem>>, vector<256x128xf32>
    tpu.vector_store %arg6[%c0, %c0_0], %2 {strides = array<i32>} : memref<256x128xf32, #tpu.memory_space<vmem>>, vector<256x128xf32>,
    %c0_i32 = arith.constant 0 : i32
    %4 = arith.addi %1, %c0_i32 : i32
    %c0_1 = arith.constant 0 : index
    %5 = arith.index_cast %4 : i32 to index
    %c0_2 = arith.constant 0 : index
    %c0_3 = arith.constant 0 : index
    %6 = vector.load %arg3[%c0_1, %5, %c0_2, %c0_3] : memref<1x18x18x4xbf16, #tpu.memory_space<vmem>>, vector<1x16x18x4xbf16>
    %7 = vector.shape_cast %6 : vector<1x16x18x4xbf16> to vector<16x18x4xbf16>
    %8 = vector.extract_strided_slice %7 {offsets = [0, 0, 0], sizes = [16, 16, 4], strides = [1, 1, 1]} : vector<16x18x4xbf16> to vector<16x16x4xbf16>
    %9 = vector.shape_cast %8 : vector<16x16x4xbf16> to vector<256x4xbf16>
    %c0_4 = arith.constant 0 : index
    %c0_5 = arith.constant 0 : index
    %10 = vector.load %arg6[%c0_4, %c0_5] : memref<256x128xf32, #tpu.memory_space<vmem>>, vector<256x128xf32>
    %c0_6 = arith.constant 0 : index
    %c0_7 = arith.constant 0 : index
    %c0_8 = arith.constant 0 : index
    %c0_9 = arith.constant 0 : index
    %11 = vector.load %arg4[%c0_6, %c0_7, %c0_8, %c0_9] : memref<3x3x4x128xbf16, #tpu.memory_space<vmem>>, vector<1x1x4x128xbf16>
    %12 = vector.shape_cast %11 : vector<1x1x4x128xbf16> to vector<4x128xbf16>
    %cst_10 = arith.constant dense<0.000000e+00> : vector<256x128xf32>
    %13 = tpu.matmul %9, %12, %cst_10 {dimension_numbers = #tpu.dot_dimension_numbers<[1], [0], [0], [1], [0, 0, 1, 1], [], []>} : vector<256x4xbf16>, vector<4x128xbf16>, vector<256x128xf32> -> vector<256x128xf32>
    %14 = arith.addf %10, %13 : vector<256x128xf32>
    %c0_11 = arith.constant 0 : index
    %c0_12 = arith.constant 0 : index
    %15 = vector.load %arg6[%c0_11, %c0_12] : memref<256x128xf32, #tpu.memory_space<vmem>>, vector<256x128xf32>
    tpu.vector_store %arg6[%c0_11, %c0_12], %14 {strides = array<i32>} : memref<256x128xf32, #tpu.memory_space<vmem>>, vector<256x128xf32>,
    %16 = vector.extract_strided_slice %7 {offsets = [0, 1, 0], sizes = [16, 16, 4], strides = [1, 1, 1]} : vector<16x18x4xbf16> to vector<16x16x4xbf16>
    %17 = vector.shape_cast %16 : vector<16x16x4xbf16> to vector<256x4xbf16>
    %c0_13 = arith.constant 0 : index
    %c0_14 = arith.constant 0 : index
    %18 = vector.load %arg6[%c0_13, %c0_14] : memref<256x128xf32, #tpu.memory_space<vmem>>, vector<256x128xf32>
    %c0_15 = arith.constant 0 : index
    %c1 = arith.constant 1 : index
    %c0_16 = arith.constant 0 : index
    %c0_17 = arith.constant 0 : index
    %19 = vector.load %arg4[%c0_15, %c1, %c0_16, %c0_17] : memref<3x3x4x128xbf16, #tpu.memory_space<vmem>>, vector<1x1x4x128xbf16>
    %20 = vector.shape_cast %19 : vector<1x1x4x128xbf16> to vector<4x128xbf16>
    %cst_18 = arith.constant dense<0.000000e+00> : vector<256x128xf32>
    %21 = tpu.matmul %17, %20, %cst_18 {dimension_numbers = #tpu.dot_dimension_numbers<[1], [0], [0], [1], [0, 0, 1, 1], [], []>} : vector<256x4xbf16>, vector<4x128xbf16>, vector<256x128xf32> -> vector<256x128xf32>
    %22 = arith.addf %18, %21 : vector<256x128xf32>
    %c0_19 = arith.constant 0 : index
    %c0_20 = arith.constant 0 : index
    %23 = vector.load %arg6[%c0_19, %c0_20] : memref<256x128xf32, #tpu.memory_space<vmem>>, vector<256x128xf32>
    tpu.vector_store %arg6[%c0_19, %c0_20], %22 {strides = array<i32>} : memref<256x128xf32, #tpu.memory_space<vmem>>, vector<256x128xf32>,
    %24 = vector.extract_strided_slice %7 {offsets = [0, 2, 0], sizes = [16, 16, 4], strides = [1, 1, 1]} : vector<16x18x4xbf16> to vector<16x16x4xbf16>
    %25 = vector.shape_cast %24 : vector<16x16x4xbf16> to vector<256x4xbf16>
    %c0_21 = arith.constant 0 : index
    %c0_22 = arith.constant 0 : index
    %26 = vector.load %arg6[%c0_21, %c0_22] : memref<256x128xf32, #tpu.memory_space<vmem>>, vector<256x128xf32>
    %c0_23 = arith.constant 0 : index
    %c2 = arith.constant 2 : index
    %c0_24 = arith.constant 0 : index
    %c0_25 = arith.constant 0 : index
    %27 = vector.load %arg4[%c0_23, %c2, %c0_24, %c0_25] : memref<3x3x4x128xbf16, #tpu.memory_space<vmem>>, vector<1x1x4x128xbf16>
    %28 = vector.shape_cast %27 : vector<1x1x4x128xbf16> to vector<4x128xbf16>
    %cst_26 = arith.constant dense<0.000000e+00> : vector<256x128xf32>
    %29 = tpu.matmul %25, %28, %cst_26 {dimension_numbers = #tpu.dot_dimension_numbers<[1], [0], [0], [1], [0, 0, 1, 1], [], []>} : vector<256x4xbf16>, vector<4x128xbf16>, vector<256x128xf32> -> vector<256x128xf32>
    %30 = arith.addf %26, %29 : vector<256x128xf32>
    %c0_27 = arith.constant 0 : index
    %c0_28 = arith.constant 0 : index
    %31 = vector.load %arg6[%c0_27, %c0_28] : memref<256x128xf32, #tpu.memory_space<vmem>>, vector<256x128xf32>
    tpu.vector_store %arg6[%c0_27, %c0_28], %30 {strides = array<i32>} : memref<256x128xf32, #tpu.memory_space<vmem>>, vector<256x128xf32>,
    %c1_i32 = arith.constant 1 : i32
    %32 = arith.addi %1, %c1_i32 : i32
    %c0_29 = arith.constant 0 : index
    %33 = arith.index_cast %32 : i32 to index
    %c0_30 = arith.constant 0 : index
    %c0_31 = arith.constant 0 : index
    %34 = vector.load %arg3[%c0_29, %33, %c0_30, %c0_31] : memref<1x18x18x4xbf16, #tpu.memory_space<vmem>>, vector<1x16x18x4xbf16>
    %35 = vector.shape_cast %34 : vector<1x16x18x4xbf16> to vector<16x18x4xbf16>
    %36 = vector.extract_strided_slice %35 {offsets = [0, 0, 0], sizes = [16, 16, 4], strides = [1, 1, 1]} : vector<16x18x4xbf16> to vector<16x16x4xbf16>
    %37 = vector.shape_cast %36 : vector<16x16x4xbf16> to vector<256x4xbf16>
    %c0_32 = arith.constant 0 : index
    %c0_33 = arith.constant 0 : index
    %38 = vector.load %arg6[%c0_32, %c0_33] : memref<256x128xf32, #tpu.memory_space<vmem>>, vector<256x128xf32>
    %c1_34 = arith.constant 1 : index
    %c0_35 = arith.constant 0 : index
    %c0_36 = arith.constant 0 : index
    %c0_37 = arith.constant 0 : index
    %39 = vector.load %arg4[%c1_34, %c0_35, %c0_36, %c0_37] : memref<3x3x4x128xbf16, #tpu.memory_space<vmem>>, vector<1x1x4x128xbf16>
    %40 = vector.shape_cast %39 : vector<1x1x4x128xbf16> to vector<4x128xbf16>
    %cst_38 = arith.constant dense<0.000000e+00> : vector<256x128xf32>
    %41 = tpu.matmul %37, %40, %cst_38 {dimension_numbers = #tpu.dot_dimension_numbers<[1], [0], [0], [1], [0, 0, 1, 1], [], []>} : vector<256x4xbf16>, vector<4x128xbf16>, vector<256x128xf32> -> vector<256x128xf32>
    %42 = arith.addf %38, %41 : vector<256x128xf32>
    %c0_39 = arith.constant 0 : index
    %c0_40 = arith.constant 0 : index
    %43 = vector.load %arg6[%c0_39, %c0_40] : memref<256x128xf32, #tpu.memory_space<vmem>>, vector<256x128xf32>
    tpu.vector_store %arg6[%c0_39, %c0_40], %42 {strides = array<i32>} : memref<256x128xf32, #tpu.memory_space<vmem>>, vector<256x128xf32>,
    %44 = vector.extract_strided_slice %35 {offsets = [0, 1, 0], sizes = [16, 16, 4], strides = [1, 1, 1]} : vector<16x18x4xbf16> to vector<16x16x4xbf16>
    %45 = vector.shape_cast %44 : vector<16x16x4xbf16> to vector<256x4xbf16>
    %c0_41 = arith.constant 0 : index
    %c0_42 = arith.constant 0 : index
    %46 = vector.load %arg6[%c0_41, %c0_42] : memref<256x128xf32, #tpu.memory_space<vmem>>, vector<256x128xf32>
    %c1_43 = arith.constant 1 : index
    %c1_44 = arith.constant 1 : index
    %c0_45 = arith.constant 0 : index
    %c0_46 = arith.constant 0 : index
    %47 = vector.load %arg4[%c1_43, %c1_44, %c0_45, %c0_46] : memref<3x3x4x128xbf16, #tpu.memory_space<vmem>>, vector<1x1x4x128xbf16>
    %48 = vector.shape_cast %47 : vector<1x1x4x128xbf16> to vector<4x128xbf16>
    %cst_47 = arith.constant dense<0.000000e+00> : vector<256x128xf32>
    %49 = tpu.matmul %45, %48, %cst_47 {dimension_numbers = #tpu.dot_dimension_numbers<[1], [0], [0], [1], [0, 0, 1, 1], [], []>} : vector<256x4xbf16>, vector<4x128xbf16>, vector<256x128xf32> -> vector<256x128xf32>
    %50 = arith.addf %46, %49 : vector<256x128xf32>
    %c0_48 = arith.constant 0 : index
    %c0_49 = arith.constant 0 : index
    %51 = vector.load %arg6[%c0_48, %c0_49] : memref<256x128xf32, #tpu.memory_space<vmem>>, vector<256x128xf32>
    tpu.vector_store %arg6[%c0_48, %c0_49], %50 {strides = array<i32>} : memref<256x128xf32, #tpu.memory_space<vmem>>, vector<256x128xf32>,
    %52 = vector.extract_strided_slice %35 {offsets = [0, 2, 0], sizes = [16, 16, 4], strides = [1, 1, 1]} : vector<16x18x4xbf16> to vector<16x16x4xbf16>
    %53 = vector.shape_cast %52 : vector<16x16x4xbf16> to vector<256x4xbf16>
    %c0_50 = arith.constant 0 : index
    %c0_51 = arith.constant 0 : index
    %54 = vector.load %arg6[%c0_50, %c0_51] : memref<256x128xf32, #tpu.memory_space<vmem>>, vector<256x128xf32>
    %c1_52 = arith.constant 1 : index
    %c2_53 = arith.constant 2 : index
    %c0_54 = arith.constant 0 : index
    %c0_55 = arith.constant 0 : index
    %55 = vector.load %arg4[%c1_52, %c2_53, %c0_54, %c0_55] : memref<3x3x4x128xbf16, #tpu.memory_space<vmem>>, vector<1x1x4x128xbf16>
    %56 = vector.shape_cast %55 : vector<1x1x4x128xbf16> to vector<4x128xbf16>
    %cst_56 = arith.constant dense<0.000000e+00> : vector<256x128xf32>
    %57 = tpu.matmul %53, %56, %cst_56 {dimension_numbers = #tpu.dot_dimension_numbers<[1], [0], [0], [1], [0, 0, 1, 1], [], []>} : vector<256x4xbf16>, vector<4x128xbf16>, vector<256x128xf32> -> vector<256x128xf32>
    %58 = arith.addf %54, %57 : vector<256x128xf32>
    %c0_57 = arith.constant 0 : index
    %c0_58 = arith.constant 0 : index
    %59 = vector.load %arg6[%c0_57, %c0_58] : memref<256x128xf32, #tpu.memory_space<vmem>>, vector<256x128xf32>
    tpu.vector_store %arg6[%c0_57, %c0_58], %58 {strides = array<i32>} : memref<256x128xf32, #tpu.memory_space<vmem>>, vector<256x128xf32>,
    %c2_i32 = arith.constant 2 : i32
    %60 = arith.addi %1, %c2_i32 : i32
    %c0_59 = arith.constant 0 : index
    %61 = arith.index_cast %60 : i32 to index
    %c0_60 = arith.constant 0 : index
    %c0_61 = arith.constant 0 : index
    %62 = vector.load %arg3[%c0_59, %61, %c0_60, %c0_61] : memref<1x18x18x4xbf16, #tpu.memory_space<vmem>>, vector<1x16x18x4xbf16>
    %63 = vector.shape_cast %62 : vector<1x16x18x4xbf16> to vector<16x18x4xbf16>
    %64 = vector.extract_strided_slice %63 {offsets = [0, 0, 0], sizes = [16, 16, 4], strides = [1, 1, 1]} : vector<16x18x4xbf16> to vector<16x16x4xbf16>
    %65 = vector.shape_cast %64 : vector<16x16x4xbf16> to vector<256x4xbf16>
    %c0_62 = arith.constant 0 : index
    %c0_63 = arith.constant 0 : index
    %66 = vector.load %arg6[%c0_62, %c0_63] : memref<256x128xf32, #tpu.memory_space<vmem>>, vector<256x128xf32>
    %c2_64 = arith.constant 2 : index
    %c0_65 = arith.constant 0 : index
    %c0_66 = arith.constant 0 : index
    %c0_67 = arith.constant 0 : index
    %67 = vector.load %arg4[%c2_64, %c0_65, %c0_66, %c0_67] : memref<3x3x4x128xbf16, #tpu.memory_space<vmem>>, vector<1x1x4x128xbf16>
    %68 = vector.shape_cast %67 : vector<1x1x4x128xbf16> to vector<4x128xbf16>
    %cst_68 = arith.constant dense<0.000000e+00> : vector<256x128xf32>
    %69 = tpu.matmul %65, %68, %cst_68 {dimension_numbers = #tpu.dot_dimension_numbers<[1], [0], [0], [1], [0, 0, 1, 1], [], []>} : vector<256x4xbf16>, vector<4x128xbf16>, vector<256x128xf32> -> vector<256x128xf32>
    %70 = arith.addf %66, %69 : vector<256x128xf32>
    %c0_69 = arith.constant 0 : index
    %c0_70 = arith.constant 0 : index
    %71 = vector.load %arg6[%c0_69, %c0_70] : memref<256x128xf32, #tpu.memory_space<vmem>>, vector<256x128xf32>
    tpu.vector_store %arg6[%c0_69, %c0_70], %70 {strides = array<i32>} : memref<256x128xf32, #tpu.memory_space<vmem>>, vector<256x128xf32>,
    %72 = vector.extract_strided_slice %63 {offsets = [0, 1, 0], sizes = [16, 16, 4], strides = [1, 1, 1]} : vector<16x18x4xbf16> to vector<16x16x4xbf16>
    %73 = vector.shape_cast %72 : vector<16x16x4xbf16> to vector<256x4xbf16>
    %c0_71 = arith.constant 0 : index
    %c0_72 = arith.constant 0 : index
    %74 = vector.load %arg6[%c0_71, %c0_72] : memref<256x128xf32, #tpu.memory_space<vmem>>, vector<256x128xf32>
    %c2_73 = arith.constant 2 : index
    %c1_74 = arith.constant 1 : index
    %c0_75 = arith.constant 0 : index
    %c0_76 = arith.constant 0 : index
    %75 = vector.load %arg4[%c2_73, %c1_74, %c0_75, %c0_76] : memref<3x3x4x128xbf16, #tpu.memory_space<vmem>>, vector<1x1x4x128xbf16>
    %76 = vector.shape_cast %75 : vector<1x1x4x128xbf16> to vector<4x128xbf16>
    %cst_77 = arith.constant dense<0.000000e+00> : vector<256x128xf32>
    %77 = tpu.matmul %73, %76, %cst_77 {dimension_numbers = #tpu.dot_dimension_numbers<[1], [0], [0], [1], [0, 0, 1, 1], [], []>} : vector<256x4xbf16>, vector<4x128xbf16>, vector<256x128xf32> -> vector<256x128xf32>
    %78 = arith.addf %74, %77 : vector<256x128xf32>
    %c0_78 = arith.constant 0 : index
    %c0_79 = arith.constant 0 : index
    %79 = vector.load %arg6[%c0_78, %c0_79] : memref<256x128xf32, #tpu.memory_space<vmem>>, vector<256x128xf32>
    tpu.vector_store %arg6[%c0_78, %c0_79], %78 {strides = array<i32>} : memref<256x128xf32, #tpu.memory_space<vmem>>, vector<256x128xf32>,
    %80 = vector.extract_strided_slice %63 {offsets = [0, 2, 0], sizes = [16, 16, 4], strides = [1, 1, 1]} : vector<16x18x4xbf16> to vector<16x16x4xbf16>
    %81 = vector.shape_cast %80 : vector<16x16x4xbf16> to vector<256x4xbf16>
    %c0_80 = arith.constant 0 : index
    %c0_81 = arith.constant 0 : index
    %82 = vector.load %arg6[%c0_80, %c0_81] : memref<256x128xf32, #tpu.memory_space<vmem>>, vector<256x128xf32>
    %c2_82 = arith.constant 2 : index
    %c2_83 = arith.constant 2 : index
    %c0_84 = arith.constant 0 : index
    %c0_85 = arith.constant 0 : index
    %83 = vector.load %arg4[%c2_82, %c2_83, %c0_84, %c0_85] : memref<3x3x4x128xbf16, #tpu.memory_space<vmem>>, vector<1x1x4x128xbf16>
    %84 = vector.shape_cast %83 : vector<1x1x4x128xbf16> to vector<4x128xbf16>
    %cst_86 = arith.constant dense<0.000000e+00> : vector<256x128xf32>
    %85 = tpu.matmul %81, %84, %cst_86 {dimension_numbers = #tpu.dot_dimension_numbers<[1], [0], [0], [1], [0, 0, 1, 1], [], []>} : vector<256x4xbf16>, vector<4x128xbf16>, vector<256x128xf32> -> vector<256x128xf32>
    %86 = arith.addf %82, %85 : vector<256x128xf32>
    %c0_87 = arith.constant 0 : index
    %c0_88 = arith.constant 0 : index
    %87 = vector.load %arg6[%c0_87, %c0_88] : memref<256x128xf32, #tpu.memory_space<vmem>>, vector<256x128xf32>
    tpu.vector_store %arg6[%c0_87, %c0_88], %86 {strides = array<i32>} : memref<256x128xf32, #tpu.memory_space<vmem>>, vector<256x128xf32>,
    %c0_89 = arith.constant 0 : index
    %c0_90 = arith.constant 0 : index
    %88 = vector.load %arg6[%c0_89, %c0_90] : memref<256x128xf32, #tpu.memory_space<vmem>>, vector<256x128xf32>
    %cst_91 = arith.constant 0.000000e+00 : f32
    %89 = vector.broadcast %cst_91 : f32 to vector<256x128xf32>
    %90 = arith.cmpf oge, %88, %89 : vector<256x128xf32>
    %cst_92 = arith.constant 0.00999999977 : f32
    %91 = vector.broadcast %cst_92 : f32 to vector<256x128xf32>
    %92 = arith.mulf %91, %88 : vector<256x128xf32>
    %93 = arith.select %90, %88, %92 : vector<256x128xi1>, vector<256x128xf32>
    %94 = vector.shape_cast %93 : vector<256x128xf32> to vector<16x16x128xf32>
    %c0_93 = arith.constant 0 : index
    %c0_94 = arith.constant 0 : index
    %c0_95 = arith.constant 0 : index
    %c0_96 = arith.constant 0 : index
    %95 = vector.load %arg5[%c0_93, %c0_94, %c0_95, %c0_96] : memref<1x16x16x128xf32, #tpu.memory_space<vmem>>, vector<1x16x16x128xf32>
    %96 = vector.shape_cast %95 : vector<1x16x16x128xf32> to vector<16x16x128xf32>
    %97 = vector.shape_cast %94 : vector<16x16x128xf32> to vector<1x16x16x128xf32>
    tpu.vector_store %arg5[%c0_93, %c0_94, %c0_95, %c0_96], %97 {strides = array<i32>} : memref<1x16x16x128xf32, #tpu.memory_space<vmem>>, vector<1x16x16x128xf32>,
    return
  }
  func.func @transform_0(%arg0: i32, %arg1: i32, %arg2: i32) -> (i32, i32, i32, i32) {
    %c0_i32 = arith.constant 0 : i32
    %c0_i32_0 = arith.constant 0 : i32
    %c0_i32_1 = arith.constant 0 : i32
    %c0_i32_2 = arith.constant 0 : i32
    return %arg0, %c0_i32, %c0_i32_0, %c0_i32_1 : i32, i32, i32, i32
  }
  func.func @transform_1(%arg0: i32, %arg1: i32, %arg2: i32) -> (i32, i32, i32, i32) {
    %c0_i32 = arith.constant 0 : i32
    %c0_i32_0 = arith.constant 0 : i32
    %c0_i32_1 = arith.constant 0 : i32
    %c0_i32_2 = arith.constant 0 : i32
    return %c0_i32, %c0_i32_0, %c0_i32_1, %arg2 : i32, i32, i32, i32
  }
  func.func @transform_2(%arg0: i32, %arg1: i32, %arg2: i32) -> (i32, i32, i32, i32) {
    %c0_i32 = arith.constant 0 : i32
    %c0_i32_0 = arith.constant 0 : i32
    return %arg0, %arg1, %c0_i32, %arg2 : i32, i32, i32, i32
  }
}

</mosaic_0001>

<bundles_post_ra>
// kernel: tpu_custom_call.1
= control target key start
LH: loop header
LB: loop body
LE: loop exit
PB: predicated region body
PF: predicated region fallthrough
CT: control target
= control target key end

     0   :  { %7 = vsyncpa [#allocation4], 0  ;;  %s9130_s0 = inlined_call_operand.vmem [shape: bf16[2,18,18,4], index: 0, kind: input, shape index: {}]   ;;  %s9131_s1 = inlined_call_operand.vmem [shape: bf16[3,3,4,128], index: 1, kind: input, shape index: {}]   ;;  %s9132_s2 = inlined_call_operand.hbm [shape: f32[2,16,16,128], index: 2, kind: output, shape index: {}]  }
   0x1   :  { %9 = vsyncpa [#allocation4 + $0x1], 0  ;;  %s6998_s9 = smov 0   ;;  %s7000_s10 = smov 0  }
   0x2   :  { %s7002_s11 = smov 0   ;;  %s7004_s12 = smov 0  }
   0x3   :  { %s7006_s13 = smov 0   ;;  %s7008_s14 = smov 0  }
   0x4 LB: > { %s5513_s15 = sadd.s32 4294967295, %s6978_s14   ;;  %s5514_s16 = sadd.s32 4294967294, %s6978_s14   ;;  %s6978_s14 = sphi %s7008_s14, %s15_s14   ;;  %s6974_s13 = sphi %s7006_s13, %s9319_s13   ;;  %s6970_s12 = sphi %s7004_s12, %s9318_s12   ;;  %s6966_s11 = sphi %s7002_s11, %s9317_s11   ;;  %s6962_s10 = sphi %s7000_s10, %s9316_s10   ;;  %s6958_s9 = sphi %s6998_s9, %s9315_s9  }
   0x5   : > { %s34_s17 = sadd.s32 1, %s6974_s13  ;;  %s97_s18 = sadd.s32 1, %s6966_s11 }
   0x6   : > { %p36_p0 = scmp.ge.s32.totalorder %s34_s17, 2  ;;  %p107_p1 = scmp.ne.s32.totalorder %s6966_s11, %s6962_s10 }
   0x7   : > { %p108_p2 = scmp.eq.s32.totalorder %s5513_s15, 1  ;;  %p113_p3 = scmp.ne.s32.totalorder %s6962_s10, %s6958_s9 }
   0x8   : > { %s9321_s17 = smov (%p36_p0, %s34_s17), 0  ;;  %p114_p5 = scmp.eq.s32.totalorder %s5514_s16, 1 }
   0x9   : > { %p7038_p4 = por %p108_p2, %p107_p1  ;;  %s90_s20 = ssub.s32 %s6974_s13, %s9321_s17 }
   0xa   : > { %p5518_p6 = scmp.ge.s32.totalorder %s6978_s14, 1  ;;  %p95_p7 = scmp.eq.s32.totalorder %s90_s20, 0 }
   0xb   : > { %p7045_p8 = por %p114_p5, %p113_p3  ;;  %p147_p9 = scmp.lt.s32.totalorder %s6978_s14, 3 }
   0xc   : > { %s7051_s22 = scalar_select %p95_p7, %s6966_s11, %s97_s18  }
   0xd   : > { %p148_p10 = pnand %p5518_p6, %p147_p9 }
   0xf   : > { %151 = sbr.rel (%p148_p10) target bundleno = 583 (0x247), region = 28 }
  0x16   : > { %v300_v0 = vld [vmem:[%s9131_s1] sm:$0x3]  ;;  %vm430_vm0 = vcmask 1041408   ;;  %p173_p11 = scmp.lt.s32.totalorder %s6970_s12, 1  ;;  %v5716_v2 = vld [vmem:[%s9131_s1 + $0x8] sm:$0x3] }
  0x17   : > { %6684 = vmatprep.subr.msk.bf16.mxu1 %vm430_vm0, %v300_v0  ;;  %v432_v1 = vsel %vm430_vm0, %v300_v0, 0  ;;  %v5553_v3 = vld [vmem:[%s9131_s1 + $0x2] sm:$0x3]  ;;  %6688 = vmatprep.subr.msk.bf16.mxu0 %vm430_vm0, %v5716_v2  ;;  %v7068_v4 = vsel %vm430_vm0, %v5716_v2, 0  ;;  %v5765_v5 = vld [vmem:[%s9131_s1 + $0xa] sm:$0x3] }
  0x18   : > { %6121 = vmatpush3.bf16.msra.mxu1 %v432_v1  ;;  %s174_s29 = scalar_select %p173_p11, %s6970_s12, 1  ;;  %9165 = vst [vmem:[#allocation6_spill] sm:$0xff] %v7068_v4  ;;  %6257 = vmatpush3.bf16.msra.mxu0 %v7068_v4  ;;  %vm381_vm1 = vcmask 31744   ;;  %v1177_v6 = vsel %vm430_vm0, %v5553_v3, 0  ;;  %v7083_v7 = vsel %vm430_vm0, %v5765_v5, 0  ;;  %vm1420_vm5 = vcmask 1042432  }
  0x19   : > { %6685 = vmatprep.subr.msk.bf16.mxu1 %vm430_vm0, %v5553_v3  ;;  %6690 = vmatprep.subr.msk.bf16.mxu0 %vm430_vm0, %v5765_v5  ;;  %v7088_v8 = vld [vmem:[%s9131_s1 + $0xc] sm:$0x3]  ;;  %v5602_v9 = vld [vmem:[%s9131_s1 + $0x4] sm:$0x3]  ;;  %vm659_vm2 = vsmask.f32 3328 }
  0x1a   : > { %s6694_s4 = smul.u32 216, %s174_s29  ;;  %v7116_v21 = vsel %vm430_vm0, %v7088_v8, 0  ;;  %v7132_v31 = vsel %vm430_vm0, %v5602_v9, 0  ;;  %vm660_vm3 = vsmask.f32 7440  ;;  %vm1421_vm6 = vcmask 1046532  }
  0x1b   : > { %vm7213_vm4 = vmor %vm659_vm2, %vm660_vm3  ;;  %s170_s30 = sand.u32 1, %s6962_s10   ;;  %s5966_s5 = sshll.u32 %s6970_s12, 12 }
  0x1c   : > { %s7079_s7 = scalar_lea.vmem %s9130_s0, %s6694_s4  ;;  %vm7435_vm7 = vmor %vm1420_vm5, %vm1421_vm6  ;;  %s5519_s3 = sshll.u32 %s170_s30, 8 }
  0x1d   : > { %v7094_v10 = vld [vmem:[%s7079_s7] sm:$0xf]  ;;  %v7097_v11 = vld [vmem:[%s7079_s7 + $0x4] sm:$0xf]  ;;  %v7100_v12 = vld [vmem:[%s7079_s7 + $0xc] sm:$0xf]  ;;  %s9075_s15 = scalar_lea.hbm %s9132_s2, %s5966_s5 }
  0x1e   : > { %9166 = vst [vmem:[#allocation7_spill] sm:$0xff] %v7094_v10  ;;  %9167 = vst [vmem:[#allocation8_spill] sm:$0xff] %v7097_v11  ;;  %v5521_v13 = vcombine.low %v7094_v10, %v7097_v11  ;;  %v663_v14 = vshrl.u32 %v7094_v10, 16  ;;  %v666_v15 = vshll.u32 %v7094_v10, 16  ;;  %v672_v16 = vshll.u32 %v7097_v11, 16  ;;  %s9033_s4 = scalar_lea.vmem [#allocation3], %s5519_s3 }
  0x1f   : > { %9168 = vst [vmem:[#allocation9_spill] sm:$0xff] %v7100_v12  ;;  %v7108_v17 = vld [vmem:[%s7079_s7 + $0x10] sm:$0xf]  ;;  %v676_v18 = vshrl.u32 %v7097_v11, 16  ;;  %v9134_v19 = vrot.slane %v7097_v11, 5  ;;  %v687_v25 = vshrl.u32 %v7100_v12, 16 }
  0x20   : > { %9169 = vst [vmem:[#allocation10_spill] sm:$0xff] %v7108_v17  ;;  %v5522_v20 = vcombine.low %v7100_v12, %v7108_v17  ;;  %6122 = vmatprep.mubr.msk.bf16.mxu1 %vm381_vm1, %v5521_v13  ;;  %v665_v22 = vrot.slane %v663_v14, 4  ;;  %v668_v23 = vrot.slane %v666_v15, 5  ;;  %v7119_v24 = vrot.slane %v672_v16, 5  ;;  %v7123_v26 = vld [vmem:[%s7079_s7 + $0x18] sm:$0xf] }
  0x21   : > { %v678_v27 = vrot.slane %v676_v18, 4  ;;  %v690_v28 = vshll.u32 %v7100_v12, 16  ;;  %v696_v29 = vshll.u32 %v7108_v17, 16  ;;  %v7129_v30 = vld [vmem:[%s7079_s7 + $0x1c] sm:$0xf]  ;;  %v689_v34 = vrot.slane %v687_v25, 4 }
  0x22   : > { %6123 = vmatmul.mubr.msk.bf16.vlgmr.msra.gmra.mrb[0].mxu1 %vm381_vm1, %v5522_v20  ;;  %v669_v32 = vor.u32 %v668_v23, %v665_v22  ;;  %v700_v35 = vshrl.u32 %v7108_v17, 16  ;;  %v7137_v36 = vld [vmem:[%s7079_s7 + $0x24] sm:$0xf]  ;;  %v9133_v40 = vrot.slane %v7108_v17, 5  ;;  %v7144_v41 = vld [vmem:[%s7079_s7 + $0x28] sm:$0xf]  ;;  %v5523_v45 = vcombine.low %v7123_v26, %v7129_v30 }
  0x23   : > { %6155 = vmatpush3.bf16.msra.mxu1 %v1177_v6  ;;  %v679_v37 = vor.u32 %v678_v27, %v7119_v24  ;;  %v692_v38 = vrot.slane %v690_v28, 5  ;;  %v7140_v39 = vrot.slane %v696_v29, 5  ;;  %v7149_v42 = vrot.slane %v9134_v19, 4  ;;  %v7155_v46 = vld [vmem:[%s7079_s7 + $0xc] sm:$0xf]  ;;  %s5411_s6 = sshll.u32 %s9033_s4, 4  ;;  %s9077_s6 = int_to_ptr.vmem [resolvable:$true] %s5411_s6 }
  0x24   : > { %6686 = vmatprep.subr.msk.bf16.mxu1 %vm430_vm0, %v5602_v9  ;;  %v702_v43 = vrot.slane %v700_v35, 4  ;;  %v7157_v47 = vrot.slane %v669_v32, 4  ;;  %v7163_v51 = vld [vmem:[%s7079_s7 + $0x10] sm:$0xf]  ;;  %v7167_v52 = vrot.slane %v9133_v40, 4  ;;  %6126 = vmatprep.mubr.msk.bf16.mxu1 %vm381_vm1, %v5523_v45  ;;  %v5524_v54 = vcombine.low %v7137_v36, %v7144_v41  ;;  %s9084_s12 = scalar_lea.sflag [#allocation4], %s170_s30 }
  0x25   : > { %9170 = vst [vmem:[#allocation11_spill] sm:$0xff] %v7149_v42  ;;  %v7159_v48 = vrot.slane %v679_v37, 4  ;;  %v693_v49 = vor.u32 %v692_v38, %v689_v34  ;;  %v7174_v55 = vld [vmem:[%s7079_s7 + $0x14] sm:$0x1]  ;;  %v7177_v56 = vld [vmem:[%s7079_s7 + $0x18] sm:$0xf] }
  0x26   : > { %9171 = vst [vmem:[#allocation12_spill] sm:$0xff] %v7167_v52  ;;  %v703_v57 = vor.u32 %v702_v43, %v7140_v39  ;;  %v2336_v60 = vshrl.u32 %v7155_v46, 16  ;;  %v2339_v62 = vshll.u32 %v7155_v46, 16  ;;  %v2345_v63 = vshll.u32 %v7163_v51, 16  ;;  %v7189_v1 = vld [vmem:[%s7079_s7 + $0x1c] sm:$0xf] }
  0x27   : > { %v7183_v61 = vrot.slane %v693_v49, 4  ;;  %v2349_v0 = vshrl.u32 %v7163_v51, 16  ;;  %v2355_v5 = vshll.u32 %v7174_v55, 16  ;;  %v7195_v6 = vld [vmem:[%s7079_s7 + $0x20] sm:$0x1]  ;;  %v2360_v9 = vshrl.u32 %v7177_v56, 16 }
  0x28   : > { %v2338_v3 = vrot.slane %v2336_v60, 4  ;;  %v2341_v13 = vrot.slane %v2339_v62, 5  ;;  %v2347_v14 = vrot.slane %v2345_v63, 5  ;;  %v2363_v16 = vshll.u32 %v7177_v56, 16  ;;  %v7203_v32 = vld [vmem:[%s7079_s7 + $0x30] sm:$0xf] }
  0x29   : > { %v2351_v15 = vrot.slane %v2349_v0, 4  ;;  %v2357_v18 = vrot.slane %v2355_v5, 5  ;;  %v2362_v20 = vrot.slane %v2360_v9, 4  ;;  %v2369_v22 = vshll.u32 %v7189_v1, 16  ;;  %9172 = vst [vmem:[#allocation13_spill] sm:$0xff] %v7203_v32  ;;  %s6900_s16 = scalar_lea.vmem %s9077_s6, 4096 }
  0x2a   : > { %6127 = vmatmul.mubr.msk.bf16.gmra.mrb[4].mxu1 %vm381_vm1, %v5524_v54  ;;  %v2373_v23 = vshrl.u32 %v7189_v1, 16  ;;  %v2342_v25 = vor.u32 %v2341_v13, %v2338_v3  ;;  %v2365_v28 = vrot.slane %v2363_v16, 5  ;;  %v2379_v29 = vshll.u32 %v7195_v6, 16  ;;  %v7206_v34 = vld [vmem:[%s7079_s7 + $0x34] sm:$0xf]  ;;  %p6901_p12 = scmp.ne.s32.totalorder %s9077_s6, %s6900_s16  ;;  %s6980_s18 = smov [#allocation3]  }
  0x2b   : > { %v2352_v27 = vor.u32 %v2351_v15, %v2347_v14  ;;  %9173 = vst [vmem:[#allocation14_spill] sm:$0xff] %v7206_v34  ;;  %v7208_v35 = vrot.slane %v703_v57, 4  ;;  %v2371_v43 = vrot.slane %v2369_v22, 5  ;;  %v7218_v62 = vld [vmem:[%s7079_s7 + $0x3c] sm:$0xf]  ;;  %v5525_v5 = vcombine.low %v7203_v32, %v7206_v34  ;;  %s6904_s20 = sshll.u32 %s6980_s18, 4  ;;  %s6905_s20 = int_to_ptr.vmem [resolvable:$false] %s6904_s20 }
  0x2c   : > { %v2375_v45 = vrot.slane %v2373_v23, 4  ;;  %v2343_v49 = vrot.slane %v2342_v25, 4  ;;  %v2366_v60 = vor.u32 %v2365_v28, %v2362_v20  ;;  %9176 = vst [vmem:[#allocation15_spill] sm:$0xff] %v7218_v62  ;;  %v7221_v63 = vld [vmem:[%s7079_s7 + $0x40] sm:$0xf]  ;;  %v2381_v3 = vrot.slane %v2379_v29, 5  ;;  %p6902_p13 = pnand %p6901_p12, %p7038_p4  ;;  %p6907_p1 = scmp.lt.s32.totalorder %s9077_s6, %s6905_s20 }
  0x2d   : > { %v2353_v54 = vrot.slane %v2352_v27, 4  ;;  %9177 = vst [vmem:[#allocation16_spill] sm:$0xff] %v7221_v63  ;;  %v7227_v9 = vld [vmem:[%s7079_s7 + $0x24] sm:$0xf]  ;;  %v7235_v22 = vld [vmem:[%s7079_s7 + $0x28] sm:$0xf]  ;;  %6130 = vmatprep.mubr.msk.bf16.mxu1 %vm381_vm1, %v5525_v5  ;;  %v5526_v28 = vcombine.low %v7218_v62, %v7221_v63 }
  0x2e   : > { %v2376_v0 = vor.u32 %v2375_v45, %v2371_v43  ;;  %v2348_v13 = vsel %vm7213_vm4, %v2343_v49, %v2347_v14  ;;  %v2367_v16 = vrot.slane %v2366_v60, 4  ;;  %v7242_v14 = vld [vmem:[%s7079_s7 + $0x2c] sm:$0x1]  ;;  %v7245_v29 = vld [vmem:[%s7079_s7 + $0x30] sm:$0xf]  ;;  %v2387_v5 = vshll.u32 %v7227_v9, 16  ;;  %p6903_p0 = pneg %p6902_p13 }
  0x2f   : > { %v2358_v15 = vsel %vm7213_vm4, %v2353_v54, %v2357_v18  ;;  %v2384_v54 = vshrl.u32 %v7227_v9, 16  ;;  %v7253_v60 = vld [vmem:[%s7079_s7 + $0x34] sm:$0xf]  ;;  %v2403_v40 = vshll.u32 %v7242_v14, 16  ;;  %v7268_v33 = vld [vmem:[%s7079_s7 + $0x48] sm:$0xf] }
  0x30   : > { %v5717_v23 = vcombine.low %v2348_v13, %v2358_v15  ;;  %v2377_v25 = vrot.slane %v2376_v0, 4  ;;  %v2372_v18 = vsel %vm7213_vm4, %v2367_v16, %v2371_v43  ;;  %v2393_v43 = vshll.u32 %v7235_v22, 16  ;;  %v7263_v15 = vld [vmem:[%s7079_s7 + $0x38] sm:$0x1]  ;;  %9178 = vst [vmem:[#allocation17_spill] sm:$0xff] %v7268_v33  ;;  %s6906_s23 = scalar_lea.vmem %s6905_s20, 8192 }
  0x31   : > { %v2397_v13 = vshrl.u32 %v7235_v22, 16  ;;  %v2386_v44 = vrot.slane %v2384_v54, 4  ;;  %v2411_v19 = vshll.u32 %v7245_v29, 16  ;;  %v7272_v49 = vld [vmem:[%s7079_s7 + $0x4c] sm:$0xf]  ;;  %v2405_v45 = vrot.slane %v2403_v40, 5  ;;  %p6908_p2 = scmp.lt.s32.totalorder %s6906_s23, %s6900_s16 }
  0x32   : > { %6258 = vmatprep.mubr.msk.bf16.mxu0 %vm381_vm1, %v5717_v23  ;;  %v2382_v0 = vsel %vm7213_vm4, %v2377_v25, %v2381_v3  ;;  %6131 = vmatmul.mubr.msk.bf16.gmra.mrb[8].mxu1 %vm381_vm1, %v5526_v28  ;;  %v2408_v23 = vshrl.u32 %v7245_v29, 16  ;;  %v2389_v3 = vrot.slane %v2387_v5, 5  ;;  %v2395_v25 = vrot.slane %v2393_v43, 5  ;;  %9179 = vst [vmem:[#allocation18_spill] sm:$0xff] %v7272_v49  ;;  %v7283_v59 = vld [vmem:[%s7079_s7 + $0x58] sm:$0xf] }
  0x33   : > { %v5718_v16 = vcombine.low %v2372_v18, %v2382_v0  ;;  %v2399_v28 = vrot.slane %v2397_v13, 4  ;;  %v2417_v54 = vshll.u32 %v7253_v60, 16  ;;  %v2421_v0 = vshrl.u32 %v7253_v60, 16  ;;  %v7280_v13 = vld [vmem:[%s7079_s7 + $0x54] sm:$0xf]  ;;  %9181 = vst [vmem:[#allocation20_spill] sm:$0xff] %v7283_v59  ;;  %p6909_p3 = por %p6908_p2, %p6907_p1 }
  0x34   : > { %v2410_v18 = vrot.slane %v2408_v23, 4  ;;  %v2390_v37 = vor.u32 %v2389_v3, %v2386_v44  ;;  %v2413_v5 = vrot.slane %v2411_v19, 5  ;;  %v2427_v43 = vshll.u32 %v7263_v15, 16  ;;  %9180 = vst [vmem:[#allocation19_spill] sm:$0xff] %v7280_v13  ;;  %v7336_v57 = vld [vmem:[%s7079_s7 + $0x64] sm:$0xf] }
  0x35   : > { %6259 = vmatmul.mubr.msk.bf16.vlgmr.msra.gmra.mrb[0].mxu0 %vm381_vm1, %v5718_v16  ;;  %v2400_v2 = vor.u32 %v2399_v28, %v2395_v25  ;;  %v2419_v16 = vrot.slane %v2417_v54, 5  ;;  %v2423_v23 = vrot.slane %v2421_v0, 4  ;;  %v5527_v58 = vcombine.low %v7268_v33, %v7272_v49  ;;  %v7296_v0 = vld [vmem:[%s7079_s7 + $0x3c] sm:$0xf]  ;;  %v7354_v12 = vld [vmem:[%s7079_s7 + $0x54] sm:$0xf]  ;;  %p6910_p5 = pnand %p6909_p3, %p6903_p0 }
  0x36   : > { %6291 = vmatpush3.bf16.msra.mxu0 %v7083_v7  ;;  %v2391_v19 = vrot.slane %v2390_v37, 4  ;;  %v2414_v3 = vor.u32 %v2413_v5, %v2410_v18  ;;  %v2429_v50 = vrot.slane %v2427_v43, 5  ;;  %v5528_v54 = vcombine.low %v7280_v13, %v7283_v59  ;;  %v7307_v5 = vld [vmem:[%s7079_s7 + $0x44] sm:$0x1]  ;;  %v7316_v7 = vld [vmem:[%s7079_s7 + $0x4c] sm:$0xf] }
  0x37   : > { %6691 = vmatprep.subr.msk.bf16.mxu0 %vm430_vm0, %v7088_v8  ;;  %v2401_v44 = vrot.slane %v2400_v2, 4  ;;  %v2424_v53 = vor.u32 %v2423_v23, %v2419_v16  ;;  %6134 = vmatprep.mubr.msk.bf16.mxu1 %vm381_vm1, %v5527_v58  ;;  %v7299_v8 = vld [vmem:[%s7079_s7 + $0x40] sm:$0xf]  ;;  %v7310_v58 = vld [vmem:[%s7079_s7 + $0x48] sm:$0xf]  ;;  %v2465_v52 = vshll.u32 %v7316_v7, 16 }
  0x38   : > { %v2396_v2 = vsel %vm7213_vm4, %v2391_v19, %v2395_v25  ;;  %v2415_v18 = vrot.slane %v2414_v3, 4  ;;  %v2432_v25 = vshrl.u32 %v7296_v0, 16  ;;  %v2435_v19 = vshll.u32 %v7296_v0, 16  ;;  %v7324_v3 = vld [vmem:[%s7079_s7 + $0x50] sm:$0x1] }
  0x39   : > { %v2406_v37 = vsel %vm7213_vm4, %v2401_v44, %v2405_v45  ;;  %v2425_v23 = vrot.slane %v2424_v53, 4  ;;  %v2441_v44 = vshll.u32 %v7299_v8, 16  ;;  %v7360_v10 = vld [vmem:[%s7079_s7 + $0x58] sm:$0xf] }
  0x3a   : > { %v5719_v43 = vcombine.low %v2396_v2, %v2406_v37  ;;  %6135 = vmatmul.mubr.msk.bf16.gmra.mrb[12].mxu1 %vm381_vm1, %v5528_v54  ;;  %v2420_v45 = vsel %vm7213_vm4, %v2415_v18, %v2419_v16  ;;  %v2445_v54 = vshrl.u32 %v7299_v8, 16  ;;  %v2451_v2 = vshll.u32 %v7307_v5, 16  ;;  %v7333_v16 = vld [vmem:[%s7079_s7 + $0x60] sm:$0xf] }
  0x3b   : > { %v2430_v53 = vsel %vm7213_vm4, %v2425_v23, %v2429_v50  ;;  %v2456_v37 = vshrl.u32 %v7310_v58, 16  ;;  %9182 = vst [vmem:[#allocation21_spill] sm:$0xff] %v7333_v16  ;;  %v2434_v40 = vrot.slane %v2432_v25, 4  ;;  %v2437_v28 = vrot.slane %v2435_v19, 5 }
  0x3c   : > { %6262 = vmatprep.mubr.msk.bf16.mxu0 %vm381_vm1, %v5719_v43  ;;  %v5720_v18 = vcombine.low %v2420_v45, %v2430_v53  ;;  %v2443_v27 = vrot.slane %v2441_v44, 5  ;;  %v2447_v20 = vrot.slane %v2445_v54, 4  ;;  %v2459_v23 = vshll.u32 %v7310_v58, 16  ;;  %v7350_v43 = vld [vmem:[%s7079_s7 + $0x70] sm:$0xf] }
  0x3d   : > { %v2458_v50 = vrot.slane %v2456_v37, 4  ;;  %v2438_v4 = vor.u32 %v2437_v28, %v2434_v40  ;;  %v2469_v45 = vshrl.u32 %v7316_v7, 16  ;;  %v2475_v25 = vshll.u32 %v7324_v3, 16  ;;  %v7347_v37 = vld [vmem:[%s7079_s7 + $0x6c] sm:$0xf] }
  0x3e   : > { %6263 = vmatmul.mubr.msk.bf16.gmra.mrb[4].mxu0 %vm381_vm1, %v5720_v18  ;;  %v2448_v19 = vor.u32 %v2447_v20, %v2443_v27  ;;  %v2453_v44 = vrot.slane %v2451_v2, 5  ;;  %v2461_v53 = vrot.slane %v2459_v23, 5  ;;  %v5529_v54 = vcombine.low %v7333_v16, %v7336_v57  ;;  %v7370_v20 = vld [vmem:[%s7079_s7 + $0x60] sm:$0xf] }
  0x3f   : > { %v2439_v28 = vrot.slane %v2438_v4, 4  ;;  %v2467_v18 = vrot.slane %v2465_v52, 5  ;;  %v2471_v42 = vrot.slane %v2469_v45, 4  ;;  %v2477_v4 = vrot.slane %v2475_v25, 5  ;;  %v7367_v45 = vld [vmem:[%s7079_s7 + $0x5c] sm:$0x1] }
  0x40   : > { %v2449_v23 = vrot.slane %v2448_v19, 4  ;;  %v2462_v17 = vor.u32 %v2461_v53, %v2458_v50  ;;  %6138 = vmatprep.mubr.msk.bf16.mxu1 %vm381_vm1, %v5529_v54  ;;  %v5530_v52 = vcombine.low %v7347_v37, %v7350_v43  ;;  %v2483_v2 = vshll.u32 %v7354_v12, 16 }
  0x41   : > { %v2444_v40 = vsel %vm7213_vm4, %v2439_v28, %v2443_v27  ;;  %v2472_v11 = vor.u32 %v2471_v42, %v2467_v18  ;;  %v7377_v27 = vld [vmem:[%s7079_s7 + $0x64] sm:$0xf]  ;;  %v2480_v28 = vshrl.u32 %v7354_v12, 16  ;;  %v2493_v54 = vshrl.u32 %v7360_v10, 16 }
  0x42   : > { %v2454_v50 = vsel %vm7213_vm4, %v2449_v23, %v2453_v44  ;;  %v2463_v19 = vrot.slane %v2462_v17, 4  ;;  %6139 = vmatmul.mubr.msk.bf16.gmra.mrb[16].mxu1 %vm381_vm1, %v5530_v52  ;;  %v7383_v44 = vld [vmem:[%s7079_s7 + $0x68] sm:$0x1]  ;;  %v2489_v23 = vshll.u32 %v7360_v10, 16  ;;  %v2499_v53 = vshll.u32 %v7367_v45, 16 }
  0x43   : > { %v5721_v42 = vcombine.low %v2444_v40, %v2454_v50  ;;  %v2473_v25 = vrot.slane %v2472_v11, 4  ;;  %v7391_v40 = vld [vmem:[%s7079_s7 + $0x78] sm:$0xf]  ;;  %v2482_v52 = vrot.slane %v2480_v28, 4  ;;  %v2485_v50 = vrot.slane %v2483_v2, 5 }
  0x44   : > { %v2468_v17 = vsel %vm7213_vm4, %v2463_v19, %v2467_v18  ;;  %v2504_v16 = vshrl.u32 %v7370_v20, 16  ;;  %v7398_v18 = vld [vmem:[%s7079_s7 + $0x7c] sm:$0xf]  ;;  %v2491_v59 = vrot.slane %v2489_v23, 5  ;;  %v2495_v13 = vrot.slane %v2493_v54, 4 }
  0x45   : > { %6266 = vmatprep.mubr.msk.bf16.mxu0 %vm381_vm1, %v5721_v42  ;;  %v2478_v11 = vsel %vm7213_vm4, %v2473_v25, %v2477_v4  ;;  %v2501_v49 = vrot.slane %v2499_v53, 5  ;;  %v2486_v33 = vor.u32 %v2485_v50, %v2482_v52  ;;  %v2507_v62 = vshll.u32 %v7370_v20, 16  ;;  %v7411_v54 = vld [vmem:[%s7079_s7 + $0x88] sm:$0xf] }
  0x46   : > { %v5722_v19 = vcombine.low %v2468_v17, %v2478_v11  ;;  %v2506_v63 = vrot.slane %v2504_v16, 4  ;;  %v2513_v42 = vshll.u32 %v7377_v27, 16  ;;  %v2496_v4 = vor.u32 %v2495_v13, %v2491_v59  ;;  %v7408_v17 = vld [vmem:[%s7079_s7 + $0x84] sm:$0xf] }
  0x47   : > { %v2517_v2 = vshrl.u32 %v7377_v27, 16  ;;  %v2523_v25 = vshll.u32 %v7383_v44, 16  ;;  %v5531_v28 = vcombine.low %v7391_v40, %v7398_v18  ;;  %v2487_v53 = vrot.slane %v2486_v33, 4 }
  0x48   : > { %6267 = vmatmul.mubr.msk.bf16.gmra.mrb[8].mxu0 %vm381_vm1, %v5722_v19  ;;  %v2509_v23 = vrot.slane %v2507_v62, 5  ;;  %v2515_v11 = vrot.slane %v2513_v42, 5  ;;  %v2497_v50 = vrot.slane %v2496_v4, 4  ;;  %v5532_v33 = vcombine.low %v7408_v17, %v7411_v54 }
  0x49   : > { %v2519_v19 = vrot.slane %v2517_v2, 4  ;;  %6142 = vmatprep.mubr.msk.bf16.mxu1 %vm381_vm1, %v5531_v28  ;;  %v2492_v32 = vsel %vm7213_vm4, %v2487_v53, %v2491_v59  ;;  %v2525_v52 = vrot.slane %v2523_v25, 5  ;;  %v903_v4 = vshrl.u32 %v7391_v40, 16  ;;  %v7426_v2 = vld [vmem:[%s7079_s7 + $0x90] sm:$0xf] }
  0x4a   : > { %v2510_v16 = vor.u32 %v2509_v23, %v2506_v63  ;;  %v2502_v62 = vsel %vm7213_vm4, %v2497_v50, %v2501_v49  ;;  %v7429_v28 = vld [vmem:[%s7079_s7 + $0x94] sm:$0xf]  ;;  %6143 = vmatmul.mubr.msk.bf16.gmra.mrb[20].mxu1 %vm381_vm1, %v5532_v33  ;;  %v5749_v49 = vrot.slane %v7155_v46, 9  ;;  %v7441_v25 = vld [vmem:[%s7079_s7 + $0x9c] sm:$0xf]  ;;  %v3095_v23 = vrot.slane %v7163_v51, 5 }
  0x4b   : > { %v2520_v42 = vor.u32 %v2519_v19, %v2515_v11  ;;  %v5723_v34 = vcombine.low %v2492_v32, %v2502_v62  ;;  %v5750_v32 = vrot.slane %v7177_v56, 9  ;;  %v7448_v19 = vld [vmem:[%s7079_s7 + $0xa0] sm:$0xf]  ;;  %v5533_v51 = vcombine.low %v7426_v2, %v7429_v28 }
  0x4c   : > { %v2511_v13 = vrot.slane %v2510_v16, 4  ;;  %v9185_v16 = vrot.slane %v7189_v1, 5  ;;  %v5534_v46 = vcombine.low %v7441_v25, %v7448_v19  ;;  %v9186_v62 = vrot.slane %v7174_v55, 5 }
  0x4d   : > { %v2521_v53 = vrot.slane %v2520_v42, 4  ;;  %6270 = vmatprep.mubr.msk.bf16.mxu0 %vm381_vm1, %v5723_v34  ;;  %v930_v42 = vshll.u32 %v7408_v17, 16  ;;  %v3096_v34 = vsel %vm7435_vm7, %v5749_v49, %v3095_v23  ;;  %6146 = vmatprep.mubr.msk.bf16.mxu1 %vm381_vm1, %v5533_v51 }
  0x4e   : > { %v3104_v50 = vrot.slane %v9185_v16, 4  ;;  %v2516_v33 = vsel %vm7213_vm4, %v2511_v13, %v2515_v11  ;;  %v3097_v16 = vrot.slane %v3095_v23, 4  ;;  %v940_v11 = vshrl.u32 %v7411_v54, 16  ;;  %v7484_v13 = vld [vmem:[%s7079_s7 + $0xac] sm:$0xf] }
  0x4f   : > { %v2526_v56 = vsel %vm7213_vm4, %v2521_v53, %v2525_v52  ;;  %v9187_v53 = vrot.slane %v7189_v1, 5  ;;  %v9188_v23 = vrot.slane %v7195_v6, 5  ;;  %v3112_v6 = vrot.slane %v7242_v14, 5  ;;  %v7501_v14 = vld [vmem:[%s7079_s7 + $0xb4] sm:$0xf] }
  0x50   : > { %v5724_v59 = vcombine.low %v2516_v33, %v2526_v56  ;;  %v3099_v52 = vsel %vm7435_vm7, %v3097_v16, %v9186_v62  ;;  %v7481_v56 = vld [vmem:[%s7079_s7 + $0xa8] sm:$0xf]  ;;  %v5751_v62 = vrot.slane %v7227_v9, 9  ;;  %v3116_v16 = vrot.slane %v7253_v60, 5  ;;  %v5668_v1 = vld [vmem:[%s7079_s7 + $0x90] sm:$0xf] }
  0x51   : > { %v3103_v49 = vsel %vm7435_vm7, %v5750_v32, %v9187_v53  ;;  %v3106_v33 = vsel %vm7435_vm7, %v3104_v50, %v9188_v23  ;;  %v5766_v55 = vcombine.low %v3096_v34, %v3099_v52  ;;  %v3109_v32 = vrot.slane %v7235_v22, 5  ;;  %v7507_v52 = vld [vmem:[%s7079_s7 + $0xb8] sm:$0xf] }
  0x52   : > { %6271 = vmatmul.mubr.msk.bf16.gmra.mrb[12].mxu0 %vm381_vm1, %v5724_v59  ;;  %v5752_v50 = vrot.slane %v7245_v29, 9  ;;  %v3119_v53 = vrot.slane %v7263_v15, 5  ;;  %v5767_v23 = vcombine.low %v3103_v49, %v3106_v33  ;;  %6147 = vmatmul.mubr.msk.bf16.gmra.mrb[24].mxu1 %vm381_vm1, %v5534_v46  ;;  %v5535_v22 = vcombine.low %v7481_v56, %v7484_v13 }
  0x53   : > { %6292 = vmatprep.mubr.msk.bf16.mxu0 %vm381_vm1, %v5766_v55  ;;  %v3110_v9 = vsel %vm7435_vm7, %v5751_v62, %v3109_v32  ;;  %v3111_v59 = vrot.slane %v3109_v32, 4  ;;  %v3118_v34 = vrot.slane %v3116_v16, 4  ;;  %v7517_v62 = vld [vmem:[%s7079_s7 + $0x8] sm:$0x1]  ;;  %v5753_v29 = vrot.slane %v7296_v0, 9 }
  0x54   : > { %v3117_v49 = vsel %vm7435_vm7, %v5752_v50, %v3116_v16  ;;  %6150 = vmatprep.mubr.msk.bf16.mxu1 %vm381_vm1, %v5535_v22  ;;  %v5536_v50 = vcombine.low %v7501_v14, %v7507_v52  ;;  %v3123_v16 = vrot.slane %v7299_v8, 5  ;;  %v5754_v22 = vrot.slane %v7310_v58, 9 }
  0x55   : > { %v3113_v46 = vsel %vm7435_vm7, %v3111_v59, %v3112_v6  ;;  %v3120_v15 = vsel %vm7435_vm7, %v3118_v34, %v3119_v53  ;;  %v7524_v6 = vld [vmem:[%s7079_s7 + $0x14] sm:$0x1]  ;;  %v3126_v59 = vrot.slane %v7307_v5, 5  ;;  %v3133_v53 = vrot.slane %v7324_v3, 5 }
  0x56   : > { %v5768_v32 = vcombine.low %v3110_v9, %v3113_v46  ;;  %v5769_v55 = vcombine.low %v3117_v49, %v3120_v15  ;;  %v3130_v9 = vrot.slane %v7316_v7, 5  ;;  %v682_v34 = vshll.u32 %v7517_v62, 16 }
  0x57   : > { %v3124_v0 = vsel %vm7435_vm7, %v5753_v29, %v3123_v16  ;;  %v3125_v46 = vrot.slane %v3123_v16, 4  ;;  %v675_v8 = vsel %vm7213_vm4, %v7157_v47, %v7119_v24  ;;  %v706_v5 = vshll.u32 %v7524_v6, 16  ;;  %v7574_v16 = vld [vmem:[%s7079_s7 + $0x20] sm:$0x1] }
  0x58   : > { %v3132_v7 = vrot.slane %v3130_v9, 4  ;;  %v684_v58 = vrot.slane %v682_v34, 5  ;;  %v699_v3 = vsel %vm7213_vm4, %v7183_v61, %v7140_v39  ;;  %v3137_v29 = vrot.slane %v7360_v10, 5 }
  0x59   : > { %v3127_v24 = vsel %vm7435_vm7, %v3125_v46, %v3126_v59  ;;  %v708_v47 = vrot.slane %v706_v5, 5  ;;  %v3140_v39 = vrot.slane %v7367_v45, 5  ;;  %v5756_v10 = vrot.slane %v7370_v20, 9  ;;  %v7579_v59 = vld [vmem:[%s9131_s1 + $0xe] sm:$0x3] }
  0x5a   : > { %6293 = vmatmul.mubr.msk.bf16.vlgmr.msra.gmra.mrb[0].mxu0 %vm381_vm1, %v5767_v23  ;;  %v5755_v23 = vrot.slane %v7354_v12, 9  ;;  %6151 = vmatmul.mubr.msk.bf16.gmra.mrb[28].mxu1 %vm381_vm1, %v5536_v50  ;;  %v5770_v15 = vcombine.low %v3124_v0, %v3127_v24  ;;  %v7559_v49 = vsel %vm7435_vm7, %v3132_v7, %v3133_v53  ;;  %v685_v12 = vsel %vm7213_vm4, %v7159_v48, %v684_v58 }
  0x5b   : > { %6325 = vmatpush3.bf16.msra.mxu0 %v7116_v21  ;;  %6296 = vmatprep.mubr.msk.bf16.mxu0 %vm381_vm1, %v5768_v32  ;;  %v7554_v21 = vsel %vm7435_vm7, %v5754_v22, %v3130_v9  ;;  %v5554_v61 = vcombine.low %v675_v8, %v685_v12  ;;  %v709_v32 = vsel %vm7213_vm4, %v7208_v35, %v708_v47  ;;  %v3139_v45 = vrot.slane %v3137_v29, 4 }
  0x5c   : > { %v7570_v50 = vsel %vm7435_vm7, %v5755_v23, %v3137_v29  ;;  %v5555_v48 = vcombine.low %v699_v3, %v709_v32  ;;  %v3144_v22 = vrot.slane %v7377_v27, 5  ;;  %v3147_v35 = vrot.slane %v7383_v44, 5  ;;  %6692 = vmatprep.subr.msk.bf16.mxu0 %vm430_vm0, %v7579_v59  ;;  %v7604_v3 = vld [vmem:[%s7079_s7 + $0x2c] sm:$0x1] }
  0x5d   : > { %6156 = vmatprep.mubr.msk.bf16.mxu1 %vm381_vm1, %v5554_v61  ;;  %v9189_v20 = vshrl.u32 %v7123_v26, 16  ;;  %v9190_v53 = vshll.u32 %v7123_v26, 16  ;;  %v720_v0 = vshll.u32 %v7129_v30, 16  ;;  %v9191_v46 = vshrl.u32 %v7129_v30, 16  ;;  %v5661_v61 = vld [vmem:[%s7079_s7 + $0x74] sm:$0x1] }
  0x5e   : > { %v5771_v44 = vcombine.low %v7554_v21, %v7559_v49  ;;  %v3141_v8 = vsel %vm7435_vm7, %v3139_v45, %v3140_v39  ;;  %v3146_v5 = vrot.slane %v3144_v22, 4  ;;  %v730_v7 = vshll.u32 %v7574_v16, 16  ;;  %v5659_v21 = vld [vmem:[%s7079_s7 + $0x6c] sm:$0xf]  ;;  %v5660_v39 = vld [vmem:[%s7079_s7 + $0x70] sm:$0xf] }
  0x5f   : > { %v713_v9 = vrot.slane %v9189_v20, 4  ;;  %v716_v34 = vrot.slane %v9190_v53, 5  ;;  %v726_v27 = vrot.slane %v9191_v46, 4  ;;  %v7601_v26 = vsel %vm7435_vm7, %v5756_v10, %v3144_v22 }
  0x60   : > { %v722_v30 = vrot.slane %v720_v0, 5  ;;  %v9192_v23 = vshrl.u32 %v7137_v36, 16  ;;  %v5772_v47 = vcombine.low %v7570_v50, %v3141_v8  ;;  %v7613_v29 = vsel %vm7435_vm7, %v3146_v5, %v3147_v35  ;;  %v7628_v0 = vld [vmem:[%s7079_s7 + $0x78] sm:$0xf] }
  0x61   : > { %v717_v58 = vor.u32 %v716_v34, %v713_v9  ;;  %v744_v12 = vshll.u32 %v7144_v41, 16  ;;  %v732_v45 = vrot.slane %v730_v7, 5  ;;  %v754_v35 = vshll.u32 %v7604_v3, 16  ;;  %v9204_v7 = vld [vmem:[#allocation16_spill] sm:$0xff] }
  0x62   : > { %6297 = vmatmul.mubr.msk.bf16.gmra.mrb[4].mxu0 %vm381_vm1, %v5769_v55  ;;  %v737_v24 = vrot.slane %v9192_v23, 4  ;;  %v9193_v55 = vshll.u32 %v7137_v36, 16  ;;  %6157 = vmatmul.mubr.msk.bf16.vlgmr.msra.gmra.mrb[0].mxu1 %vm381_vm1, %v5555_v48  ;;  %v727_v10 = vor.u32 %v726_v27, %v722_v30  ;;  %v5757_v9 = vrot.slane %v5659_v21, 9 }
  0x63   : > { %6300 = vmatprep.mubr.msk.bf16.mxu0 %vm381_vm1, %v5770_v15  ;;  %v718_v32 = vrot.slane %v717_v58, 4  ;;  %v9194_v15 = vshrl.u32 %v7144_v41, 16  ;;  %v746_v20 = vrot.slane %v744_v12, 5  ;;  %6189 = vmatpush3.bf16.msra.mxu1 %v7132_v31  ;;  %v3151_v34 = vrot.slane %v5660_v39, 5 }
  0x64   : > { %v740_v49 = vrot.slane %v9193_v55, 5  ;;  %v728_v53 = vrot.slane %v727_v10, 4  ;;  %v3154_v48 = vrot.slane %v5661_v61, 5  ;;  %v756_v41 = vrot.slane %v754_v35, 5  ;;  %v7640_v55 = vld [vmem:[%s7079_s7 + $0x7c] sm:$0xf] }
  0x65   : > { %v750_v50 = vrot.slane %v9194_v15, 4  ;;  %v723_v36 = vsel %vm7213_vm4, %v718_v32, %v722_v30  ;;  %v2552_v8 = vshrl.u32 %v7628_v0, 16  ;;  %v3153_v58 = vrot.slane %v3151_v34, 4  ;;  %v7649_v61 = vld [vmem:[%s7079_s7 + $0x80] sm:$0x1] }
  0x66   : > { %v741_v22 = vor.u32 %v740_v49, %v737_v24  ;;  %v733_v31 = vsel %vm7213_vm4, %v728_v53, %v732_v45  ;;  %v3152_v21 = vsel %vm7435_vm7, %v5757_v9, %v3151_v34  ;;  %v5773_v12 = vcombine.low %v7601_v26, %v7613_v29  ;;  %v7655_v10 = vld [vmem:[%s9131_s1 + $0x6] sm:$0x3]  ;;  %v5666_v49 = vld [vmem:[%s7079_s7 + $0x88] sm:$0xf]  ;;  %v5676_v35 = vld [vmem:[%s7079_s7 + $0xb0] sm:$0x1] }
  0x67   : > { %v751_v27 = vor.u32 %v750_v50, %v746_v20  ;;  %v5556_v30 = vcombine.low %v723_v36, %v733_v31  ;;  %v3155_v39 = vsel %vm7435_vm7, %v3153_v58, %v3154_v48  ;;  %v2555_v32 = vshll.u32 %v7628_v0, 16  ;;  %6687 = vmatprep.subr.msk.bf16.mxu1 %vm430_vm0, %v7655_v10  ;;  %v9196_v36 = vld [vmem:[#allocation13_spill] sm:$0xff]  ;;  %v9199_v31 = vld [vmem:[#allocation14_spill] sm:$0xff] }
  0x68   : > { %v742_v46 = vrot.slane %v741_v22, 4  ;;  %v7661_v26 = vrot.slane %v2552_v8, 4  ;;  %v5758_v45 = vrot.slane %v7628_v0, 9  ;;  %v5774_v50 = vcombine.low %v3152_v21, %v3155_v39 }
  0x69   : > { %v752_v24 = vrot.slane %v751_v27, 4  ;;  %6160 = vmatprep.mubr.msk.bf16.mxu1 %vm381_vm1, %v5556_v30  ;;  %v3161_v9 = vrot.slane %v7649_v61, 5  ;;  %v9197_v53 = vshrl.u32 %v9196_v36, 16  ;;  %v9198_v48 = vshll.u32 %v9196_v36, 16  ;;  %v7679_v27 = vld [vmem:[%s7079_s7 + $0x44] sm:$0x1] }
  0x6a   : > { %v747_v23 = vsel %vm7213_vm4, %v742_v46, %v746_v20  ;;  %6301 = vmatmul.mubr.msk.bf16.gmra.mrb[8].mxu0 %vm381_vm1, %v5771_v44  ;;  %9195 = vst [vmem:[#allocation22_spill] sm:$0xff] %v7661_v26  ;;  %v3158_v20 = vrot.slane %v7640_v55, 5  ;;  %v768_v58 = vshll.u32 %v9199_v31, 16  ;;  %v9200_v30 = vshrl.u32 %v9199_v31, 16  ;;  %v6820_v26 = vld [vmem:[%s7079_s7 + $0x88] sm:$0xf] }
  0x6b   : > { %6304 = vmatprep.mubr.msk.bf16.mxu0 %vm381_vm1, %v5772_v47  ;;  %v757_v44 = vsel %vm7213_vm4, %v752_v24, %v756_v41  ;;  %v7668_v47 = vld [vmem:[%s7079_s7 + $0x38] sm:$0x1]  ;;  %v761_v34 = vrot.slane %v9197_v53, 4  ;;  %v764_v46 = vrot.slane %v9198_v48, 5  ;;  %v5665_v24 = vld [vmem:[%s7079_s7 + $0x84] sm:$0xf] }
  0x6c   : > { %v5557_v15 = vcombine.low %v747_v23, %v757_v44  ;;  %v3159_v41 = vsel %vm7435_vm7, %v5758_v45, %v3158_v20  ;;  %v3160_v8 = vrot.slane %v3158_v20, 4  ;;  %v774_v23 = vrot.slane %v9200_v30, 4  ;;  %v9201_v44 = vld [vmem:[#allocation15_spill] sm:$0xff] }
  0x6d   : > { %v765_v21 = vor.u32 %v764_v46, %v761_v34  ;;  %v778_v39 = vshll.u32 %v7668_v47, 16  ;;  %v9202_v36 = vshrl.u32 %v9201_v44, 16  ;;  %v9203_v48 = vshll.u32 %v9201_v44, 16  ;;  %v5667_v34 = vld [vmem:[%s7079_s7 + $0x8c] sm:$0x1] }
  0x6e   : > { %6161 = vmatmul.mubr.msk.bf16.gmra.mrb[4].mxu1 %vm381_vm1, %v5557_v15  ;;  %v3162_v45 = vsel %vm7435_vm7, %v3160_v8, %v3161_v9  ;;  %v770_v20 = vrot.slane %v768_v58, 5  ;;  %v792_v31 = vshll.u32 %v9204_v7, 16  ;;  %v9205_v30 = vshrl.u32 %v9204_v7, 16  ;;  %v5669_v8 = vld [vmem:[%s7079_s7 + $0x94] sm:$0xf] }
  0x6f   : > { %v785_v53 = vrot.slane %v9202_v36, 4  ;;  %v788_v15 = vrot.slane %v9203_v48, 5  ;;  %v5775_v46 = vcombine.low %v3159_v41, %v3162_v45  ;;  %v766_v60 = vrot.slane %v765_v21, 4 }
  0x70   : > { %v798_v5 = vrot.slane %v9205_v30, 4  ;;  %v780_v33 = vrot.slane %v778_v39, 5  ;;  %v775_v44 = vor.u32 %v774_v23, %v770_v20  ;;  %v794_v48 = vrot.slane %v792_v31, 5  ;;  %v5670_v39 = vld [vmem:[%s7079_s7 + $0x98] sm:$0x1] }
  0x71   : > { %v789_v36 = vor.u32 %v788_v15, %v785_v53  ;;  %v802_v51 = vshll.u32 %v7679_v27, 16  ;;  %v5759_v9 = vrot.slane %v5665_v24, 9  ;;  %v771_v7 = vsel %vm7213_vm4, %v766_v60, %v770_v20 }
  0x72   : > { %6305 = vmatmul.mubr.msk.bf16.gmra.mrb[12].mxu0 %vm381_vm1, %v5773_v12  ;;  %v3165_v58 = vrot.slane %v5666_v49, 5  ;;  %v3168_v21 = vrot.slane %v5667_v34, 5  ;;  %v776_v53 = vrot.slane %v775_v44, 4  ;;  %v799_v15 = vor.u32 %v798_v5, %v794_v48  ;;  %v7715_v49 = vld [vmem:[%s7079_s7 + $0x50] sm:$0x1]  ;;  %v9206_v34 = vld [vmem:[#allocation17_spill] sm:$0xff] }
  0x73   : > { %6308 = vmatprep.mubr.msk.bf16.mxu0 %vm381_vm1, %v5774_v50  ;;  %v790_v41 = vrot.slane %v789_v36, 4  ;;  %v804_v45 = vrot.slane %v802_v51, 5  ;;  %v5760_v12 = vrot.slane %v5668_v1, 9  ;;  %v3172_v50 = vrot.slane %v5669_v8, 5 }
  0x74   : > { %v3166_v24 = vsel %vm7435_vm7, %v5759_v9, %v3165_v58  ;;  %v3167_v31 = vrot.slane %v3165_v58, 4  ;;  %v781_v60 = vsel %vm7213_vm4, %v776_v53, %v780_v33  ;;  %v800_v20 = vrot.slane %v799_v15, 4  ;;  %v9209_v58 = vld [vmem:[#allocation18_spill] sm:$0xff] }
  0x75   : > { %v795_v23 = vsel %vm7213_vm4, %v790_v41, %v794_v48  ;;  %v3175_v30 = vrot.slane %v5670_v39, 5  ;;  %v9207_v5 = vshrl.u32 %v9206_v34, 16  ;;  %v5558_v1 = vcombine.low %v771_v7, %v781_v60 }
  0x76   : > { %v3169_v36 = vsel %vm7435_vm7, %v3167_v31, %v3168_v21  ;;  %v3173_v44 = vsel %vm7435_vm7, %v5760_v12, %v3172_v50  ;;  %v3174_v48 = vrot.slane %v3172_v50, 4  ;;  %v805_v33 = vsel %vm7213_vm4, %v800_v20, %v804_v45  ;;  %v7735_v45 = vld [vmem:[%s7079_s7 + $0x5c] sm:$0x1]  ;;  %v9211_v20 = vld [vmem:[#allocation19_spill] sm:$0xff] }
  0x77   : > { %v809_v51 = vrot.slane %v9207_v5, 4  ;;  %v5776_v9 = vcombine.low %v3166_v24, %v3169_v36  ;;  %v9208_v8 = vshll.u32 %v9206_v34, 16  ;;  %v816_v39 = vshll.u32 %v9209_v58, 16  ;;  %6164 = vmatprep.mubr.msk.bf16.mxu1 %vm381_vm1, %v5558_v1  ;;  %v5671_v24 = vld [vmem:[%s7079_s7 + $0x9c] sm:$0xf] }
  0x78   : > { %v5559_v7 = vcombine.low %v795_v23, %v805_v33  ;;  %v3176_v21 = vsel %vm7435_vm7, %v3174_v48, %v3175_v30  ;;  %v9210_v53 = vshrl.u32 %v9209_v58, 16  ;;  %v826_v12 = vshll.u32 %v7715_v49, 16  ;;  %v5672_v5 = vld [vmem:[%s7079_s7 + $0xa0] sm:$0xf]  ;;  %v5673_v30 = vld [vmem:[%s7079_s7 + $0xa4] sm:$0x1] }
  0x79   : > { %v812_v41 = vrot.slane %v9208_v8, 5  ;;  %v5777_v31 = vcombine.low %v3173_v44, %v3176_v21  ;;  %v818_v60 = vrot.slane %v816_v39, 5  ;;  %v9212_v23 = vshrl.u32 %v9211_v20, 16  ;;  %v9214_v33 = vld [vmem:[#allocation20_spill] sm:$0xff]  ;;  %v5674_v8 = vld [vmem:[%s7079_s7 + $0xa8] sm:$0xf] }
  0x7a   : > { %v822_v15 = vrot.slane %v9210_v53, 4  ;;  %6309 = vmatmul.mubr.msk.bf16.gmra.mrb[16].mxu0 %vm381_vm1, %v5775_v46  ;;  %6165 = vmatmul.mubr.msk.bf16.gmra.mrb[8].mxu1 %vm381_vm1, %v5559_v7  ;;  %v828_v1 = vrot.slane %v826_v12, 5  ;;  %v9213_v36 = vshll.u32 %v9211_v20, 16  ;;  %v840_v46 = vshll.u32 %v9214_v33, 16  ;;  %v5675_v53 = vld [vmem:[%s7079_s7 + $0xac] sm:$0xf] }
  0x7b   : > { %v813_v50 = vor.u32 %v812_v41, %v809_v51  ;;  %v833_v34 = vrot.slane %v9212_v23, 4  ;;  %6312 = vmatprep.mubr.msk.bf16.mxu0 %vm381_vm1, %v5776_v9  ;;  %v9215_v51 = vshrl.u32 %v9214_v33, 16  ;;  %v850_v39 = vshll.u32 %v7735_v45, 16 }
  0x7c   : > { %v836_v48 = vrot.slane %v9213_v36, 5  ;;  %v823_v58 = vor.u32 %v822_v15, %v818_v60  ;;  %v5761_v21 = vrot.slane %v5671_v24, 9  ;;  %v842_v23 = vrot.slane %v840_v46, 5 }
  0x7d   : > { %v846_v44 = vrot.slane %v9215_v51, 4  ;;  %v814_v41 = vrot.slane %v813_v50, 4  ;;  %v3179_v9 = vrot.slane %v5672_v5, 5  ;;  %v3182_v12 = vrot.slane %v5673_v30, 5  ;;  %v7761_v5 = vld [vmem:[%s7079_s7 + $0x68] sm:$0x1] }
  0x7e   : > { %v837_v7 = vor.u32 %v836_v48, %v833_v34  ;;  %v824_v36 = vrot.slane %v823_v58, 4  ;;  %v852_v22 = vrot.slane %v850_v39, 5  ;;  %v5762_v33 = vrot.slane %v5674_v8, 9  ;;  %v9216_v30 = vld [vmem:[#allocation21_spill] sm:$0xff] }
  0x7f   : > { %v819_v20 = vsel %vm7213_vm4, %v814_v41, %v818_v60  ;;  %v847_v29 = vor.u32 %v846_v44, %v842_v23  ;;  %v3180_v15 = vsel %vm7435_vm7, %v5761_v21, %v3179_v9  ;;  %v3181_v50 = vrot.slane %v3179_v9, 4 }
  0x80   : > { %v838_v51 = vrot.slane %v837_v7, 4  ;;  %v829_v24 = vsel %vm7213_vm4, %v824_v36, %v828_v1  ;;  %v3186_v34 = vrot.slane %v5675_v53, 5  ;;  %v3189_v48 = vrot.slane %v5676_v35, 5 }
  0x81   : > { %v9217_v46 = vshrl.u32 %v9216_v30, 16  ;;  %v5560_v41 = vcombine.low %v819_v20, %v829_v24  ;;  %v848_v44 = vrot.slane %v847_v29, 4  ;;  %v3183_v58 = vsel %vm7435_vm7, %v3181_v50, %v3182_v12  ;;  %v7782_v12 = vld [vmem:[%s7079_s7 + $0x74] sm:$0x1]  ;;  %v5678_v50 = vld [vmem:[%s7079_s7 + $0xb8] sm:$0xf] }
  0x82   : > { %v843_v8 = vsel %vm7213_vm4, %v838_v51, %v842_v23  ;;  %6313 = vmatmul.mubr.msk.bf16.gmra.mrb[20].mxu0 %vm381_vm1, %v5777_v31  ;;  %v5778_v1 = vcombine.low %v3180_v15, %v3183_v58  ;;  %v3187_v35 = vsel %vm7435_vm7, %v5762_v33, %v3186_v34  ;;  %v3188_v39 = vrot.slane %v3186_v34, 4  ;;  %v5677_v15 = vld [vmem:[%s7079_s7 + $0xb4] sm:$0xf] }
  0x83   : > { %v857_v60 = vrot.slane %v9217_v46, 4  ;;  %v9218_v21 = vshll.u32 %v9216_v30, 16  ;;  %6168 = vmatprep.mubr.msk.bf16.mxu1 %vm381_vm1, %v5560_v41  ;;  %v853_v29 = vsel %vm7213_vm4, %v848_v44, %v852_v22  ;;  %v864_v7 = vshll.u32 %v7336_v57, 16  ;;  %v5679_v41 = vld [vmem:[%s7079_s7 + $0xbc] sm:$0x1] }
  0x84   : > { %v9219_v31 = vshrl.u32 %v7336_v57, 16  ;;  %v874_v9 = vshll.u32 %v7761_v5, 16  ;;  %v5561_v20 = vcombine.low %v843_v8, %v853_v29  ;;  %6316 = vmatprep.mubr.msk.bf16.mxu0 %vm381_vm1, %v5778_v1  ;;  %v3190_v36 = vsel %vm7435_vm7, %v3188_v39, %v3189_v48  ;;  %v5680_v1 = vld [vmem:[%s7079_s7 + $0xc0] sm:$0xf]  ;;  %v5681_v29 = vld [vmem:[%s7079_s7 + $0xc4] sm:$0xf] }
  0x85   : > { %v860_v53 = vrot.slane %v9218_v21, 5  ;;  %v9220_v22 = vshrl.u32 %v7347_v37, 16  ;;  %v5779_v57 = vcombine.low %v3187_v35, %v3190_v36  ;;  %v866_v24 = vrot.slane %v864_v7, 5  ;;  %v5682_v7 = vld [vmem:[%s7079_s7 + $0xc8] sm:$0x1] }
  0x86   : > { %v870_v23 = vrot.slane %v9219_v31, 4  ;;  %v876_v34 = vrot.slane %v874_v9, 5  ;;  %v9221_v30 = vshll.u32 %v7347_v37, 16  ;;  %6169 = vmatmul.mubr.msk.bf16.gmra.mrb[12].mxu1 %vm381_vm1, %v5561_v20  ;;  %v888_v48 = vshll.u32 %v7350_v43, 16 }
  0x87   : > { %v861_v33 = vor.u32 %v860_v53, %v857_v60  ;;  %v881_v51 = vrot.slane %v9220_v22, 4  ;;  %v9222_v60 = vshrl.u32 %v7350_v43, 16  ;;  %v898_v58 = vshll.u32 %v7782_v12, 16 }
  0x88   : > { %v884_v46 = vrot.slane %v9221_v30, 5  ;;  %v871_v39 = vor.u32 %v870_v23, %v866_v24  ;;  %v5763_v21 = vrot.slane %v5677_v15, 9  ;;  %v3193_v53 = vrot.slane %v5678_v50, 5 }
  0x89   : > { %v862_v8 = vrot.slane %v861_v33, 4  ;;  %v894_v44 = vrot.slane %v9222_v60, 4  ;;  %v890_v31 = vrot.slane %v888_v48, 5  ;;  %v900_v9 = vrot.slane %v898_v58, 5 }
  0x8a   : > { %v885_v35 = vor.u32 %v884_v46, %v881_v51  ;;  %v3196_v20 = vrot.slane %v5679_v41, 5  ;;  %v872_v36 = vrot.slane %v871_v39, 4  ;;  %v3194_v43 = vsel %vm7435_vm7, %v5763_v21, %v3193_v53  ;;  %6317 = vmatmul.mubr.msk.bf16.gmra.mrb[24].mxu0 %vm381_vm1, %v5779_v57  ;;  %v7814_v41 = vld [vmem:[%s7079_s7 + $0x80] sm:$0x1] }
  0x8b   : > { %v867_v37 = vsel %vm7213_vm4, %v862_v8, %v866_v24  ;;  %v3195_v22 = vrot.slane %v3193_v53, 4  ;;  %v895_v23 = vor.u32 %v894_v44, %v890_v31  ;;  %v5764_v51 = vrot.slane %v5680_v1, 9 }
  0x8c   : > { %v886_v33 = vrot.slane %v885_v35, 4  ;;  %v3200_v15 = vrot.slane %v5681_v29, 5  ;;  %v3203_v50 = vrot.slane %v5682_v7, 5  ;;  %v877_v30 = vsel %vm7213_vm4, %v872_v36, %v876_v34  ;;  %v7831_v29 = vld [vmem:[%s7079_s7 + $0x8c] sm:$0x1] }
  0x8d   : > { %v3197_v46 = vsel %vm7435_vm7, %v3195_v22, %v3196_v20  ;;  %v905_v8 = vrot.slane %v903_v4, 4  ;;  %v5562_v57 = vcombine.low %v867_v37, %v877_v30  ;;  %v896_v48 = vrot.slane %v895_v23, 4  ;;  %v7851_v30 = vld [vmem:[%s7079_s7 + $0x24] sm:$0xf] }
  0x8e   : > { %v891_v24 = vsel %vm7213_vm4, %v886_v33, %v890_v31  ;;  %v5780_v60 = vcombine.low %v3194_v43, %v3197_v46  ;;  %v3201_v44 = vsel %vm7435_vm7, %v5764_v51, %v3200_v15  ;;  %v3202_v34 = vrot.slane %v3200_v15, 4  ;;  %v7843_v33 = vld [vmem:[%s7079_s7 + $0x1c] sm:$0xf] }
  0x8f   : > { %v9223_v58 = vshll.u32 %v7391_v40, 16  ;;  %v912_v39 = vshll.u32 %v7398_v18, 16  ;;  %v9224_v35 = vshrl.u32 %v7398_v18, 16  ;;  %6172 = vmatprep.mubr.msk.bf16.mxu1 %vm381_vm1, %v5562_v57  ;;  %v901_v4 = vsel %vm7213_vm4, %v896_v48, %v900_v9  ;;  %v7840_v9 = vld [vmem:[%s7079_s7 + $0x18] sm:$0xf] }
  0x90   : > { %6320 = vmatprep.mubr.msk.bf16.mxu0 %vm381_vm1, %v5780_v60  ;;  %v922_v53 = vshll.u32 %v7814_v41, 16  ;;  %v9225_v40 = vshrl.u32 %v7408_v17, 16  ;;  %v932_v37 = vrot.slane %v930_v42, 5  ;;  %v5563_v18 = vcombine.low %v891_v24, %v901_v4  ;;  %v7861_v48 = vld [vmem:[%s7079_s7 + $0x28] sm:$0xf] }
  0x91   : > { %v908_v1 = vrot.slane %v9223_v58, 5  ;;  %v918_v21 = vrot.slane %v9224_v35, 4  ;;  %v3204_v31 = vsel %vm7435_vm7, %v3202_v34, %v3203_v50  ;;  %v914_v36 = vrot.slane %v912_v39, 5 }
  0x92   : > { %v929_v7 = vrot.slane %v9225_v40, 4  ;;  %v5781_v43 = vcombine.low %v3201_v44, %v3204_v31  ;;  %v924_v22 = vrot.slane %v922_v53, 5  ;;  %v936_v51 = vshll.u32 %v7411_v54, 16  ;;  %6173 = vmatmul.mubr.msk.bf16.gmra.mrb[16].mxu1 %vm381_vm1, %v5563_v18 }
  0x93   : > { %v909_v20 = vor.u32 %v908_v1, %v905_v8  ;;  %v919_v42 = vor.u32 %v918_v21, %v914_v36  ;;  %v942_v15 = vrot.slane %v940_v11, 4  ;;  %v946_v50 = vshll.u32 %v7831_v29, 16  ;;  %v7880_v21 = vld [vmem:[%s7079_s7 + $0x98] sm:$0x1] }
  0x94   : > { %v933_v23 = vor.u32 %v932_v37, %v929_v7  ;;  %v7855_v24 = vrot.slane %v2555_v32, 5  ;;  %6321 = vmatmul.mubr.msk.bf16.gmra.mrb[28].mxu0 %vm381_vm1, %v5781_v43  ;;  %v938_v8 = vrot.slane %v936_v51, 5  ;;  %v5847_v57 = vcombine.low %v7840_v9, %v7843_v33 }
  0x95   : > { %v910_v17 = vrot.slane %v909_v20, 4  ;;  %v9227_v54 = vshll.u32 %v7640_v55, 16  ;;  %v9229_v60 = vshrl.u32 %v7640_v55, 16  ;;  %v920_v32 = vrot.slane %v919_v42, 4  ;;  %v7894_v20 = vld [vmem:[%s7079_s7 + $0xa4] sm:$0x1] }
  0x96   : > { %9226 = vst [vmem:[#allocation13_spill] sm:$0xff] %v7855_v24  ;;  %v934_v46 = vrot.slane %v933_v23, 4  ;;  %v9231_v34 = vshll.u32 %v7649_v61, 16  ;;  %v943_v1 = vor.u32 %v942_v15, %v938_v8  ;;  %v948_v39 = vrot.slane %v946_v50, 5  ;;  %6326 = vmatprep.mubr.msk.bf16.mxu0 %vm381_vm1, %v5847_v57  ;;  %v7903_v42 = vld [vmem:[%s7079_s7 + $0x30] sm:$0xf] }
  0x97   : > { %v7865_v11 = vrot.slane %v9227_v54, 5  ;;  %v7869_v44 = vrot.slane %v9229_v60, 4  ;;  %v915_v0 = vsel %vm7213_vm4, %v910_v17, %v914_v36  ;;  %v925_v55 = vsel %vm7213_vm4, %v920_v32, %v924_v22  ;;  %v7914_v57 = vld [vmem:[%s7079_s7 + $0x34] sm:$0xf]  ;;  %v7920_v32 = vld [vmem:[%s9131_s1 + $0x10] sm:$0x3] }
  0x98   : > { %v7875_v58 = vrot.slane %v9231_v34, 5  ;;  %v939_v4 = vsel %vm7213_vm4, %v934_v46, %v938_v8  ;;  %v5848_v61 = vcombine.low %v7851_v30, %v7861_v48  ;;  %v5564_v40 = vcombine.low %v915_v0, %v925_v55  ;;  %v6812_v54 = vld [vmem:[%s7079_s7 + $0x58] sm:$0xf]  ;;  %v8216_v24 = vld [vmem:[%s7079_s7 + $0xd0] sm:$0xf] }
  0x99   : > { %9228 = vst [vmem:[#allocation14_spill] sm:$0xff] %v7865_v11  ;;  %9230 = vst [vmem:[#allocation15_spill] sm:$0xff] %v7869_v44  ;;  %v944_v7 = vrot.slane %v943_v1, 4  ;;  %v4520_v37 = vsel %vm430_vm0, %v7579_v59, 0  ;;  %v9233_v18 = vshrl.u32 %v7426_v2, 16  ;;  %v9234_v36 = vshll.u32 %v7426_v2, 16 }
  0x9a   : > { %9232 = vst [vmem:[#allocation16_spill] sm:$0xff] %v7875_v58  ;;  %v960_v22 = vshll.u32 %v7429_v28, 16  ;;  %v9235_v23 = vshrl.u32 %v7429_v28, 16  ;;  %v970_v17 = vshll.u32 %v7880_v21, 16  ;;  %6176 = vmatprep.mubr.msk.bf16.mxu1 %vm381_vm1, %v5564_v40  ;;  %v9236_v15 = vshrl.u32 %v7441_v25, 16 }
  0x9b   : > { %v953_v31 = vrot.slane %v9233_v18, 4  ;;  %v956_v43 = vrot.slane %v9234_v36, 5  ;;  %v949_v59 = vsel %vm7213_vm4, %v944_v7, %v948_v39  ;;  %v9237_v2 = vshll.u32 %v7441_v25, 16  ;;  %v8172_v44 = vld [vmem:[%s7079_s7 + $0xb8] sm:$0xf] }
  0x9c   : > { %v966_v51 = vrot.slane %v9235_v23, 4  ;;  %v977_v50 = vrot.slane %v9236_v15, 4  ;;  %v984_v8 = vshll.u32 %v7448_v19, 16  ;;  %v5565_v28 = vcombine.low %v939_v4, %v949_v59  ;;  %6327 = vmatmul.mubr.msk.bf16.vlgmr.msra.gmra.mrb[0].mxu0 %vm381_vm1, %v5848_v61  ;;  %v7933_v61 = vld [vmem:[%s7079_s7 + $0x40] sm:$0xf] }
  0x9d   : > { %v980_v46 = vrot.slane %v9237_v2, 5  ;;  %v957_v60 = vor.u32 %v956_v43, %v953_v31  ;;  %v962_v0 = vrot.slane %v960_v22, 5  ;;  %v9238_v1 = vshrl.u32 %v7448_v19, 16  ;;  %6359 = vmatpush3.bf16.msra.mxu0 %v4520_v37  ;;  %v7930_v31 = vld [vmem:[%s7079_s7 + $0x3c] sm:$0xf] }
  0x9e   : > { %v986_v34 = vrot.slane %v984_v8, 5  ;;  %v994_v55 = vshll.u32 %v7894_v20, 16  ;;  %6177 = vmatmul.mubr.msk.bf16.gmra.mrb[20].mxu1 %vm381_vm1, %v5565_v28  ;;  %v972_v7 = vrot.slane %v970_v17, 5  ;;  %v5849_v18 = vcombine.low %v7903_v42, %v7914_v57  ;;  %6693 = vmatprep.subr.msk.bf16.mxu0 %vm430_vm0, %v7920_v32 }
  0x9f   : > { %v981_v25 = vor.u32 %v980_v46, %v977_v50  ;;  %v990_v39 = vrot.slane %v9238_v1, 4  ;;  %v958_v4 = vrot.slane %v957_v60, 4  ;;  %v967_v40 = vor.u32 %v966_v51, %v962_v0  ;;  %v7949_v46 = vld [vmem:[%s7079_s7 + $0xb0] sm:$0x1] }
  0xa0   : > { %v996_v22 = vrot.slane %v994_v55, 5  ;;  %6330 = vmatprep.mubr.msk.bf16.mxu0 %vm381_vm1, %v5849_v18  ;;  %v5850_v2 = vcombine.low %v7930_v31, %v7933_v61  ;;  %v9239_v60 = vshrl.u32 %v7481_v56, 16  ;;  %v7967_v18 = vld [vmem:[%s7079_s7 + $0x48] sm:$0xf]  ;;  %v1474_v53 = vrot.slane %v6812_v54, 5 }
  0xa1   : > { %v982_v19 = vrot.slane %v981_v25, 4  ;;  %v991_v43 = vor.u32 %v990_v39, %v986_v34  ;;  %v963_v51 = vsel %vm7213_vm4, %v958_v4, %v962_v0  ;;  %v968_v17 = vrot.slane %v967_v40, 4 }
  0xa2   : > { %v1001_v0 = vrot.slane %v9239_v60, 4  ;;  %v9240_v25 = vshll.u32 %v7481_v56, 16  ;;  %v1008_v4 = vshll.u32 %v7484_v13, 16  ;;  %v9241_v40 = vshrl.u32 %v7484_v13, 16 }
  0xa3   : > { %v987_v59 = vsel %vm7213_vm4, %v982_v19, %v986_v34  ;;  %v992_v15 = vrot.slane %v991_v43, 4  ;;  %v973_v8 = vsel %vm7213_vm4, %v968_v17, %v972_v7  ;;  %v7959_v34 = vld [vmem:[%s7079_s7 + $0xbc] sm:$0x1]  ;;  %v7970_v19 = vld [vmem:[%s7079_s7 + $0x4c] sm:$0xf]  ;;  %v1018_v17 = vshll.u32 %v7949_v46, 16 }
  0xa4   : > { %v1004_v1 = vrot.slane %v9240_v25, 5  ;;  %v5566_v39 = vcombine.low %v963_v51, %v973_v8  ;;  %v1014_v7 = vrot.slane %v9241_v40, 4  ;;  %v9242_v51 = vshrl.u32 %v7501_v14, 16  ;;  %6331 = vmatmul.mubr.msk.bf16.gmra.mrb[4].mxu0 %vm381_vm1, %v5850_v2 }
  0xa5   : > { %v997_v55 = vsel %vm7213_vm4, %v992_v15, %v996_v22  ;;  %v1010_v22 = vrot.slane %v1008_v4, 5  ;;  %v9243_v13 = vshll.u32 %v7501_v14, 16  ;;  %v1032_v60 = vshll.u32 %v7507_v52, 16  ;;  %v7991_v14 = vld [vmem:[%s7079_s7 + $0x58] sm:$0xf] }
  0xa6   : > { %v5567_v43 = vcombine.low %v987_v59, %v997_v55  ;;  %v1005_v56 = vor.u32 %v1004_v1, %v1001_v0  ;;  %v1025_v8 = vrot.slane %v9242_v51, 4  ;;  %6180 = vmatprep.mubr.msk.bf16.mxu1 %vm381_vm1, %v5566_v39  ;;  %v9244_v25 = vshrl.u32 %v7507_v52, 16  ;;  %v7983_v55 = vld [vmem:[%s7079_s7 + $0x54] sm:$0xf] }
  0xa7   : > { %v1028_v15 = vrot.slane %v9243_v13, 5  ;;  %v1042_v39 = vshll.u32 %v7959_v34, 16  ;;  %v5851_v2 = vcombine.low %v7967_v18, %v7970_v19  ;;  %v1015_v4 = vor.u32 %v1014_v7, %v1010_v22  ;;  %v8001_v7 = vld [vmem:[%s7079_s7 + $0x60] sm:$0xf] }
  0xa8   : > { %v1038_v59 = vrot.slane %v9244_v25, 4  ;;  %6181 = vmatmul.mubr.msk.bf16.gmra.mrb[24].mxu1 %vm381_vm1, %v5567_v43  ;;  %v1006_v1 = vrot.slane %v1005_v56, 4  ;;  %v1020_v40 = vrot.slane %v1018_v17, 5  ;;  %v1034_v51 = vrot.slane %v1032_v60, 5  ;;  %v8004_v17 = vld [vmem:[%s7079_s7 + $0x64] sm:$0xf] }
  0xa9   : > { %v1029_v52 = vor.u32 %v1028_v15, %v1025_v8  ;;  %v1044_v25 = vrot.slane %v1042_v39, 5  ;;  %6334 = vmatprep.mubr.msk.bf16.mxu0 %vm381_vm1, %v5851_v2  ;;  %v1016_v0 = vrot.slane %v1015_v4, 4  ;;  %v5852_v23 = vcombine.low %v7983_v55, %v7991_v14  ;;  %v9245_v60 = vld [vmem:[#allocation8_spill] sm:$0xff]  ;;  %v9247_v39 = vld [vmem:[#allocation7_spill] sm:$0xff]  ;;  %v9249_v13 = vld [vmem:[#allocation10_spill] sm:$0xff] }
  0xaa   : > { %v1011_v56 = vsel %vm7213_vm4, %v1006_v1, %v1010_v22  ;;  %v1039_v50 = vor.u32 %v1038_v59, %v1034_v51  ;;  %v9246_v1 = vrot.slane %v9245_v60, 5  ;;  %v9248_v2 = vrot.slane %v9247_v39, 9  ;;  %v9251_v22 = vld [vmem:[#allocation9_spill] sm:$0xff] }
  0xab   : > { %v1030_v28 = vrot.slane %v1029_v52, 4  ;;  %v1021_v4 = vsel %vm7213_vm4, %v1016_v0, %v1020_v40  ;;  %v1428_v8 = vrot.slane %v7517_v62, 5  ;;  %v9250_v37 = vrot.slane %v9249_v13, 5  ;;  %v9253_v40 = vld [vmem:[#allocation11_spill] sm:$0xff] }
  0xac   : > { %v1426_v59 = vsel %vm7435_vm7, %v9248_v2, %v9246_v1  ;;  %v1040_v43 = vrot.slane %v1039_v50, 4  ;;  %v5568_v15 = vcombine.low %v1011_v56, %v1021_v4  ;;  %v9252_v36 = vrot.slane %v9251_v22, 9  ;;  %6335 = vmatmul.mubr.msk.bf16.gmra.mrb[8].mxu0 %vm381_vm1, %v5852_v23  ;;  %v8049_v56 = vld [vmem:[%s7079_s7 + $0x70] sm:$0xf]  ;;  %v8059_v2 = vld [vmem:[%s7079_s7 + $0x7c] sm:$0xf] }
  0xad   : > { %v1035_v52 = vsel %vm7213_vm4, %v1030_v28, %v1034_v51  ;;  %v1435_v1 = vrot.slane %v7524_v6, 5  ;;  %v5853_v0 = vcombine.low %v8001_v7, %v8004_v17  ;;  %v6800_v4 = vld [vmem:[%s7079_s7 + $0x18] sm:$0xf]  ;;  %v6807_v22 = vld [vmem:[%s7079_s7 + $0x40] sm:$0xf]  ;;  %v1463_v28 = vrot.slane %v7679_v27, 5 }
  0xae   : > { %v8026_v60 = vsel %vm7435_vm7, %v9252_v36, %v9250_v37  ;;  %v1045_v50 = vsel %vm7213_vm4, %v1040_v43, %v1044_v25  ;;  %v1429_v36 = vsel %vm7435_vm7, %v9253_v40, %v1428_v8  ;;  %v8040_v37 = vld [vmem:[%s7079_s7 + $0x6c] sm:$0xf]  ;;  %6184 = vmatprep.mubr.msk.bf16.mxu1 %vm381_vm1, %v5568_v15  ;;  %v9254_v43 = vld [vmem:[#allocation12_spill] sm:$0xff]  ;;  %v8052_v25 = vld [vmem:[%s7079_s7 + $0x78] sm:$0xf]  ;;  %v1460_v51 = vrot.slane %v6807_v22, 5 }
  0xaf   : > { %v5569_v6 = vcombine.low %v1035_v52, %v1045_v50  ;;  %v5603_v13 = vcombine.low %v1426_v59, %v1429_v36  ;;  %v1436_v23 = vsel %vm7435_vm7, %v9254_v43, %v1435_v1  ;;  %6338 = vmatprep.mubr.msk.bf16.mxu0 %vm381_vm1, %v5853_v0  ;;  %v5588_v52 = vrot.slane %v6800_v4, 9  ;;  %v6801_v1 = vld [vmem:[%s7079_s7 + $0x1c] sm:$0xf]  ;;  %v6802_v40 = vld [vmem:[%s7079_s7 + $0x24] sm:$0xf] }
  0xb0   : > { %v5604_v15 = vcombine.low %v8026_v60, %v1436_v23  ;;  %v1439_v0 = vrot.slane %v6801_v1, 5  ;;  %v1442_v50 = vrot.slane %v7574_v16, 5  ;;  %v5854_v60 = vcombine.low %v8040_v37, %v8049_v56  ;;  %v6803_v43 = vld [vmem:[%s7079_s7 + $0x28] sm:$0xf] }
  0xb1   : > { %6185 = vmatmul.mubr.msk.bf16.gmra.mrb[28].mxu1 %vm381_vm1, %v5569_v6  ;;  %v5589_v36 = vrot.slane %v6802_v40, 9  ;;  %v1446_v23 = vrot.slane %v6803_v43, 5  ;;  %v1449_v6 = vrot.slane %v7604_v3, 5  ;;  %v5855_v16 = vcombine.low %v8052_v25, %v8059_v2  ;;  %v8084_v59 = vld [vmem:[%s7079_s7 + $0x88] sm:$0xf] }
  0xb2   : > { %6190 = vmatprep.mubr.msk.bf16.mxu1 %vm381_vm1, %v5603_v13  ;;  %v1440_v4 = vsel %vm7435_vm7, %v5588_v52, %v1439_v0  ;;  %v1441_v1 = vrot.slane %v1439_v0, 4  ;;  %v8078_v13 = vld [vmem:[%s7079_s7 + $0x84] sm:$0xf]  ;;  %v1476_v54 = vrot.slane %v1474_v53, 4  ;;  %v9258_v22 = vshll.u32 %v7840_v9, 16 }
  0xb3   : > { %v1448_v43 = vrot.slane %v1446_v23, 4  ;;  %v8090_v0 = vsel %vm7435_vm7, %v5589_v36, %v1446_v23  ;;  %v8103_v36 = vld [vmem:[%s7079_s7 + $0x90] sm:$0xf]  ;;  %v8106_v23 = vld [vmem:[%s7079_s7 + $0x94] sm:$0xf] }
  0xb4   : > { %v1443_v52 = vsel %vm7435_vm7, %v1441_v1, %v1442_v50  ;;  %6339 = vmatmul.mubr.msk.bf16.gmra.mrb[12].mxu0 %vm381_vm1, %v5854_v60  ;;  %v2108_v50 = vsel %vm430_vm0, %v7655_v10, 0  ;;  %v6804_v1 = vld [vmem:[%s7079_s7 + $0x30] sm:$0xf]  ;;  %v5856_v60 = vcombine.low %v8078_v13, %v8084_v59  ;;  %v8128_v10 = vld [vmem:[%s7079_s7 + $0xa0] sm:$0xf] }
  0xb5   : > { %v5605_v40 = vcombine.low %v1440_v4, %v1443_v52  ;;  %v8097_v3 = vsel %vm7435_vm7, %v1448_v43, %v1449_v6  ;;  %v5590_v8 = vrot.slane %v6804_v1, 9  ;;  %6342 = vmatprep.mubr.msk.bf16.mxu0 %vm381_vm1, %v5855_v16  ;;  %v6805_v4 = vld [vmem:[%s7079_s7 + $0x34] sm:$0xf]  ;;  %v1456_v6 = vrot.slane %v7668_v47, 5  ;;  %v6806_v43 = vld [vmem:[%s7079_s7 + $0x3c] sm:$0xf] }
  0xb6   : > { %v1453_v52 = vrot.slane %v6805_v4, 5  ;;  %v5591_v39 = vrot.slane %v6806_v43, 9  ;;  %v5606_v16 = vcombine.low %v8090_v0, %v8097_v3  ;;  %v5857_v47 = vcombine.low %v8103_v36, %v8106_v23  ;;  %v8125_v43 = vld [vmem:[%s7079_s7 + $0x9c] sm:$0xf]  ;;  %v6811_v1 = vld [vmem:[%s7079_s7 + $0x54] sm:$0xf] }
  0xb8   : > { %v1455_v62 = vrot.slane %v1453_v52, 4  ;;  %v1454_v27 = vsel %vm7435_vm7, %v5590_v8, %v1453_v52  ;;  %v8139_v4 = vsel %vm7435_vm7, %v5591_v39, %v1460_v51  ;;  %v6809_v52 = vld [vmem:[%s9131_s1 + $0x8] sm:$0x3] }
  0xb9   : > { %6191 = vmatmul.mubr.msk.bf16.vlgmr.msra.gmra.mrb[0].mxu1 %vm381_vm1, %v5604_v15  ;;  %v1462_v15 = vrot.slane %v1460_v51, 4  ;;  %v6810_v51 = vld [vmem:[%s7079_s7 + $0x4c] sm:$0xf] }
  0xba   : > { %6194 = vmatprep.mubr.msk.bf16.mxu1 %vm381_vm1, %v5605_v40  ;;  %6223 = vmatpush3.bf16.msra.mxu1 %v2108_v50  ;;  %v1457_v0 = vsel %vm7435_vm7, %v1455_v62, %v1456_v6  ;;  %v6808_v50 = vld [vmem:[%s7079_s7 + $0x48] sm:$0xf]  ;;  %v5858_v62 = vcombine.low %v8125_v43, %v8128_v10  ;;  %v1467_v39 = vrot.slane %v6810_v51, 5  ;;  %v1470_v6 = vrot.slane %v7715_v49, 5  ;;  %v8159_v40 = vld [vmem:[%s7079_s7 + $0xac] sm:$0xf] }
  0xbb   : > { %v5592_v8 = vrot.slane %v6808_v50, 9  ;;  %6689 = vmatprep.subr.msk.bf16.mxu1 %vm430_vm0, %v6809_v52  ;;  %v8149_v3 = vsel %vm7435_vm7, %v1462_v15, %v1463_v28  ;;  %v8156_v50 = vld [vmem:[%s7079_s7 + $0xa8] sm:$0xf]  ;;  %v5593_v52 = vrot.slane %v6811_v1, 9  ;;  %v1477_v28 = vrot.slane %v7735_v45, 5 }
  0xbc   : > { %v8166_v15 = vld [vmem:[%s7079_s7 + $0xb4] sm:$0xf]  ;;  %6343 = vmatmul.mubr.msk.bf16.gmra.mrb[16].mxu0 %vm381_vm1, %v5856_v60  ;;  %v5607_v51 = vcombine.low %v1454_v27, %v1457_v0  ;;  %v1469_v58 = vrot.slane %v1467_v39, 4  ;;  %v5608_v1 = vcombine.low %v8139_v4, %v8149_v3  ;;  %v5859_v60 = vcombine.low %v8156_v50, %v8159_v40  ;;  %v8210_v49 = vld [vmem:[%s7079_s7 + $0xcc] sm:$0xf] }
  0xbd   : > { %6346 = vmatprep.mubr.msk.bf16.mxu0 %vm381_vm1, %v5857_v47  ;;  %v1468_v45 = vsel %vm7435_vm7, %v5592_v8, %v1467_v39  ;;  %v8185_v0 = vsel %vm7435_vm7, %v5593_v52, %v1474_v53  ;;  %v8192_v3 = vsel %vm7435_vm7, %v1476_v54, %v1477_v28  ;;  %v6813_v53 = vld [vmem:[%s7079_s7 + $0x60] sm:$0xf]  ;;  %v8202_v52 = vld [vmem:[%s7079_s7 + $0xc4] sm:$0xf]  ;;  %v1484_v54 = vrot.slane %v7761_v5, 5 }
  0xbe   : > { %v1471_v27 = vsel %vm7435_vm7, %v1469_v58, %v1470_v6  ;;  %v5594_v39 = vrot.slane %v6813_v53, 9  ;;  %v8199_v6 = vld [vmem:[%s7079_s7 + $0xc0] sm:$0xf]  ;;  %9256 = vst [vmem:[#allocation18_spill] sm:$0xff] %v8202_v52  ;;  %v6814_v47 = vld [vmem:[%s7079_s7 + $0x64] sm:$0xf] }
  0xbf   : > { %9255 = vst [vmem:[#allocation17_spill] sm:$0xff] %v8199_v6  ;;  %v1481_v28 = vrot.slane %v6814_v47, 5  ;;  %v6815_v8 = vld [vmem:[%s7079_s7 + $0x6c] sm:$0xf]  ;;  %v5609_v35 = vcombine.low %v1468_v45, %v1471_v27  ;;  %v6816_v58 = vld [vmem:[%s7079_s7 + $0x70] sm:$0xf] }
  0xc0   : > { %v5595_v4 = vrot.slane %v6815_v8, 9  ;;  %v1488_v11 = vrot.slane %v6816_v58, 5  ;;  %v1491_v5 = vrot.slane %v7782_v12, 5  ;;  %v5861_v8 = vcombine.low %v8199_v6, %v8202_v52  ;;  %v6817_v58 = vld [vmem:[%s7079_s7 + $0x78] sm:$0xf] }
  0xc1   : > { %6195 = vmatmul.mubr.msk.bf16.gmra.mrb[4].mxu1 %vm381_vm1, %v5606_v16  ;;  %v1483_v47 = vrot.slane %v1481_v28, 4  ;;  %v8225_v45 = vsel %vm7435_vm7, %v5594_v39, %v1481_v28  ;;  %v5596_v27 = vrot.slane %v6817_v58, 9  ;;  %v6818_v16 = vld [vmem:[%s7079_s7 + $0x7c] sm:$0xf]  ;;  %v1502_v28 = vrot.slane %v6820_v26, 5 }
  0xc2   : > { %6198 = vmatprep.mubr.msk.bf16.mxu1 %vm381_vm1, %v5607_v51  ;;  %v8237_v53 = vsel %vm7435_vm7, %v5595_v4, %v1488_v11  ;;  %v1490_v39 = vrot.slane %v1488_v11, 4  ;;  %v1498_v4 = vrot.slane %v7814_v41, 5  ;;  %v6819_v51 = vld [vmem:[%s7079_s7 + $0x84] sm:$0xf]  ;;  %v8252_v52 = vld [vmem:[%s7079_s7 + $0x20] sm:$0x1] }
  0xc3   : > { %v8233_v12 = vsel %vm7435_vm7, %v1483_v47, %v1484_v54  ;;  %v1495_v54 = vrot.slane %v6818_v16, 5  ;;  %v5597_v11 = vrot.slane %v6819_v51, 9  ;;  %v9257_v58 = vshrl.u32 %v7840_v9, 16 }
  0xc4   : > { %6347 = vmatmul.mubr.msk.bf16.gmra.mrb[20].mxu0 %vm381_vm1, %v5858_v62  ;;  %v5611_v47 = vcombine.low %v8225_v45, %v8233_v12  ;;  %v1505_v62 = vrot.slane %v7831_v29, 5  ;;  %v4011_v45 = vrot.slane %v9258_v22, 5  ;;  %v8263_v41 = vsel %vm7435_vm7, %v1490_v39, %v1491_v5  ;;  %v8274_v22 = vld [vmem:[%s7079_s7 + $0x2c] sm:$0x1] }
  0xc5   : > { %6350 = vmatprep.mubr.msk.bf16.mxu0 %vm381_vm1, %v5859_v60  ;;  %v1497_v60 = vrot.slane %v1495_v54, 4  ;;  %v4008_v16 = vrot.slane %v9257_v58, 4  ;;  %v1504_v26 = vrot.slane %v1502_v28, 4  ;;  %v4015_v51 = vshll.u32 %v7843_v33, 16 }
  0xc6   : > { %v8270_v29 = vsel %vm7435_vm7, %v5596_v27, %v1495_v54  ;;  %v4025_v9 = vshll.u32 %v8252_v52, 16  ;;  %v9261_v27 = vshll.u32 %v7851_v30, 16 }
  0xc7   : > { %v4012_v58 = vor.u32 %v4011_v45, %v4008_v16  ;;  %v8280_v5 = vsel %vm7435_vm7, %v1497_v60, %v1498_v4  ;;  %v4017_v39 = vrot.slane %v4015_v51, 5  ;;  %v8290_v16 = vsel %vm7435_vm7, %v1504_v26, %v1505_v62 }
  0xc8   : > { %v4035_v54 = vrot.slane %v9261_v27, 5  ;;  %v9262_v4 = vcombine.low %v8166_v15, %v8172_v44  ;;  %v9263_v60 = vshrl.u32 %v7861_v48, 16  ;;  %v4049_v51 = vshll.u32 %v8274_v22, 16 }
  0xc9   : > { %6199 = vmatmul.mubr.msk.bf16.gmra.mrb[8].mxu1 %vm381_vm1, %v5608_v1  ;;  %v9259_v1 = vshrl.u32 %v7843_v33, 16  ;;  %v8284_v33 = vsel %vm7435_vm7, %v5597_v11, %v1502_v28  ;;  %v4013_v45 = vrot.slane %v4012_v58, 4  ;;  %v5612_v62 = vcombine.low %v8237_v53, %v8263_v41 }
  0xca   : > { %6202 = vmatprep.mubr.msk.bf16.mxu1 %vm381_vm1, %v5609_v35  ;;  %v9260_v35 = vshrl.u32 %v7851_v30, 16  ;;  %v4045_v30 = vrot.slane %v9263_v60, 4  ;;  %v5613_v26 = vcombine.low %v8270_v29, %v8280_v5  ;;  %v9264_v53 = vcombine.low %v8185_v0, %v8192_v3  ;;  %v6823_v5 = vld [vmem:[%s7079_s7 + $0xa0] sm:$0xf]  ;;  %v6824_v60 = vld [vmem:[%s7079_s7 + $0x9c] sm:$0xf] }
  0xcb   : > { %v4021_v12 = vrot.slane %v9259_v1, 4  ;;  %v4027_v1 = vrot.slane %v4025_v9, 5  ;;  %v6821_v9 = vld [vmem:[%s7079_s7 + $0x90] sm:$0xf]  ;;  %v1512_v29 = vrot.slane %v7880_v21, 5 }
  0xcc   : > { %v4032_v6 = vrot.slane %v9260_v35, 4  ;;  %v4039_v35 = vshll.u32 %v7861_v48, 16  ;;  %6351 = vmatmul.mubr.msk.bf16.gmra.mrb[24].mxu0 %vm381_vm1, %v9262_v4  ;;  %v5598_v27 = vrot.slane %v6821_v9, 9  ;;  %v4018_v48 = vsel %vm7213_vm4, %v4013_v45, %v4017_v39  ;;  %v8326_v21 = vld [vmem:[%s7079_s7 + $0x38] sm:$0x1] }
  0xcd   : > { %v4022_v28 = vor.u32 %v4021_v12, %v4017_v39  ;;  %6354 = vmatprep.mubr.msk.bf16.mxu0 %vm381_vm1, %v5861_v8  ;;  %v4051_v45 = vrot.slane %v4049_v51, 5  ;;  %v5599_v9 = vrot.slane %v6824_v60, 9 }
  0xce   : > { %v4036_v11 = vor.u32 %v4035_v54, %v4032_v6  ;;  %v4041_v58 = vrot.slane %v4039_v35, 5  ;;  %v5614_v6 = vcombine.low %v8284_v33, %v8290_v16  ;;  %v6822_v54 = vld [vmem:[%s7079_s7 + $0x94] sm:$0xf]  ;;  %v1516_v35 = vrot.slane %v6823_v5, 5 }
  0xcf   : > { %v4023_v12 = vrot.slane %v4022_v28, 4  ;;  %v1509_v4 = vrot.slane %v6822_v54, 5  ;;  %v4135_v33 = vshll.u32 %v7991_v14, 16 }
  0xd0   : > { %v4037_v8 = vrot.slane %v4036_v11, 4  ;;  %v4046_v41 = vor.u32 %v4045_v30, %v4041_v58  ;;  %v1518_v11 = vrot.slane %v1516_v35, 4  ;;  %v9265_v30 = vshrl.u32 %v7903_v42, 16 }
  0xd1   : > { %6203 = vmatmul.mubr.msk.bf16.gmra.mrb[12].mxu1 %vm381_vm1, %v9264_v53  ;;  %v4028_v39 = vsel %vm7213_vm4, %v4023_v12, %v4027_v1  ;;  %v1511_v28 = vrot.slane %v1509_v4, 4  ;;  %v8323_v3 = vsel %vm7435_vm7, %v5598_v27, %v1509_v4  ;;  %v1519_v1 = vrot.slane %v7894_v20, 5 }
  0xd2   : > { %6206 = vmatprep.mubr.msk.bf16.mxu1 %vm381_vm1, %v5611_v47  ;;  %v5880_v54 = vcombine.low %v4018_v48, %v4028_v39  ;;  %v4047_v0 = vrot.slane %v4046_v41, 4  ;;  %v4056_v51 = vrot.slane %v9265_v30, 4  ;;  %v9266_v48 = vshll.u32 %v7903_v42, 16 }
  0xd3   : > { %v8330_v47 = vsel %vm7435_vm7, %v1511_v28, %v1512_v29  ;;  %v4042_v27 = vsel %vm7213_vm4, %v4037_v8, %v4041_v58  ;;  %v5006_v4 = vsel %vm430_vm0, %v7920_v32, 0  ;;  %v4063_v53 = vshll.u32 %v7914_v57, 16  ;;  %v8356_v8 = vld [vmem:[%s7079_s7 + $0x44] sm:$0x1] }
  0xd4   : > { %v4059_v12 = vrot.slane %v9266_v48, 5  ;;  %v9267_v41 = vshrl.u32 %v7914_v57, 16  ;;  %v9268_v20 = vcombine.low %v8210_v49, %v8216_v24  ;;  %v4052_v42 = vsel %vm7213_vm4, %v4047_v0, %v4051_v45 }
  0xd5   : > { %v8352_v5 = vsel %vm7435_vm7, %v5599_v9, %v1516_v35  ;;  %v4073_v32 = vshll.u32 %v8326_v21, 16  ;;  %v5615_v57 = vcombine.low %v8323_v3, %v8330_v47  ;;  %v4065_v39 = vrot.slane %v4063_v53, 5 }
  0xd6   : > { %v4069_v29 = vrot.slane %v9267_v41, 4  ;;  %6355 = vmatmul.mubr.msk.bf16.gmra.mrb[28].mxu0 %vm381_vm1, %v9268_v20  ;;  %v4060_v58 = vor.u32 %v4059_v12, %v4056_v51  ;;  %v9269_v28 = vshrl.u32 %v7930_v31, 16  ;;  %v9270_v45 = vshll.u32 %v7930_v31, 16  ;;  %v6826_v41 = vld [vmem:[%s7079_s7 + $0xac] sm:$0xf] }
  0xd7   : > { %6360 = vmatprep.mubr.msk.bf16.mxu0 %vm381_vm1, %v5880_v54  ;;  %v8367_v9 = vsel %vm7435_vm7, %v1518_v11, %v1519_v1  ;;  %v4087_v30 = vshll.u32 %v7933_v61, 16  ;;  %v9271_v54 = vshrl.u32 %v7933_v61, 16  ;;  %v4075_v47 = vrot.slane %v4073_v32, 5  ;;  %v6825_v11 = vld [vmem:[%s7079_s7 + $0xa8] sm:$0xf] }
  0xd8   : > { %v4080_v60 = vrot.slane %v9269_v28, 4  ;;  %v4083_v35 = vrot.slane %v9270_v45, 5  ;;  %v4061_v0 = vrot.slane %v4060_v58, 4  ;;  %v4070_v3 = vor.u32 %v4069_v29, %v4065_v39 }
  0xd9   : > { %v4093_v51 = vrot.slane %v9271_v54, 4  ;;  %6207 = vmatmul.mubr.msk.bf16.gmra.mrb[16].mxu1 %vm381_vm1, %v5612_v62  ;;  %v4097_v31 = vshll.u32 %v8356_v8, 16  ;;  %v5881_v12 = vcombine.low %v4042_v27, %v4052_v42  ;;  %v4089_v53 = vrot.slane %v4087_v30, 5  ;;  %v6827_v27 = vld [vmem:[%s7079_s7 + $0xb8] sm:$0xf] }
  0xda   : > { %v4084_v48 = vor.u32 %v4083_v35, %v4080_v60  ;;  %6210 = vmatprep.mubr.msk.bf16.mxu1 %vm381_vm1, %v5613_v26  ;;  %v5600_v1 = vrot.slane %v6825_v11, 9  ;;  %v1523_v20 = vrot.slane %v6826_v41, 5  ;;  %v5616_v61 = vcombine.low %v8352_v5, %v8367_v9  ;;  %v6828_v35 = vld [vmem:[%s7079_s7 + $0xb4] sm:$0xf]  ;;  %v8387_v54 = vld [vmem:[%s7079_s7 + $0x50] sm:$0x1] }
  0xdb   : > { %v4066_v62 = vsel %vm7213_vm4, %v4061_v0, %v4065_v39  ;;  %v4071_v29 = vrot.slane %v4070_v3, 4  ;;  %v4094_v32 = vor.u32 %v4093_v51, %v4089_v53  ;;  %v4099_v28 = vrot.slane %v4097_v31, 5 }
  0xdc   : > { %v4085_v58 = vrot.slane %v4084_v48, 4  ;;  %v1526_v26 = vrot.slane %v7949_v46, 5  ;;  %v1530_v42 = vrot.slane %v6827_v27, 5  ;;  %v1525_v45 = vrot.slane %v1523_v20, 4 }
  0xdd   : > { %v4076_v60 = vsel %vm7213_vm4, %v4071_v29, %v4075_v47  ;;  %v5601_v30 = vrot.slane %v6828_v35, 9  ;;  %v9272_v11 = vshrl.u32 %v7967_v18, 16  ;;  %v4095_v51 = vrot.slane %v4094_v32, 4 }
  0xde   : > { %6361 = vmatmul.mubr.msk.bf16.vlgmr.msra.gmra.mrb[0].mxu0 %vm381_vm1, %v5881_v12  ;;  %v5882_v0 = vcombine.low %v4066_v62, %v4076_v60  ;;  %v4090_v46 = vsel %vm7213_vm4, %v4085_v58, %v4089_v53  ;;  %v1524_v3 = vsel %vm7435_vm7, %v5600_v1, %v1523_v20  ;;  %v1532_v47 = vrot.slane %v1530_v42, 4  ;;  %v8407_v1 = vld [vmem:[%s7079_s7 + $0x5c] sm:$0x1] }
  0xdf   : > { %v4104_v39 = vrot.slane %v9272_v11, 4  ;;  %6393 = vmatpush3.bf16.msra.mxu0 %v5006_v4  ;;  %v1533_v48 = vrot.slane %v7959_v34, 5  ;;  %v9273_v31 = vshll.u32 %v7967_v18, 16  ;;  %v4111_v29 = vshll.u32 %v7970_v19, 16 }
  0xe0   : > { %6364 = vmatprep.mubr.msk.bf16.mxu0 %vm381_vm1, %v5882_v0  ;;  %v4100_v12 = vsel %vm7213_vm4, %v4095_v51, %v4099_v28  ;;  %v9274_v53 = vshrl.u32 %v7970_v19, 16  ;;  %v4121_v58 = vshll.u32 %v8387_v54, 16  ;;  %v9275_v4 = vshrl.u32 %v7983_v55, 16  ;;  %v8433_v0 = vld [vmem:[%s7079_s7 + $0x68] sm:$0x1] }
  0xe1   : > { %v4107_v41 = vrot.slane %v9273_v31, 5  ;;  %6211 = vmatmul.mubr.msk.bf16.gmra.mrb[20].mxu1 %vm381_vm1, %v5614_v6  ;;  %v1527_v18 = vsel %vm7435_vm7, %v1525_v45, %v1526_v26  ;;  %v8419_v20 = vsel %vm7435_vm7, %v5601_v30, %v1530_v42  ;;  %v4113_v32 = vrot.slane %v4111_v29, 5 }
  0xe2   : > { %v4117_v62 = vrot.slane %v9274_v53, 4  ;;  %v4128_v34 = vrot.slane %v9275_v4, 4  ;;  %6214 = vmatprep.mubr.msk.bf16.mxu1 %vm381_vm1, %v5615_v57  ;;  %v5883_v28 = vcombine.low %v4090_v46, %v4100_v12  ;;  %v4123_v27 = vrot.slane %v4121_v58, 5  ;;  %v8449_v4 = vld [vmem:[%s7079_s7 + $0x74] sm:$0x1] }
  0xe3   : > { %v4108_v19 = vor.u32 %v4107_v41, %v4104_v39  ;;  %v9276_v60 = vshll.u32 %v7983_v55, 16  ;;  %v9277_v26 = vshrl.u32 %v7991_v14, 16  ;;  %v4145_v42 = vshll.u32 %v8407_v1, 16 }
  0xe4   : > { %v4118_v6 = vor.u32 %v4117_v62, %v4113_v32  ;;  %v5617_v30 = vcombine.low %v1524_v3, %v1527_v18  ;;  %v8430_v11 = vsel %vm7435_vm7, %v1532_v47, %v1533_v48  ;;  %v4137_v39 = vrot.slane %v4135_v33, 5 }
  0xe5   : > { %v4131_v35 = vrot.slane %v9276_v60, 5  ;;  %v4109_v16 = vrot.slane %v4108_v19, 4  ;;  %v4141_v45 = vrot.slane %v9277_v26, 4  ;;  %v4147_v51 = vrot.slane %v4145_v42, 5 }
  0xe6   : > { %v4119_v46 = vrot.slane %v4118_v6, 4  ;;  %v9278_v14 = vshrl.u32 %v8001_v7, 16  ;;  %6365 = vmatmul.mubr.msk.bf16.gmra.mrb[4].mxu0 %vm381_vm1, %v5883_v28  ;;  %v9279_v47 = vshll.u32 %v8001_v7, 16  ;;  %v4159_v29 = vshll.u32 %v8004_v17, 16 }
  0xe7   : > { %v4132_v57 = vor.u32 %v4131_v35, %v4128_v34  ;;  %v4114_v55 = vsel %vm7213_vm4, %v4109_v16, %v4113_v32  ;;  %v4142_v41 = vor.u32 %v4141_v45, %v4137_v39  ;;  %v9280_v53 = vshrl.u32 %v8004_v17, 16 }
  0xe8   : > { %v4152_v31 = vrot.slane %v9278_v14, 4  ;;  %v4155_v48 = vrot.slane %v9279_v47, 5  ;;  %v4124_v12 = vsel %vm7213_vm4, %v4119_v46, %v4123_v27  ;;  %v4169_v58 = vshll.u32 %v8433_v0, 16 }
  0xe9   : > { %v4133_v3 = vrot.slane %v4132_v57, 4  ;;  %v4165_v62 = vrot.slane %v9280_v53, 4  ;;  %v9281_v34 = vshrl.u32 %v8040_v37, 16  ;;  %v5884_v19 = vcombine.low %v4114_v55, %v4124_v12  ;;  %6215 = vmatmul.mubr.msk.bf16.gmra.mrb[24].mxu1 %vm381_vm1, %v5616_v61  ;;  %v8470_v57 = vld [vmem:[%s7079_s7 + $0x80] sm:$0x1] }
  0xea   : > { %v4143_v32 = vrot.slane %v4142_v41, 4  ;;  %v4156_v28 = vor.u32 %v4155_v48, %v4152_v31  ;;  %v4161_v17 = vrot.slane %v4159_v29, 5  ;;  %v4171_v27 = vrot.slane %v4169_v58, 5  ;;  %6218 = vmatprep.mubr.msk.bf16.mxu1 %vm381_vm1, %v5617_v30  ;;  %v6830_v55 = vld [vmem:[%s7079_s7 + $0x10] sm:$0xf] }
  0xeb   : > { %v4176_v18 = vrot.slane %v9281_v34, 4  ;;  %v4138_v7 = vsel %vm7213_vm4, %v4133_v3, %v4137_v39  ;;  %v9282_v60 = vshll.u32 %v8040_v37, 16  ;;  %v4183_v33 = vshll.u32 %v8049_v56, 16  ;;  %6368 = vmatprep.mubr.msk.bf16.mxu0 %vm381_vm1, %v5884_v19  ;;  %v6829_v39 = vld [vmem:[%s7079_s7 + $0xc] sm:$0xf] }
  0xec   : > { %v4148_v16 = vsel %vm7213_vm4, %v4143_v32, %v4147_v51  ;;  %v4157_v5 = vrot.slane %v4156_v28, 4  ;;  %v9283_v9 = vshrl.u32 %v8049_v56, 16  ;;  %v4193_v6 = vshll.u32 %v8449_v4, 16 }
  0xed   : > { %v4179_v35 = vrot.slane %v9282_v60, 5  ;;  %v5885_v26 = vcombine.low %v4138_v7, %v4148_v16  ;;  %v4166_v45 = vor.u32 %v4165_v62, %v4161_v17  ;;  %v4185_v42 = vrot.slane %v4183_v33, 5 }
  0xee   : > { %v4189_v61 = vrot.slane %v9283_v9, 4  ;;  %v5618_v30 = vcombine.low %v8419_v20, %v8430_v11  ;;  %v5684_v46 = vcombine.low %v6829_v39, %v6830_v55  ;;  %v4162_v51 = vsel %vm7213_vm4, %v4157_v5, %v4161_v17  ;;  %v8512_v55 = vld [vmem:[%s7079_s7 + $0x98] sm:$0x1] }
  0xef   : > { %v4180_v37 = vor.u32 %v4179_v35, %v4176_v18  ;;  %v4195_v56 = vrot.slane %v4193_v6, 5  ;;  %v4167_v14 = vrot.slane %v4166_v45, 4  ;;  %v9284_v41 = vshrl.u32 %v8052_v25, 16  ;;  %6369 = vmatmul.mubr.msk.bf16.gmra.mrb[8].mxu0 %vm381_vm1, %v5885_v26  ;;  %v8492_v18 = vld [vmem:[%s7079_s7 + $0x8c] sm:$0x1] }
  0xf0   : > { %v4190_v3 = vor.u32 %v4189_v61, %v4185_v42  ;;  %v9285_v48 = vshll.u32 %v8052_v25, 16  ;;  %v4207_v20 = vshll.u32 %v8059_v2, 16  ;;  %v9286_v11 = vshrl.u32 %v8059_v2, 16  ;;  %v6831_v26 = vld [vmem:[%s7079_s7 + $0x18] sm:$0xf] }
  0xf1   : > { %v4181_v31 = vrot.slane %v4180_v37, 4  ;;  %v4200_v47 = vrot.slane %v9284_v41, 4  ;;  %v4217_v53 = vshll.u32 %v8470_v57, 16  ;;  %v4172_v62 = vsel %vm7213_vm4, %v4167_v14, %v4171_v27  ;;  %6219 = vmatmul.mubr.msk.bf16.gmra.mrb[28].mxu1 %vm381_vm1, %v5618_v30  ;;  %v6832_v45 = vld [vmem:[%s7079_s7 + $0x1c] sm:$0xf] }
  0xf2   : > { %v4203_v29 = vrot.slane %v9285_v48, 5  ;;  %v4213_v12 = vrot.slane %v9286_v11, 4  ;;  %v4191_v34 = vrot.slane %v4190_v3, 4  ;;  %v9287_v19 = vshrl.u32 %v8078_v13, 16  ;;  %6224 = vmatprep.mubr.msk.bf16.mxu1 %vm381_vm1, %v5684_v46 }
  0xf3   : > { %v4186_v58 = vsel %vm7213_vm4, %v4181_v31, %v4185_v42  ;;  %v5886_v7 = vcombine.low %v4162_v51, %v4172_v62  ;;  %v4209_v2 = vrot.slane %v4207_v20, 5  ;;  %v4219_v28 = vrot.slane %v4217_v53, 5  ;;  %v6834_v42 = vld [vmem:[%s7079_s7 + $0x28] sm:$0xf]  ;;  %v8528_v62 = vld [vmem:[%s7079_s7 + $0xa4] sm:$0x1] }
  0xf4   : > { %v4224_v25 = vrot.slane %v9287_v19, 4  ;;  %v4204_v32 = vor.u32 %v4203_v29, %v4200_v47  ;;  %v4196_v17 = vsel %vm7213_vm4, %v4191_v34, %v4195_v56  ;;  %v9288_v27 = vshll.u32 %v8078_v13, 16  ;;  %v6833_v13 = vld [vmem:[%s7079_s7 + $0x24] sm:$0xf] }
  0xf5   : > { %v4231_v35 = vshll.u32 %v8084_v59, 16  ;;  %v9289_v33 = vshrl.u32 %v8084_v59, 16  ;;  %6372 = vmatprep.mubr.msk.bf16.mxu0 %vm381_vm1, %v5886_v7  ;;  %v5887_v5 = vcombine.low %v4186_v58, %v4196_v17  ;;  %v4214_v61 = vor.u32 %v4213_v12, %v4209_v2 }
  0xf6   : > { %v4227_v60 = vrot.slane %v9288_v27, 5  ;;  %v4205_v9 = vrot.slane %v4204_v32, 4  ;;  %v4241_v6 = vshll.u32 %v8492_v18, 16  ;;  %v5685_v37 = vcombine.low %v6831_v26, %v6832_v45  ;;  %v8547_v26 = vld [vmem:[%s7079_s7 + $0xb0] sm:$0x1] }
  0xf7   : > { %v4237_v16 = vrot.slane %v9289_v33, 4  ;;  %v5686_v30 = vcombine.low %v6833_v13, %v6834_v42  ;;  %v4233_v59 = vrot.slane %v4231_v35, 5  ;;  %v4215_v51 = vrot.slane %v4214_v61, 4  ;;  %6373 = vmatmul.mubr.msk.bf16.gmra.mrb[12].mxu0 %vm381_vm1, %v5887_v5  ;;  %v6836_v13 = vld [vmem:[%s7079_s7 + $0x34] sm:$0xf] }
  0xf8   : > { %v4228_v39 = vor.u32 %v4227_v60, %v4224_v25  ;;  %v4210_v46 = vsel %vm7213_vm4, %v4205_v9, %v4209_v2  ;;  %v4243_v56 = vrot.slane %v4241_v6, 5  ;;  %v9290_v14 = vshrl.u32 %v8103_v36, 16 }
  0xf9   : > { %v4238_v41 = vor.u32 %v4237_v16, %v4233_v59  ;;  %v9291_v47 = vshll.u32 %v8103_v36, 16  ;;  %v4255_v29 = vshll.u32 %v8106_v23, 16  ;;  %v4220_v20 = vsel %vm7213_vm4, %v4215_v51, %v4219_v28  ;;  %6225 = vmatmul.mubr.msk.bf16.vlgmr.msra.gmra.mrb[0].mxu1 %vm381_vm1, %v5685_v37  ;;  %v6835_v37 = vld [vmem:[%s7079_s7 + $0x30] sm:$0xf] }
  0xfa   : > { %v4248_v31 = vrot.slane %v9290_v14, 4  ;;  %v4229_v3 = vrot.slane %v4228_v39, 4  ;;  %v9292_v11 = vshrl.u32 %v8106_v23, 16  ;;  %v4265_v53 = vshll.u32 %v8512_v55, 16  ;;  %6228 = vmatprep.mubr.msk.bf16.mxu1 %vm381_vm1, %v5686_v30 }
  0xfb   : > { %v4251_v48 = vrot.slane %v9291_v47, 5  ;;  %v9293_v58 = vshrl.u32 %v8125_v43, 16  ;;  %v5888_v19 = vcombine.low %v4210_v46, %v4220_v20  ;;  %v4239_v25 = vrot.slane %v4238_v41, 4  ;;  %v6838_v20 = vld [vmem:[%s7079_s7 + $0x40] sm:$0xf] }
  0xfc   : > { %v4261_v12 = vrot.slane %v9292_v11, 4  ;;  %v4234_v36 = vsel %vm7213_vm4, %v4229_v3, %v4233_v59  ;;  %v4257_v32 = vrot.slane %v4255_v29, 5  ;;  %v4267_v2 = vrot.slane %v4265_v53, 5  ;;  %v6837_v29 = vld [vmem:[%s7079_s7 + $0x3c] sm:$0xf] }
  0xfd   : > { %v4272_v34 = vrot.slane %v9293_v58, 4  ;;  %v4252_v7 = vor.u32 %v4251_v48, %v4248_v31  ;;  %v9294_v28 = vshll.u32 %v8125_v43, 16  ;;  %v4279_v17 = vshll.u32 %v8128_v10, 16  ;;  %6376 = vmatprep.mubr.msk.bf16.mxu0 %vm381_vm1, %v5888_v19  ;;  %v9296_v43 = vld [vmem:[#allocation6_spill] sm:$0xff]  ;;  %v8568_v58 = vld [vmem:[%s7079_s7 + $0xbc] sm:$0x1] }
  0xfe   : > { %v4244_v27 = vsel %vm7213_vm4, %v4239_v25, %v4243_v56  ;;  %v9295_v35 = vshrl.u32 %v8128_v10, 16  ;;  %v4289_v16 = vshll.u32 %v8528_v62, 16  ;;  %6427 = vmatpush3.bf16.msra.mxu1 %v9296_v43  ;;  %v4262_v9 = vor.u32 %v4261_v12, %v4257_v32 }
  0xff   : > { %v4275_v23 = vrot.slane %v9294_v28, 5  ;;  %v4253_v60 = vrot.slane %v4252_v7, 4  ;;  %v5889_v5 = vcombine.low %v4234_v36, %v4244_v27  ;;  %v4281_v6 = vrot.slane %v4279_v17, 5 }
 0x100   : > { %v4285_v33 = vrot.slane %v9295_v35, 4  ;;  %v4379_v45 = vshrl.u32 %v8216_v24, 16  ;;  %v5687_v10 = vcombine.low %v6835_v37, %v6836_v13  ;;  %v4291_v30 = vrot.slane %v4289_v16, 5  ;;  %v6839_v16 = vld [vmem:[%s7079_s7 + $0x48] sm:$0xf] }
 0x101   : > { %v4276_v61 = vor.u32 %v4275_v23, %v4272_v34  ;;  %v4258_v42 = vsel %vm7213_vm4, %v4253_v60, %v4257_v32  ;;  %v4263_v39 = vrot.slane %v4262_v9, 4  ;;  %v9297_v51 = vshrl.u32 %v8156_v50, 16  ;;  %6377 = vmatmul.mubr.msk.bf16.gmra.mrb[16].mxu0 %vm381_vm1, %v5889_v5 }
 0x102   : > { %v4286_v46 = vor.u32 %v4285_v33, %v4281_v6  ;;  %v9298_v14 = vshll.u32 %v8156_v50, 16  ;;  %v4303_v3 = vshll.u32 %v8159_v40, 16  ;;  %v9299_v41 = vshrl.u32 %v8159_v40, 16  ;;  %6229 = vmatmul.mubr.msk.bf16.gmra.mrb[4].mxu1 %vm381_vm1, %v5687_v10  ;;  %v9303_v10 = vld [vmem:[#allocation17_spill] sm:$0xff] }
 0x103   : > { %v4277_v59 = vrot.slane %v4276_v61, 4  ;;  %v4296_v56 = vrot.slane %v9297_v51, 4  ;;  %v4313_v48 = vshll.u32 %v8547_v26, 16  ;;  %v5688_v11 = vcombine.low %v6837_v29, %v6838_v20 }
 0x104   : > { %v4299_v31 = vrot.slane %v9298_v14, 5  ;;  %v4309_v47 = vrot.slane %v9299_v41, 4  ;;  %v4268_v12 = vsel %vm7213_vm4, %v4263_v39, %v4267_v2  ;;  %v4287_v53 = vrot.slane %v4286_v46, 4 }
 0x105   : > { %v9300_v50 = vshrl.u32 %v8166_v15, 16  ;;  %v5890_v19 = vcombine.low %v4258_v42, %v4268_v12  ;;  %v4282_v40 = vsel %vm7213_vm4, %v4277_v59, %v4281_v6  ;;  %v4305_v25 = vrot.slane %v4303_v3, 5  ;;  %6232 = vmatprep.mubr.msk.bf16.mxu1 %vm381_vm1, %v5688_v11  ;;  %v6841_v11 = vld [vmem:[%s7079_s7 + $0x54] sm:$0xf]  ;;  %v6842_v12 = vld [vmem:[%s7079_s7 + $0x58] sm:$0xf] }
 0x106   : > { %v4300_v36 = vor.u32 %v4299_v31, %v4296_v56  ;;  %v4292_v7 = vsel %vm7213_vm4, %v4287_v53, %v4291_v30  ;;  %v9301_v32 = vshll.u32 %v8166_v15, 16  ;;  %v4327_v28 = vshll.u32 %v8172_v44, 16  ;;  %v6840_v15 = vld [vmem:[%s7079_s7 + $0x4c] sm:$0xf]  ;;  %v9306_v56 = vld [vmem:[#allocation18_spill] sm:$0xff] }
 0x107   : > { %v4320_v34 = vrot.slane %v9300_v50, 4  ;;  %v9302_v23 = vshrl.u32 %v8172_v44, 16  ;;  %6380 = vmatprep.mubr.msk.bf16.mxu0 %vm381_vm1, %v5890_v19  ;;  %v4310_v60 = vor.u32 %v4309_v47, %v4305_v25  ;;  %v4315_v35 = vrot.slane %v4313_v48, 5  ;;  %v8588_v44 = vld [vmem:[%s7079_s7 + $0xc8] sm:$0x1] }
 0x108   : > { %v4323_v2 = vrot.slane %v9301_v32, 5  ;;  %v4301_v27 = vrot.slane %v4300_v36, 4  ;;  %v4337_v33 = vshll.u32 %v8568_v58, 16  ;;  %v5689_v43 = vcombine.low %v6839_v16, %v6840_v15  ;;  %v8603_v48 = vld [vmem:[%s7079_s7 + $0xd4] sm:$0x1] }
 0x109   : > { %v4333_v17 = vrot.slane %v9302_v23, 4  ;;  %v5891_v5 = vcombine.low %v4282_v40, %v4292_v7  ;;  %v4329_v61 = vrot.slane %v4327_v28, 5  ;;  %v4311_v37 = vrot.slane %v4310_v60, 4  ;;  %v6844_v16 = vld [vmem:[%s7079_s7 + $0x64] sm:$0xf] }
 0x10a   : > { %v4324_v9 = vor.u32 %v4323_v2, %v4320_v34  ;;  %v4306_v6 = vsel %vm7213_vm4, %v4301_v27, %v4305_v25  ;;  %v4339_v13 = vrot.slane %v4337_v33, 5  ;;  %v9304_v42 = vshrl.u32 %v9303_v10, 16  ;;  %6233 = vmatmul.mubr.msk.bf16.gmra.mrb[8].mxu1 %vm381_vm1, %v5689_v43  ;;  %v6843_v33 = vld [vmem:[%s7079_s7 + $0x60] sm:$0xf] }
 0x10b   : > { %v4334_v59 = vor.u32 %v4333_v17, %v4329_v61  ;;  %v9305_v46 = vshll.u32 %v9303_v10, 16  ;;  %v4351_v14 = vshll.u32 %v9306_v56, 16  ;;  %v4316_v31 = vsel %vm7213_vm4, %v4311_v37, %v4315_v35  ;;  %6381 = vmatmul.mubr.msk.bf16.gmra.mrb[20].mxu0 %vm381_vm1, %v5891_v5 }
 0x10c   : > { %v4344_v30 = vrot.slane %v9304_v42, 4  ;;  %v4325_v39 = vrot.slane %v4324_v9, 4  ;;  %v9307_v3 = vshrl.u32 %v9306_v56, 16  ;;  %v4361_v47 = vshll.u32 %v8588_v44, 16  ;;  %v8636_v56 = vld [vmem:[%s7079_s7 + $0x70] sm:$0xf] }
 0x10d   : > { %v4347_v51 = vrot.slane %v9305_v46, 5  ;;  %v9308_v29 = vshrl.u32 %v8210_v49, 16  ;;  %v5690_v53 = vcombine.low %v6841_v11, %v6842_v12  ;;  %v5892_v50 = vcombine.low %v4306_v6, %v4316_v31  ;;  %v6845_v6 = vld [vmem:[%s7079_s7 + $0x18] sm:$0xf]  ;;  %v8653_v11 = vld [vmem:[%s7079_s7 + $0x84] sm:$0xf] }
 0x10e   : > { %v4357_v41 = vrot.slane %v9307_v3, 4  ;;  %v4335_v34 = vrot.slane %v4334_v59, 4  ;;  %v4330_v40 = vsel %vm7213_vm4, %v4325_v39, %v4329_v61  ;;  %v4353_v36 = vrot.slane %v4351_v14, 5  ;;  %v6848_v59 = vld [vmem:[%s7079_s7 + $0x28] sm:$0xf] }
 0x10f   : > { %v4368_v20 = vrot.slane %v9308_v29, 4  ;;  %v4348_v19 = vor.u32 %v4347_v51, %v4344_v30  ;;  %v9309_v25 = vshll.u32 %v8210_v49, 16  ;;  %v4375_v32 = vshll.u32 %v8216_v24, 16  ;;  %6384 = vmatprep.mubr.msk.bf16.mxu0 %vm381_vm1, %v5892_v50  ;;  %6236 = vmatprep.mubr.msk.bf16.mxu1 %vm381_vm1, %v5690_v53  ;;  %v6847_v30 = vld [vmem:[%s7079_s7 + $0x24] sm:$0xf] }
 0x110   : > { %v4340_v2 = vsel %vm7213_vm4, %v4335_v34, %v4339_v13  ;;  %v4381_v23 = vrot.slane %v4379_v45, 4  ;;  %v4385_v17 = vshll.u32 %v8603_v48, 16  ;;  %v4358_v27 = vor.u32 %v4357_v41, %v4353_v36  ;;  %v6846_v13 = vld [vmem:[%s7079_s7 + $0x1c] sm:$0xf]  ;;  %v8633_v51 = vld [vmem:[%s7079_s7 + $0x6c] sm:$0xf] }
 0x111   : > { %v4371_v7 = vrot.slane %v9309_v25, 5  ;;  %v4349_v28 = vrot.slane %v4348_v19, 4  ;;  %v4363_v49 = vrot.slane %v4361_v47, 5  ;;  %v4377_v35 = vrot.slane %v4375_v32, 5  ;;  %v8648_v47 = vld [vmem:[%s7079_s7 + $0x7c] sm:$0xf] }
 0x112   : > { %v5691_v15 = vcombine.low %v6843_v33, %v6844_v16  ;;  %v5893_v24 = vcombine.low %v4330_v40, %v4340_v2  ;;  %v4387_v5 = vrot.slane %v4385_v17, 5  ;;  %v4359_v43 = vrot.slane %v4358_v27, 4  ;;  %v8656_v12 = vld [vmem:[%s7079_s7 + $0x88] sm:$0xf]  ;;  %v6856_v2 = vld [vmem:[%s7079_s7 + $0x34] sm:$0xf] }
 0x113   : > { %v4372_v60 = vor.u32 %v4371_v7, %v4368_v20  ;;  %v4354_v45 = vsel %vm7213_vm4, %v4349_v28, %v4353_v36  ;;  %v4382_v61 = vor.u32 %v4381_v23, %v4377_v35  ;;  %v5912_v37 = vrot.slane %v6845_v6, 9  ;;  %v6855_v7 = vld [vmem:[%s7079_s7 + $0x30] sm:$0xf]  ;;  %v8680_v17 = vld [vmem:[%s7079_s7 + $0x94] sm:$0xf] }
 0x114   : > { %v4765_v10 = vrot.slane %v6846_v13, 5  ;;  %v4768_v42 = vrot.slane %v8252_v52, 5  ;;  %v5913_v39 = vrot.slane %v6847_v30, 9  ;;  %v4772_v46 = vrot.slane %v6848_v59, 5  ;;  %6385 = vmatmul.mubr.msk.bf16.gmra.mrb[24].mxu0 %vm381_vm1, %v5893_v24  ;;  %v8645_v52 = vld [vmem:[%s7079_s7 + $0x78] sm:$0xf]  ;;  %6237 = vmatmul.mubr.msk.bf16.gmra.mrb[12].mxu1 %vm381_vm1, %v5691_v15 }
 0x115   : > { %v4373_v9 = vrot.slane %v4372_v60, 4  ;;  %v5692_v14 = vcombine.low %v8633_v51, %v8636_v56  ;;  %v4364_v31 = vsel %vm7213_vm4, %v4359_v43, %v4363_v49  ;;  %v4383_v3 = vrot.slane %v4382_v61, 4  ;;  %v8677_v23 = vld [vmem:[%s7079_s7 + $0x90] sm:$0xf]  ;;  %v8689_v60 = vld [vmem:[%s7079_s7 + $0x9c] sm:$0xf] }
 0x116   : > { %v4775_v41 = vrot.slane %v8274_v22, 5  ;;  %v5693_v29 = vcombine.low %v8645_v52, %v8648_v47  ;;  %v5894_v20 = vcombine.low %v4354_v45, %v4364_v31  ;;  %v5694_v22 = vcombine.low %v8653_v11, %v8656_v12  ;;  %v6861_v45 = vld [vmem:[%s7079_s7 + $0x3c] sm:$0xf]  ;;  %v6862_v43 = vld [vmem:[%s7079_s7 + $0x40] sm:$0xf] }
 0x117   : > { %v4767_v53 = vrot.slane %v4765_v10, 4  ;;  %v4378_v50 = vsel %vm7213_vm4, %v4373_v9, %v4377_v35  ;;  %v4388_v34 = vsel %vm7213_vm4, %v4383_v3, %v4387_v5  ;;  %v4766_v19 = vsel %vm7435_vm7, %v5912_v37, %v4765_v10  ;;  %v8692_v35 = vld [vmem:[%s7079_s7 + $0xa0] sm:$0xf]  ;;  %6240 = vmatprep.mubr.msk.bf16.mxu1 %vm381_vm1, %v5692_v14  ;;  %v8703_v37 = vld [vmem:[%s7079_s7 + $0xa8] sm:$0xf] }
 0x118   : > { %v4774_v40 = vrot.slane %v4772_v46, 4  ;;  %6388 = vmatprep.mubr.msk.bf16.mxu0 %vm381_vm1, %v5894_v20  ;;  %v8671_v25 = vsel %vm7435_vm7, %v5913_v39, %v4772_v46  ;;  %v5914_v32 = vrot.slane %v6855_v7, 9  ;;  %v4779_v28 = vrot.slane %v6856_v2, 5  ;;  %v6865_v59 = vld [vmem:[%s7079_s7 + $0x4c] sm:$0xf] }
 0x119   : > { %v4769_v36 = vsel %vm7435_vm7, %v4767_v53, %v4768_v42  ;;  %v5695_v27 = vcombine.low %v8677_v23, %v8680_v17  ;;  %v5696_v33 = vcombine.low %v8689_v60, %v8692_v35  ;;  %v4782_v16 = vrot.slane %v8326_v21, 5  ;;  %v8706_v21 = vld [vmem:[%s7079_s7 + $0xac] sm:$0xf]  ;;  %v8721_v14 = vld [vmem:[%s7079_s7 + $0xb4] sm:$0xf] }
 0x11a   : > { %v8686_v49 = vsel %vm7435_vm7, %v4774_v40, %v4775_v41  ;;  %v5895_v15 = vcombine.low %v4378_v50, %v4388_v34  ;;  %v4781_v24 = vrot.slane %v4779_v28, 4  ;;  %v5915_v5 = vrot.slane %v6861_v45, 9  ;;  %v8724_v31 = vld [vmem:[%s7079_s7 + $0xb8] sm:$0xf]  ;;  %v6868_v41 = vld [vmem:[%s7079_s7 + $0x48] sm:$0xf] }
 0x11b   : > { %v4786_v9 = vrot.slane %v6862_v43, 5  ;;  %v5929_v61 = vcombine.low %v4766_v19, %v4769_v36  ;;  %v5930_v6 = vcombine.low %v8671_v25, %v8686_v49  ;;  %v5697_v13 = vcombine.low %v8703_v37, %v8706_v21  ;;  %v6869_v53 = vld [vmem:[%s7079_s7 + $0x54] sm:$0xf]  ;;  %v6870_v34 = vld [vmem:[%s7079_s7 + $0x58] sm:$0xf] }
 0x11c   : > { %v8712_v10 = vsel %vm7435_vm7, %v5914_v32, %v4779_v28  ;;  %v8716_v42 = vsel %vm7435_vm7, %v4781_v24, %v4782_v16  ;;  %v4789_v39 = vrot.slane %v8356_v8, 5  ;;  %v4793_v46 = vrot.slane %v6865_v59, 5  ;;  %6389 = vmatmul.mubr.msk.bf16.gmra.mrb[28].mxu0 %vm381_vm1, %v5895_v15  ;;  %v8737_v40 = vld [vmem:[%s7079_s7 + $0xc0] sm:$0xf]  ;;  %v8740_v36 = vld [vmem:[%s7079_s7 + $0xc4] sm:$0xf]  ;;  %6241 = vmatmul.mubr.msk.bf16.gmra.mrb[16].mxu1 %vm381_vm1, %v5693_v29 }
 0x11d   : > { %v4788_v30 = vrot.slane %v4786_v9, 4  ;;  %v5698_v3 = vcombine.low %v8721_v14, %v8724_v31  ;;  %v5916_v20 = vrot.slane %v6868_v41, 9  ;;  %v5917_v50 = vrot.slane %v6869_v53, 9  ;;  %6394 = vmatprep.mubr.msk.bf16.mxu0 %vm381_vm1, %v5929_v61  ;;  %6244 = vmatprep.mubr.msk.bf16.mxu1 %vm381_vm1, %v5694_v22  ;;  %v9312_v22 = vld [vmem:[#allocation14_spill] sm:$0xff]  ;;  %v9313_v59 = vld [vmem:[#allocation15_spill] sm:$0xff] }
 0x11e   : > { %v4800_v19 = vrot.slane %v6870_v34, 5  ;;  %v8734_v8 = vsel %vm7435_vm7, %v5915_v5, %v4786_v9  ;;  %v5699_v25 = vcombine.low %v8737_v40, %v8740_v36  ;;  %v4795_v7 = vrot.slane %v4793_v46, 4  ;;  %v6874_v53 = vld [vmem:[%s7079_s7 + $0x60] sm:$0xf]  ;;  %v6875_v34 = vld [vmem:[%s7079_s7 + $0x64] sm:$0xf] }
 0x11f   : > { %v4796_v32 = vrot.slane %v8387_v54, 5  ;;  %v5931_v2 = vcombine.low %v8712_v10, %v8716_v42  ;;  %v4803_v49 = vrot.slane %v8407_v1, 5  ;;  %v2528_v16 = vshrl.u32 %v8633_v51, 16  ;;  %v9310_v42 = vld [vmem:[#allocation22_spill] sm:$0xff] }
 0x120   : > { %v4802_v28 = vrot.slane %v4800_v19, 4  ;;  %v8752_v15 = vsel %vm7435_vm7, %v4788_v30, %v4789_v39  ;;  %v2531_v24 = vshll.u32 %v8633_v51, 16  ;;  %v2537_v45 = vshll.u32 %v8636_v56, 16  ;;  %v6873_v51 = vld [vmem:[%s7079_s7 + $0x74] sm:$0x1]  ;;  %v9311_v30 = vld [vmem:[#allocation13_spill] sm:$0xff] }
 0x121   : > { %v2541_v54 = vshrl.u32 %v8636_v56, 16  ;;  %v8763_v1 = vsel %vm7435_vm7, %v5916_v20, %v4793_v46  ;;  %v8767_v5 = vsel %vm7435_vm7, %v5917_v50, %v4800_v19  ;;  %v2530_v43 = vrot.slane %v2528_v16, 4  ;;  %v6876_v16 = vld [vmem:[%s7079_s7 + $0x6c] sm:$0xf] }
 0x122   : > { %v2547_v9 = vshll.u32 %v6873_v51, 16  ;;  %v8776_v56 = vsel %vm7435_vm7, %v4795_v7, %v4796_v32  ;;  %v2533_v52 = vrot.slane %v2531_v24, 5  ;;  %v8778_v47 = vrot.slane %v2537_v45, 5 }
 0x123   : > { %v2543_v29 = vrot.slane %v2541_v54, 4  ;;  %v8782_v61 = vsel %vm7435_vm7, %v4802_v28, %v4803_v49  ;;  %v2558_v39 = vor.u32 %v9311_v30, %v9310_v42  ;;  %v2568_v46 = vor.u32 %v9313_v59, %v9312_v22  ;;  %v6877_v49 = vld [vmem:[%s7079_s7 + $0x70] sm:$0xf] }
 0x124   : > { %v8784_v10 = vrot.slane %v2547_v9, 5  ;;  %v2534_v41 = vor.u32 %v2533_v52, %v2530_v43  ;;  %v5918_v50 = vrot.slane %v6874_v53, 9  ;;  %v4807_v19 = vrot.slane %v6875_v34, 5  ;;  %6395 = vmatmul.mubr.msk.bf16.vlgmr.msra.gmra.mrb[0].mxu0 %vm381_vm1, %v5930_v6  ;;  %v9314_v52 = vld [vmem:[#allocation16_spill] sm:$0xff]  ;;  %6245 = vmatmul.mubr.msk.bf16.gmra.mrb[20].mxu1 %vm381_vm1, %v5695_v27 }
 0x125   : > { %v2544_v20 = vor.u32 %v2543_v29, %v8778_v47  ;;  %v2559_v7 = vrot.slane %v2558_v39, 4  ;;  %v2569_v32 = vrot.slane %v2568_v46, 4  ;;  %v5919_v28 = vrot.slane %v6876_v16, 9  ;;  %6398 = vmatprep.mubr.msk.bf16.mxu0 %vm381_vm1, %v5931_v2  ;;  %6248 = vmatprep.mubr.msk.bf16.mxu1 %vm381_vm1, %v5696_v33 }
 0x126   : > { %v4814_v24 = vrot.slane %v6877_v49, 5  ;;  %v5932_v45 = vcombine.low %v8734_v8, %v8752_v15  ;;  %v5933_v54 = vcombine.low %v8763_v1, %v8776_v56  ;;  %v2535_v43 = vrot.slane %v2534_v41, 4 }
 0x127   : > { %v2545_v51 = vrot.slane %v2544_v20, 4  ;;  %v2564_v9 = vsel %vm7213_vm4, %v2559_v7, %v9312_v22  ;;  %v2574_v29 = vsel %vm7213_vm4, %v2569_v32, %v9314_v52  ;;  %v4809_v42 = vrot.slane %v4807_v19, 4  ;;  %v6881_v52 = vld [vmem:[%s7079_s7 + $0x7c] sm:$0xf] }
 0x128   : > { %v4810_v6 = vrot.slane %v8433_v0, 5  ;;  %v5934_v8 = vcombine.low %v8767_v5, %v8782_v61  ;;  %v8812_v15 = vsel %vm7435_vm7, %v5918_v50, %v4807_v19  ;;  %v8816_v2 = vsel %vm7435_vm7, %v5919_v28, %v4814_v24  ;;  %v6878_v50 = vld [vmem:[%s7079_s7 + $0x8c] sm:$0x1]  ;;  %v6879_v28 = vld [vmem:[%s7079_s7 + $0x98] sm:$0x1] }
 0x129   : > { %v4816_v1 = vrot.slane %v4814_v24, 4  ;;  %v2540_v0 = vsel %vm7213_vm4, %v2535_v43, %v8778_v47  ;;  %v2550_v56 = vsel %vm7213_vm4, %v2545_v51, %v8784_v10  ;;  %v4817_v30 = vrot.slane %v8449_v4, 5  ;;  %v6880_v51 = vld [vmem:[%s7079_s7 + $0x78] sm:$0xf] }
 0x12a   : > { %v2576_v39 = vshrl.u32 %v8653_v11, 16  ;;  %v8834_v22 = vcombine.low %v2564_v9, %v2574_v29  ;;  %v2579_v27 = vshll.u32 %v8653_v11, 16  ;;  %v2585_v47 = vshll.u32 %v8656_v12, 16 }
 0x12b   : > { %v2589_v59 = vshrl.u32 %v8656_v12, 16  ;;  %v4811_v10 = vsel %vm7435_vm7, %v4809_v42, %v4810_v6  ;;  %v2600_v4 = vshrl.u32 %v8677_v23, 16  ;;  %v2603_v41 = vshll.u32 %v8677_v23, 16 }
 0x12c   : > { %v2578_v46 = vrot.slane %v2576_v39, 4  ;;  %v2581_v20 = vrot.slane %v2579_v27, 5  ;;  %v8843_v53 = vrot.slane %v2585_v47, 5  ;;  %v2595_v11 = vshll.u32 %v6878_v50, 16  ;;  %6399 = vmatmul.mubr.msk.bf16.gmra.mrb[4].mxu0 %vm381_vm1, %v5932_v45  ;;  %6249 = vmatmul.mubr.msk.bf16.gmra.mrb[24].mxu1 %vm381_vm1, %v5697_v13  ;;  %v6882_v47 = vld [vmem:[%s7079_s7 + $0x84] sm:$0xf] }
 0x12d   : > { %v2591_v33 = vrot.slane %v2589_v59, 4  ;;  %v8848_v12 = vsel %vm7435_vm7, %v4816_v1, %v4817_v30  ;;  %v2602_v34 = vrot.slane %v2600_v4, 4  ;;  %v2605_v19 = vrot.slane %v2603_v41, 5  ;;  %6402 = vmatprep.mubr.msk.bf16.mxu0 %vm381_vm1, %v5933_v54  ;;  %6252 = vmatprep.mubr.msk.bf16.mxu1 %vm381_vm1, %v5698_v3  ;;  %v6883_v59 = vld [vmem:[%s7079_s7 + $0x88] sm:$0xf] }
 0x12e   : > { %v2609_v7 = vshll.u32 %v8680_v17, 16  ;;  %v2582_v32 = vor.u32 %v2581_v20, %v2578_v46  ;;  %v2613_v16 = vshrl.u32 %v8680_v17, 16  ;;  %v2619_v49 = vshll.u32 %v6879_v28, 16 }
 0x12f   : > { %v2592_v23 = vor.u32 %v2591_v33, %v8843_v53  ;;  %v2606_v24 = vor.u32 %v2605_v19, %v2602_v34  ;;  %v5920_v9 = vrot.slane %v6880_v51, 9  ;;  %v4821_v29 = vrot.slane %v6881_v52, 5  ;;  %v6884_v34 = vld [vmem:[%s7079_s7 + $0xa4] sm:$0x1]  ;;  %v6885_v52 = vld [vmem:[%s7079_s7 + $0xb0] sm:$0x1] }
 0x130   : > { %v8856_v43 = vrot.slane %v2609_v7, 5  ;;  %v5725_v42 = vcombine.low %v2540_v0, %v2550_v56  ;;  %v5935_v45 = vcombine.low %v8812_v15, %v4811_v10  ;;  %v8861_v6 = vrot.slane %v2582_v32, 4 }
 0x131   : > { %v2615_v1 = vrot.slane %v2613_v16, 4  ;;  %v2593_v17 = vrot.slane %v2592_v23, 4  ;;  %v2597_v54 = vrot.slane %v2595_v11, 5  ;;  %v4823_v30 = vrot.slane %v4821_v29, 4 }
 0x132   : > { %v4824_v39 = vrot.slane %v8470_v57, 5  ;;  %v5936_v15 = vcombine.low %v8816_v2, %v8848_v12  ;;  %v8874_v0 = vrot.slane %v2606_v24, 4  ;;  %v8877_v27 = vrot.slane %v2619_v49, 5 }
 0x133   : > { %v2616_v56 = vor.u32 %v2615_v1, %v8856_v43  ;;  %v2588_v13 = vsel %vm7213_vm4, %v8861_v6, %v8843_v53  ;;  %v4822_v57 = vsel %vm7435_vm7, %v5920_v9, %v4821_v29  ;;  %v5921_v3 = vrot.slane %v6882_v47, 9 }
 0x134   : > { %v4828_v10 = vrot.slane %v6883_v59, 5  ;;  %v4825_v46 = vsel %vm7435_vm7, %v4823_v30, %v4824_v39  ;;  %v4831_v4 = vrot.slane %v8492_v18, 5  ;;  %v2624_v41 = vshrl.u32 %v8689_v60, 16  ;;  %6403 = vmatmul.mubr.msk.bf16.gmra.mrb[8].mxu0 %vm381_vm1, %v5934_v8  ;;  %6253 = vmatmul.mubr.msk.bf16.gmra.mrb[28].mxu1 %vm381_vm1, %v5699_v25  ;;  %v6887_v30 = vld [vmem:[%s7079_s7 + $0x94] sm:$0xf] }
 0x135   : > { %v2617_v2 = vrot.slane %v2616_v56, 4  ;;  %v2598_v20 = vsel %vm7213_vm4, %v2593_v17, %v2597_v54  ;;  %v2627_v33 = vshll.u32 %v8689_v60, 16  ;;  %v2633_v50 = vshll.u32 %v8692_v35, 16  ;;  %6406 = vmatprep.mubr.msk.bf16.mxu0 %vm381_vm1, %v5935_v45  ;;  %6274 = vmatprep.mubr.msk.bf16.mxu1 %vm381_vm1, %v5725_v42  ;;  %v6886_v17 = vld [vmem:[%s7079_s7 + $0x90] sm:$0xf] }
 0x136   : > { %v4830_v53 = vrot.slane %v4828_v10, 4  ;;  %v2612_v18 = vsel %vm7213_vm4, %v8874_v0, %v8856_v43  ;;  %v2626_v11 = vrot.slane %v2624_v41, 4  ;;  %v2637_v12 = vshrl.u32 %v8692_v35, 16 }
 0x137   : > { %v2643_v19 = vshll.u32 %v6884_v34, 16  ;;  %v5937_v60 = vcombine.low %v4822_v57, %v4825_v46  ;;  %v8908_v7 = vsel %vm7435_vm7, %v5921_v3, %v4828_v10  ;;  %v2629_v5 = vrot.slane %v2627_v33, 5  ;;  %v6888_v3 = vld [vmem:[%s7079_s7 + $0x9c] sm:$0xf]  ;;  %v6889_v10 = vld [vmem:[%s7079_s7 + $0xa0] sm:$0xf] }
 0x138   : > { %v2635_v61 = vrot.slane %v2633_v50, 5  ;;  %v2622_v8 = vsel %vm7213_vm4, %v2617_v2, %v8877_v27  ;;  %v8915_v32 = vsel %vm7435_vm7, %v4830_v53, %v4831_v4  ;;  %v2639_v35 = vrot.slane %v2637_v12, 4 }
 0x139   : > { %v2648_v23 = vshrl.u32 %v8703_v37, 16  ;;  %v2630_v16 = vor.u32 %v2629_v5, %v2626_v11  ;;  %v2651_v28 = vshll.u32 %v8703_v37, 16  ;;  %v2657_v49 = vshll.u32 %v8706_v21, 16 }
 0x13a   : > { %v2661_v24 = vshrl.u32 %v8706_v21, 16  ;;  %v2640_v43 = vor.u32 %v2639_v35, %v2635_v61  ;;  %v2645_v51 = vrot.slane %v2643_v19, 5  ;;  %v2667_v29 = vshll.u32 %v6885_v52, 16  ;;  %v6891_v52 = vld [vmem:[%s7079_s7 + $0xa8] sm:$0xf] }
 0x13b   : > { %v2650_v9 = vrot.slane %v2648_v23, 4  ;;  %v2631_v45 = vrot.slane %v2630_v16, 4  ;;  %v2653_v6 = vrot.slane %v2651_v28, 5  ;;  %v8927_v25 = vrot.slane %v2657_v49, 5 }
 0x13c   : > { %v2663_v1 = vrot.slane %v2661_v24, 4  ;;  %v2641_v37 = vrot.slane %v2640_v43, 4  ;;  %v5922_v54 = vrot.slane %v6886_v17, 9  ;;  %v4835_v39 = vrot.slane %v6887_v30, 5  ;;  %6407 = vmatmul.mubr.msk.bf16.gmra.mrb[12].mxu0 %vm381_vm1, %v5936_v15  ;;  %6275 = vmatmul.mubr.msk.bf16.vlgmr.msra.gmra.mrb[16].mxu1 %vm381_vm1, %v8834_v22  ;;  %v6890_v22 = vld [vmem:[%s7079_s7 + $0xbc] sm:$0x1] }
 0x13d   : > { %v4838_v21 = vrot.slane %v8512_v55, 5  ;;  %v5727_v42 = vcombine.low %v2588_v13, %v2598_v20  ;;  %v2636_v0 = vsel %vm7213_vm4, %v2631_v45, %v2635_v61  ;;  %v2654_v56 = vor.u32 %v2653_v6, %v2650_v9  ;;  %6410 = vmatprep.mubr.msk.bf16.mxu0 %vm381_vm1, %v5937_v60  ;;  %v6892_v6 = vld [vmem:[%s7079_s7 + $0xac] sm:$0xf] }
 0x13e   : > { %v2664_v27 = vor.u32 %v2663_v1, %v8927_v25  ;;  %v2646_v57 = vsel %vm7213_vm4, %v2641_v37, %v2645_v51  ;;  %v4837_v47 = vrot.slane %v4835_v39, 4  ;;  %v5923_v59 = vrot.slane %v6888_v3, 9 }
 0x13f   : > { %v4842_v2 = vrot.slane %v6889_v10, 5  ;;  %v5728_v46 = vcombine.low %v2612_v18, %v2622_v8  ;;  %v5938_v55 = vcombine.low %v8908_v7, %v8915_v32  ;;  %v2669_v13 = vrot.slane %v2667_v29, 5  ;;  %6278 = vmatprep.mubr.msk.bf16.mxu1 %vm381_vm1, %v5727_v42 }
 0x140   : > { %v5729_v4 = vcombine.low %v2636_v0, %v2646_v57  ;;  %v4836_v41 = vsel %vm7435_vm7, %v5922_v54, %v4835_v39  ;;  %v4839_v15 = vsel %vm7435_vm7, %v4837_v47, %v4838_v21  ;;  %v2672_v20 = vshrl.u32 %v8721_v14, 16  ;;  %v6893_v39 = vld [vmem:[%s7079_s7 + $0xc8] sm:$0x1]  ;;  %v6895_v47 = vld [vmem:[%s7079_s7 + $0xb4] sm:$0xf] }
 0x141   : > { %v2655_v53 = vrot.slane %v2654_v56, 4  ;;  %v4844_v33 = vrot.slane %v4842_v2, 4  ;;  %v4845_v50 = vrot.slane %v8528_v62, 5  ;;  %v2675_v18 = vshll.u32 %v8721_v14, 16  ;;  %v6894_v56 = vld [vmem:[%s7079_s7 + $0xb8] sm:$0xf] }
 0x142   : > { %v2665_v11 = vrot.slane %v2664_v27, 4  ;;  %v4843_v12 = vsel %vm7435_vm7, %v5923_v59, %v4842_v2  ;;  %v2674_v34 = vrot.slane %v2672_v20, 4  ;;  %v2681_v19 = vshll.u32 %v8724_v31, 16 }
 0x143   : > { %v5939_v60 = vcombine.low %v4836_v41, %v4839_v15  ;;  %v2677_v7 = vrot.slane %v2675_v18, 5  ;;  %v2685_v5 = vshrl.u32 %v8724_v31, 16  ;;  %v2691_v61 = vshll.u32 %v6890_v22, 16  ;;  %v6897_v15 = vld [vmem:[%s7079_s7 + $0xc4] sm:$0xf] }
 0x144   : > { %v2683_v8 = vrot.slane %v2681_v19, 5  ;;  %v2696_v62 = vshrl.u32 %v8737_v40, 16  ;;  %v2699_v14 = vshll.u32 %v8737_v40, 16  ;;  %v2705_v32 = vshll.u32 %v8740_v36, 16  ;;  %6411 = vmatmul.mubr.msk.bf16.gmra.mrb[16].mxu0 %vm381_vm1, %v5938_v55  ;;  %6279 = vmatmul.mubr.msk.bf16.gmra.mrb[20].mxu1 %vm381_vm1, %v5728_v46  ;;  %v6896_v46 = vld [vmem:[%s7079_s7 + $0xc0] sm:$0xf] }
 0x145   : > { %v4846_v35 = vsel %vm7435_vm7, %v4844_v33, %v4845_v50  ;;  %v2678_v23 = vor.u32 %v2677_v7, %v2674_v34  ;;  %v2687_v16 = vrot.slane %v2685_v5, 4  ;;  %v2709_v28 = vshrl.u32 %v8740_v36, 16  ;;  %6414 = vmatprep.mubr.msk.bf16.mxu0 %vm381_vm1, %v5939_v60  ;;  %6282 = vmatprep.mubr.msk.bf16.mxu1 %vm381_vm1, %v5729_v4  ;;  %v6898_v34 = vld [vmem:[%s7079_s7 + $0xd0] sm:$0xf] }
 0x146   : > { %v2693_v31 = vrot.slane %v2691_v61, 5  ;;  %v2698_v49 = vrot.slane %v2696_v62, 4  ;;  %v2701_v24 = vrot.slane %v2699_v14, 5  ;;  %v2707_v43 = vrot.slane %v2705_v32, 5 }
 0x147   : > { %v2679_v40 = vrot.slane %v2678_v23, 4  ;;  %v2688_v51 = vor.u32 %v2687_v16, %v2683_v8  ;;  %v2711_v9 = vrot.slane %v2709_v28, 4  ;;  %v5924_v29 = vrot.slane %v6891_v52, 9 }
 0x148   : > { %v2660_v45 = vsel %vm7213_vm4, %v2655_v53, %v8927_v25  ;;  %v2670_v36 = vsel %vm7213_vm4, %v2665_v11, %v2669_v13  ;;  %v4849_v1 = vrot.slane %v6892_v6, 5  ;;  %v4852_v37 = vrot.slane %v8547_v26, 5 }
 0x149   : > { %v5940_v17 = vcombine.low %v4843_v12, %v4846_v35  ;;  %v2689_v54 = vrot.slane %v2688_v51, 4  ;;  %v2702_v30 = vor.u32 %v2701_v24, %v2698_v49  ;;  %v2715_v21 = vshll.u32 %v6893_v39, 16 }
 0x14a   : > { %v2712_v42 = vor.u32 %v2711_v9, %v2707_v43  ;;  %v4850_v25 = vsel %vm7435_vm7, %v5924_v29, %v4849_v1  ;;  %v4851_v0 = vrot.slane %v4849_v1, 4  ;;  %v4856_v27 = vrot.slane %v6894_v56, 5 }
 0x14b   : > { %v2684_v26 = vsel %vm7213_vm4, %v2679_v40, %v2683_v8  ;;  %v2694_v57 = vsel %vm7213_vm4, %v2689_v54, %v2693_v31  ;;  %v5925_v3 = vrot.slane %v6895_v47, 9  ;;  %v4859_v59 = vrot.slane %v8568_v58, 5  ;;  %v6899_v8 = vld [vmem:[%s7079_s7 + $0xcc] sm:$0xf] }
 0x14c   : > { %v5730_v10 = vcombine.low %v2660_v45, %v2670_v36  ;;  %v4853_v2 = vsel %vm7435_vm7, %v4851_v0, %v4852_v37  ;;  %v5926_v55 = vrot.slane %v6896_v46, 9  ;;  %v2717_v13 = vrot.slane %v2715_v21, 5  ;;  %6415 = vmatmul.mubr.msk.bf16.gmra.mrb[20].mxu0 %vm381_vm1, %v5940_v17 }
 0x14d   : > { %v5941_v4 = vcombine.low %v4850_v25, %v4853_v2  ;;  %v4858_v41 = vrot.slane %v4856_v27, 4  ;;  %v4863_v20 = vrot.slane %v6897_v15, 5  ;;  %v5731_v53 = vcombine.low %v2684_v26, %v2694_v57 }
 0x14e   : > { %v2703_v33 = vrot.slane %v2702_v30, 4  ;;  %v2713_v50 = vrot.slane %v2712_v42, 4  ;;  %v4866_v58 = vrot.slane %v8588_v44, 5  ;;  %v4857_v18 = vsel %vm7435_vm7, %v5925_v3, %v4856_v27  ;;  %6283 = vmatmul.mubr.msk.bf16.gmra.mrb[24].mxu1 %vm381_vm1, %v5730_v10 }
 0x14f   : > { %6418 = vmatprep.mubr.msk.bf16.mxu0 %vm381_vm1, %v5941_v4  ;;  %v4860_v11 = vsel %vm7435_vm7, %v4858_v41, %v4859_v59  ;;  %v4865_v12 = vrot.slane %v4863_v20, 4  ;;  %v4870_v19 = vrot.slane %v6898_v34, 5  ;;  %v4864_v60 = vsel %vm7435_vm7, %v5926_v55, %v4863_v20  ;;  %6286 = vmatprep.mubr.msk.bf16.mxu1 %vm381_vm1, %v5731_v53 }
 0x150   : > { %v2708_v44 = vsel %vm7213_vm4, %v2703_v33, %v2707_v43  ;;  %v2718_v5 = vsel %vm7213_vm4, %v2713_v50, %v2717_v13  ;;  %v5942_v22 = vcombine.low %v4857_v18, %v4860_v11  ;;  %v5927_v62 = vrot.slane %v6899_v8, 9 }
 0x151   : > { %v4867_v7 = vsel %vm7435_vm7, %v4865_v12, %v4866_v58  ;;  %v4872_v14 = vrot.slane %v4870_v19, 4  ;;  %v4873_v32 = vrot.slane %v8603_v48, 5  ;;  %v5732_v35 = vcombine.low %v2708_v44, %v2718_v5 }
 0x152   : > { %v5943_v61 = vcombine.low %v4864_v60, %v4867_v7  ;;  %v4871_v23 = vsel %vm7435_vm7, %v5927_v62, %v4870_v19 }
 0x153   : > { %v4874_v16 = vsel %vm7435_vm7, %v4872_v14, %v4873_v32 }
 0x154   : > { %6419 = vmatmul.mubr.msk.bf16.gmra.mrb[24].mxu0 %vm381_vm1, %v5942_v22  ;;  %v5944_v38 = vcombine.low %v4871_v23, %v4874_v16 }
 0x155   : > { %6422 = vmatprep.mubr.msk.bf16.mxu0 %vm381_vm1, %v5943_v61 }
 0x156   : > { %6287 = vmatmul.mubr.msk.bf16.gmra.mrb[28].mxu1 %vm381_vm1, %v5732_v35 }
 0x15c   : > { %6423 = vmatmul.mubr.msk.bf16.gmra.mrb[28].mxu0 %vm381_vm1, %v5944_v38 }
 0x1cc   : > { %v6226_v28 = vpop.f32.mrb[0].mxu1 }
 0x1cd   : > { %v2144_v31 = vpop.f32.mrb[1].mxu1 }
 0x1ce   : > { %v6227_v48 = vpop.f32.mrb[2].mxu1 }
 0x1cf   : > { %v2147_v49 = vpop.f32.mrb[3].mxu1 }
 0x1d5   : > { %v6230_v24 = vpop.f32.mrb[4].mxu1 }
 0x1d6   : > { %v2160_v43 = vpop.f32.mrb[5].mxu1 }
 0x1d7   : > { %v6231_v40 = vpop.f32.mrb[6].mxu1 }
 0x1d8   : > { %v2163_v51 = vpop.f32.mrb[7].mxu1 }
 0x1dd   : > { %v6234_v9 = vpop.f32.mrb[8].mxu1 }
 0x1de   : > { %v2176_v52 = vpop.f32.mrb[9].mxu1 }
 0x1df   : > { %v9018_v29 = vpop.f32.mrb[10].mxu1 }
 0x1e0   : > { %v9020_v63 = vpop.f32.mrb[11].mxu1 }
 0x1e7   : > { %v9022_v45 = vpop.f32.mrb[12].mxu1 }
 0x1e8   : > { %v9024_v36 = vpop.f32.mrb[13].mxu1 }
 0x1e9   : > { %v9026_v6 = vpop.f32.mrb[14].mxu1 }
 0x1ea   : > { %v9028_v1 = vpop.f32.mrb[15].mxu1 }
 0x1f7   : > { %v6396_v37 = vpop.f32.mrb[0].mxu0 }
 0x1f8   : > { %v6428_v17 = vadd.f32 %v6396_v37, %v6226_v28  ;;  %v5042_v54 = vpop.f32.mrb[1].mxu0 }
 0x1f9   : > { %v6429_v30 = vadd.f32 %v5042_v54, %v2144_v31  ;;  %v6397_v39 = vpop.f32.mrb[2].mxu0 }
 0x1fa   : > { %vm5267_vm8 = vcmp.ge.f32.partialorder %v6428_v17, 0.0  ;;  %v5299_v21 = vmul.f32 0.01, %v6428_v17  ;;  %v6430_v42 = vadd.f32 %v6397_v39, %v6227_v48  ;;  %v5045_v25 = vpop.f32.mrb[3].mxu0 }
 0x1fb   : > { %vm5265_vm9 = vcmp.ge.f32.partialorder %v6429_v30, 0.0  ;;  %v5297_v0 = vmul.f32 0.01, %v6429_v30  ;;  %v6431_v56 = vadd.f32 %v5045_v25, %v2147_v49 }
 0x1fc   : > { %v5331_v27 = vsel %vm5267_vm8, %v6428_v17, %v5299_v21  ;;  %vm5268_vm10 = vcmp.ge.f32.partialorder %v6430_v42, 0.0  ;;  %v5300_v26 = vmul.f32 0.01, %v6430_v42 }
 0x1fd   : > { %5363 = vst [vmem:[%s9033_s4 + $0x10] sm:$0xff] %v5331_v27  ;;  %v5329_v57 = vsel %vm5265_vm9, %v6429_v30, %v5297_v0  ;;  %vm5266_vm11 = vcmp.ge.f32.partialorder %v6431_v56, 0.0  ;;  %v5298_v47 = vmul.f32 0.01, %v6431_v56 }
 0x1fe   : > { %5361 = vst [vmem:[%s9033_s4] sm:$0xff] %v5329_v57  ;;  %v5332_v3 = vsel %vm5268_vm10, %v6430_v42, %v5300_v26 }
 0x1ff   : > { %5364 = vst [vmem:[%s9033_s4 + $0x18] sm:$0xff] %v5332_v3  ;;  %v5330_v59 = vsel %vm5266_vm11, %v6431_v56, %v5298_v47  ;;  %v6400_v10 = vpop.f32.mrb[4].mxu0 }
 0x200   : > { %5362 = vst [vmem:[%s9033_s4 + $0x8] sm:$0xff] %v5330_v59  ;;  %v6432_v2 = vadd.f32 %v6400_v10, %v6230_v24  ;;  %v5058_v46 = vpop.f32.mrb[5].mxu0 }
 0x201   : > { %v6433_v55 = vadd.f32 %v5058_v46, %v2160_v43  ;;  %v6401_v13 = vpop.f32.mrb[6].mxu0 }
 0x202   : > { %vm5271_vm12 = vcmp.ge.f32.partialorder %v6432_v2, 0.0  ;;  %v5303_v4 = vmul.f32 0.01, %v6432_v2  ;;  %v6434_v41 = vadd.f32 %v6401_v13, %v6231_v40  ;;  %v5061_v15 = vpop.f32.mrb[7].mxu0 }
 0x203   : > { %vm5269_vm13 = vcmp.ge.f32.partialorder %v6433_v55, 0.0  ;;  %v5301_v20 = vmul.f32 0.01, %v6433_v55  ;;  %v6435_v53 = vadd.f32 %v5061_v15, %v2163_v51 }
 0x204   : > { %v5335_v33 = vsel %vm5271_vm12, %v6432_v2, %v5303_v4  ;;  %vm5272_vm14 = vcmp.ge.f32.partialorder %v6434_v41, 0.0  ;;  %v5304_v50 = vmul.f32 0.01, %v6434_v41 }
 0x205   : > { %5367 = vst [vmem:[%s9033_s4 + $0x30] sm:$0xff] %v5335_v33  ;;  %v5333_v58 = vsel %vm5269_vm13, %v6433_v55, %v5301_v20  ;;  %vm5270_vm15 = vcmp.ge.f32.partialorder %v6435_v53, 0.0  ;;  %v5302_v18 = vmul.f32 0.01, %v6435_v53 }
 0x206   : > { %5365 = vst [vmem:[%s9033_s4 + $0x20] sm:$0xff] %v5333_v58  ;;  %v5336_v11 = vsel %vm5272_vm14, %v6434_v41, %v5304_v50 }
 0x207   : > { %5368 = vst [vmem:[%s9033_s4 + $0x38] sm:$0xff] %v5336_v11  ;;  %v5334_v12 = vsel %vm5270_vm15, %v6435_v53, %v5302_v18  ;;  %v6404_v34 = vpop.f32.mrb[8].mxu0 }
 0x208   : > { %5366 = vst [vmem:[%s9033_s4 + $0x28] sm:$0xff] %v5334_v12  ;;  %v6436_v19 = vadd.f32 %v6404_v34, %v6234_v9  ;;  %v5074_v60 = vpop.f32.mrb[9].mxu0 }
 0x209   : > { %v6437_v7 = vadd.f32 %v5074_v60, %v2176_v52  ;;  %v6405_v44 = vpop.f32.mrb[10].mxu0 }
 0x20a   : > { %vm5275_vm0 = vcmp.ge.f32.partialorder %v6436_v19, 0.0  ;;  %v5307_v5 = vmul.f32 0.01, %v6436_v19  ;;  %v6438_v22 = vadd.f32 %v6405_v44, %v9018_v29  ;;  %v5077_v61 = vpop.f32.mrb[11].mxu0 }
 0x20b   : > { %vm5273_vm1 = vcmp.ge.f32.partialorder %v6437_v7, 0.0  ;;  %v5305_v8 = vmul.f32 0.01, %v6437_v7  ;;  %v6439_v62 = vadd.f32 %v5077_v61, %v9020_v63 }
 0x20c   : > { %v5339_v14 = vsel %vm5275_vm0, %v6436_v19, %v5307_v5  ;;  %vm5276_vm2 = vcmp.ge.f32.partialorder %v6438_v22, 0.0  ;;  %v5308_v32 = vmul.f32 0.01, %v6438_v22 }
 0x20d   : > { %5371 = vst [vmem:[%s9033_s4 + $0x50] sm:$0xff] %v5339_v14  ;;  %v5337_v35 = vsel %vm5273_vm1, %v6437_v7, %v5305_v8  ;;  %vm5274_vm3 = vcmp.ge.f32.partialorder %v6439_v62, 0.0  ;;  %v5306_v23 = vmul.f32 0.01, %v6439_v62 }
 0x20e   : > { %5369 = vst [vmem:[%s9033_s4 + $0x40] sm:$0xff] %v5337_v35  ;;  %v5340_v16 = vsel %vm5276_vm2, %v6438_v22, %v5308_v32 }
 0x20f   : > { %5372 = vst [vmem:[%s9033_s4 + $0x58] sm:$0xff] %v5340_v16  ;;  %v5338_v38 = vsel %vm5274_vm3, %v6439_v62, %v5306_v23  ;;  %v6408_v28 = vpop.f32.mrb[12].mxu0  ;;  %v6276_v43 = vpop.f32.mrb[16].mxu1 }
 0x210   : > { %5370 = vst [vmem:[%s9033_s4 + $0x48] sm:$0xff] %v5338_v38  ;;  %v6440_v31 = vadd.f32 %v6408_v28, %v9022_v45  ;;  %v5090_v48 = vpop.f32.mrb[13].mxu0  ;;  %v2950_v52 = vpop.f32.mrb[17].mxu1 }
 0x211   : > { %v6441_v49 = vadd.f32 %v5090_v48, %v9024_v36  ;;  %v6409_v24 = vpop.f32.mrb[14].mxu0  ;;  %v6277_v37 = vpop.f32.mrb[18].mxu1 }
 0x212   : > { %vm5279_vm4 = vcmp.ge.f32.partialorder %v6440_v31, 0.0  ;;  %v5311_v40 = vmul.f32 0.01, %v6440_v31  ;;  %v6442_v51 = vadd.f32 %v6409_v24, %v9026_v6  ;;  %v5093_v9 = vpop.f32.mrb[15].mxu0  ;;  %v2953_v54 = vpop.f32.mrb[19].mxu1 }
 0x213   : > { %vm5277_vm5 = vcmp.ge.f32.partialorder %v6441_v49, 0.0  ;;  %v5309_v29 = vmul.f32 0.01, %v6441_v49  ;;  %v6443_v63 = vadd.f32 %v5093_v9, %v9028_v1 }
 0x214   : > { %v5343_v45 = vsel %vm5279_vm4, %v6440_v31, %v5311_v40  ;;  %vm5280_vm6 = vcmp.ge.f32.partialorder %v6442_v51, 0.0  ;;  %v5312_v17 = vmul.f32 0.01, %v6442_v51 }
 0x215   : > { %5375 = vst [vmem:[%s9033_s4 + $0x70] sm:$0xff] %v5343_v45  ;;  %v5341_v36 = vsel %vm5277_vm5, %v6441_v49, %v5309_v29  ;;  %vm5278_vm7 = vcmp.ge.f32.partialorder %v6443_v63, 0.0  ;;  %v5310_v30 = vmul.f32 0.01, %v6443_v63 }
 0x216   : > { %5373 = vst [vmem:[%s9033_s4 + $0x60] sm:$0xff] %v5341_v36  ;;  %v5344_v39 = vsel %vm5280_vm6, %v6442_v51, %v5312_v17 }
 0x217   : > { %5376 = vst [vmem:[%s9033_s4 + $0x78] sm:$0xff] %v5344_v39  ;;  %v5342_v6 = vsel %vm5278_vm7, %v6443_v63, %v5310_v30  ;;  %v6412_v21 = vpop.f32.mrb[16].mxu0  ;;  %v6280_v56 = vpop.f32.mrb[20].mxu1 }
 0x218   : > { %5374 = vst [vmem:[%s9033_s4 + $0x68] sm:$0xff] %v5342_v6  ;;  %v6444_v42 = vadd.f32 %v6412_v21, %v6276_v43  ;;  %v5106_v25 = vpop.f32.mrb[17].mxu0  ;;  %v2966_v47 = vpop.f32.mrb[21].mxu1 }
 0x219   : > { %v6445_v0 = vadd.f32 %v5106_v25, %v2950_v52  ;;  %v6413_v1 = vpop.f32.mrb[18].mxu0  ;;  %v6281_v2 = vpop.f32.mrb[22].mxu1 }
 0x21a   : > { %vm5283_vm8 = vcmp.ge.f32.partialorder %v6444_v42, 0.0  ;;  %v5315_v27 = vmul.f32 0.01, %v6444_v42  ;;  %v6446_v26 = vadd.f32 %v6413_v1, %v6277_v37  ;;  %v5109_v57 = vpop.f32.mrb[19].mxu0  ;;  %v2969_v13 = vpop.f32.mrb[23].mxu1 }
 0x21b   : > { %vm5281_vm9 = vcmp.ge.f32.partialorder %v6445_v0, 0.0  ;;  %v5313_v3 = vmul.f32 0.01, %v6445_v0  ;;  %v6447_v59 = vadd.f32 %v5109_v57, %v2953_v54 }
 0x21c   : > { %v5347_v10 = vsel %vm5283_vm8, %v6444_v42, %v5315_v27  ;;  %vm5284_vm10 = vcmp.ge.f32.partialorder %v6446_v26, 0.0  ;;  %v5316_v46 = vmul.f32 0.01, %v6446_v26 }
 0x21d   : > { %5379 = vst [vmem:[%s9033_s4 + $0x90] sm:$0xff] %v5347_v10  ;;  %v5345_v55 = vsel %vm5281_vm9, %v6445_v0, %v5313_v3  ;;  %vm5282_vm11 = vcmp.ge.f32.partialorder %v6447_v59, 0.0  ;;  %v5314_v4 = vmul.f32 0.01, %v6447_v59 }
 0x21e   : > { %5377 = vst [vmem:[%s9033_s4 + $0x80] sm:$0xff] %v5345_v55  ;;  %v5348_v41 = vsel %vm5284_vm10, %v6446_v26, %v5316_v46 }
 0x21f   : > { %5380 = vst [vmem:[%s9033_s4 + $0x98] sm:$0xff] %v5348_v41  ;;  %v5346_v15 = vsel %vm5282_vm11, %v6447_v59, %v5314_v4  ;;  %v6416_v20 = vpop.f32.mrb[20].mxu0 }
 0x220   : > { %5378 = vst [vmem:[%s9033_s4 + $0x88] sm:$0xff] %v5346_v15  ;;  %v6448_v53 = vadd.f32 %v6416_v20, %v6280_v56  ;;  %v5122_v33 = vpop.f32.mrb[21].mxu0 }
 0x221   : > { %v6449_v50 = vadd.f32 %v5122_v33, %v2966_v47  ;;  %v6417_v58 = vpop.f32.mrb[22].mxu0  ;;  %v6284_v18 = vpop.f32.mrb[24].mxu1 }
 0x222   : > { %vm5287_vm12 = vcmp.ge.f32.partialorder %v6448_v53, 0.0  ;;  %v5319_v11 = vmul.f32 0.01, %v6448_v53  ;;  %v6450_v12 = vadd.f32 %v6417_v58, %v6281_v2  ;;  %v5125_v34 = vpop.f32.mrb[23].mxu0  ;;  %v2982_v19 = vpop.f32.mrb[25].mxu1 }
 0x223   : > { %vm5285_vm13 = vcmp.ge.f32.partialorder %v6449_v50, 0.0  ;;  %v5317_v60 = vmul.f32 0.01, %v6449_v50  ;;  %v6451_v7 = vadd.f32 %v5125_v34, %v2969_v13  ;;  %v6285_v5 = vpop.f32.mrb[26].mxu1 }
 0x224   : > { %v5351_v44 = vsel %vm5287_vm12, %v6448_v53, %v5319_v11  ;;  %vm5288_vm14 = vcmp.ge.f32.partialorder %v6450_v12, 0.0  ;;  %v5320_v22 = vmul.f32 0.01, %v6450_v12  ;;  %v2985_v8 = vpop.f32.mrb[27].mxu1 }
 0x225   : > { %5383 = vst [vmem:[%s9033_s4 + $0xb0] sm:$0xff] %v5351_v44  ;;  %v5349_v61 = vsel %vm5285_vm13, %v6449_v50, %v5317_v60  ;;  %vm5286_vm15 = vcmp.ge.f32.partialorder %v6451_v7, 0.0  ;;  %v5318_v62 = vmul.f32 0.01, %v6451_v7 }
 0x226   : > { %5381 = vst [vmem:[%s9033_s4 + $0xa0] sm:$0xff] %v5349_v61  ;;  %v5352_v14 = vsel %vm5288_vm14, %v6450_v12, %v5320_v22 }
 0x227   : > { %5384 = vst [vmem:[%s9033_s4 + $0xb8] sm:$0xff] %v5352_v14  ;;  %v5350_v32 = vsel %vm5286_vm15, %v6451_v7, %v5318_v62  ;;  %v6420_v35 = vpop.f32.mrb[24].mxu0 }
 0x228   : > { %5382 = vst [vmem:[%s9033_s4 + $0xa8] sm:$0xff] %v5350_v32  ;;  %v6452_v23 = vadd.f32 %v6420_v35, %v6284_v18  ;;  %v5138_v16 = vpop.f32.mrb[25].mxu0 }
 0x229   : > { %v6453_v38 = vadd.f32 %v5138_v16, %v2982_v19  ;;  %v6421_v28 = vpop.f32.mrb[26].mxu0  ;;  %v6288_v31 = vpop.f32.mrb[28].mxu1 }
 0x22a   : > { %vm5291_vm0 = vcmp.ge.f32.partialorder %v6452_v23, 0.0  ;;  %v5323_v48 = vmul.f32 0.01, %v6452_v23  ;;  %v6454_v49 = vadd.f32 %v6421_v28, %v6285_v5  ;;  %v5141_v24 = vpop.f32.mrb[27].mxu0  ;;  %v2998_v43 = vpop.f32.mrb[29].mxu1 }
 0x22b   : > { %vm5289_vm1 = vcmp.ge.f32.partialorder %v6453_v38, 0.0  ;;  %v5321_v40 = vmul.f32 0.01, %v6453_v38  ;;  %v6455_v51 = vadd.f32 %v5141_v24, %v2985_v8  ;;  %v6289_v52 = vpop.f32.mrb[30].mxu1 }
 0x22c   : > { %v5355_v9 = vsel %vm5291_vm0, %v6452_v23, %v5323_v48  ;;  %vm5292_vm2 = vcmp.ge.f32.partialorder %v6454_v49, 0.0  ;;  %v5324_v29 = vmul.f32 0.01, %v6454_v49  ;;  %v3001_v45 = vpop.f32.mrb[31].mxu1 }
 0x22d   : > { %5387 = vst [vmem:[%s9033_s4 + $0xd0] sm:$0xff] %v5355_v9  ;;  %v5353_v63 = vsel %vm5289_vm1, %v6453_v38, %v5321_v40  ;;  %vm5290_vm3 = vcmp.ge.f32.partialorder %v6455_v51, 0.0  ;;  %v5322_v37 = vmul.f32 0.01, %v6455_v51 }
 0x22e   : > { %5385 = vst [vmem:[%s9033_s4 + $0xc0] sm:$0xff] %v5353_v63  ;;  %v5356_v17 = vsel %vm5292_vm2, %v6454_v49, %v5324_v29 }
 0x22f   : > { %5388 = vst [vmem:[%s9033_s4 + $0xd8] sm:$0xff] %v5356_v17  ;;  %v5354_v36 = vsel %vm5290_vm3, %v6455_v51, %v5322_v37  ;;  %v6424_v54 = vpop.f32.mrb[28].mxu0 }
 0x230   : > { %5386 = vst [vmem:[%s9033_s4 + $0xc8] sm:$0xff] %v5354_v36  ;;  %v6456_v30 = vadd.f32 %v6424_v54, %v6288_v31  ;;  %v5154_v39 = vpop.f32.mrb[29].mxu0 }
 0x231   : > { %v6457_v6 = vadd.f32 %v5154_v39, %v2998_v43  ;;  %v6425_v21 = vpop.f32.mrb[30].mxu0 }
 0x232   : > { %vm5295_vm4 = vcmp.ge.f32.partialorder %v6456_v30, 0.0  ;;  %v5327_v42 = vmul.f32 0.01, %v6456_v30  ;;  %v6458_v25 = vadd.f32 %v6425_v21, %v6289_v52  ;;  %v5157_v0 = vpop.f32.mrb[31].mxu0 }
 0x233   : > { %vm5293_vm5 = vcmp.ge.f32.partialorder %v6457_v6, 0.0  ;;  %v5325_v1 = vmul.f32 0.01, %v6457_v6  ;;  %v6459_v56 = vadd.f32 %v5157_v0, %v3001_v45 }
 0x234   : > { %v5359_v27 = vsel %vm5295_vm4, %v6456_v30, %v5327_v42  ;;  %vm5296_vm6 = vcmp.ge.f32.partialorder %v6458_v25, 0.0  ;;  %v5328_v26 = vmul.f32 0.01, %v6458_v25 }
 0x235   : > { %5391 = vst [vmem:[%s9033_s4 + $0xf0] sm:$0xff] %v5359_v27  ;;  %v5357_v57 = vsel %vm5293_vm5, %v6457_v6, %v5325_v1  ;;  %vm5294_vm7 = vcmp.ge.f32.partialorder %v6459_v56, 0.0  ;;  %v5326_v47 = vmul.f32 0.01, %v6459_v56 }
 0x236   : > { %5389 = vst [vmem:[%s9033_s4 + $0xe0] sm:$0xff] %v5357_v57  ;;  %v5360_v3 = vsel %vm5296_vm6, %v6458_v25, %v5328_v26 }
 0x237   : > { %5392 = vst [vmem:[%s9033_s4 + $0xf8] sm:$0xff] %v5360_v3  ;;  %v5358_v59 = vsel %vm5294_vm7, %v6459_v56, %v5326_v47 }
 0x238   : > { %5390 = vst [vmem:[%s9033_s4 + $0xe8] sm:$0xff] %v5358_v59 }
 0x239   : > { %6913 = shalt.err (!%p6910_p5)
}
 0x23a   : > { %s6914_s24 = scalar_lea.hbm %s9075_s15, 4096  ;;  %s6918_s27 = scalar_lea.hbm %s9132_s2, 8192 }
 0x23b   : > { %p6915_p6 = scmp.ne.s32.totalorder %s9075_s15, %s6914_s24  ;;  %p6919_p10 = scmp.lt.u32.totalorder %s9075_s15, %s9132_s2 }
 0x23c   : > { %p6920_p11 = scmp.lt.u32.totalorder %s6918_s27, %s6914_s24  ;;  %p6922_p13 = scmp.lt.u32.totalorder %s6914_s24, %s9075_s15 }
 0x23d   : > { %p6916_p7 = pnand %p6915_p6, %p7038_p4 }
 0x23e   : > { %p6921_p12 = por %p6920_p11, %p6919_p10 }
 0x23f   : > { %p6917_p9 = pneg %p6916_p7 }
 0x240   : > { %p6923_p0 = por %p6922_p13, %p6921_p12 }
 0x242   : > { %p6924_p1 = pnand %p6923_p0, %p6917_p9 }
 0x244   : > { %6927 = shalt.err (!%p6924_p1)
}
 0x245   : > { %s6981_s30 = smov 128   ;;  %s6982_s3 = smov 8  }
 0x246   : > { %6695 = dma.vmem_to_hbm [thread:$0]  (%p7038_p4), %s9077_s6, 4096, %s9075_s15, %s9084_s12, %s6981_s30, %s6981_s30, %s6982_s3  }
 0x247 PF: > { %p6701_p2 = scmp.ge.s32.totalorder %s6978_s14, 2  ;;  %s5426_s4 = sand.u32 1, %s6958_s9  }
 0x248   : > { %s5427_s5 = scalar_lea.sflag [#allocation4], %s5426_s4 }
 0x249   : > { %p6698_p3 = pnand %p6701_p2, %p7045_p8 }
 0x24b   : > { %6953 = dma.done.wait (!%p6698_p3), %s5427_s5, 4096  }
 0x24c   : > { %6955 = vsyncadd (!%p6698_p3), %s5427_s5, 4294963200  ;;  %s15_s14 = sadd.s32 1, %s6978_s14   ;;  %s9315_s9 = smov %s6962_s10 }
 0x24d   : > { %p12_p5 = scmp.ge.s32.totalorder %s15_s14, 4   ;;  %s9316_s10 = smov %s6966_s11 }
 0x24e   : > { %s9317_s11 = smov %s7051_s22  ;;  %s9318_s12 = smov %s6974_s13 }
 0x24f   : > { %s9319_s13 = smov %s9321_s17  ;;  %14 = sbr.rel (!%p12_p5) target bundleno = 4 (0x4), region = 77 }
 0x256   :  { %5432 = vsyncpa [#allocation4], 1 }
 0x257   :  { %5434 = vsyncpa [#allocation4 + $0x1], 1 }

</bundles_post_ra>
